<compile_context>
chip_gen: v7x
topology: tpu7x:2x2x1
jax: 0.10.0
libtpu: 0.0.40
codegen_flags: <defaults>
</compile_context>

<pallas_src>
import functools
import math

import numpy as np
import jax
import jax.numpy as jnp
from jax import lax
from jax.experimental import pallas as pl
from jax.experimental.pallas import tpu as pltpu

F32 = jnp.float32
BF = jnp.bfloat16
ELU_ALPHA = 0.1      # Conv1DEncoder is built with ELUAlpha=0.1 inside TransformEEG
LN_EPS = 1e-5        # nn.LayerNorm default
BN_EPS = 1e-5        # nn.BatchNorm1d default


# ----------------------------------------------------------------------------- #
# Fused per-example forward kernel
# ----------------------------------------------------------------------------- #
def _transform_eeg_kernel(*refs, dims):
    K = dims["K"]
    pad = dims["pad"]
    T0, Chan = dims["T0"], dims["Chan"]
    F1, F2 = dims["F1"], dims["F2"]
    pool, stride = dims["pool"], dims["stride"]
    T1, T2 = dims["T1"], dims["T2"]

    o_ref = refs[-1]
    it = iter(refs[:-1])
    x_ref = next(it)                                       # (1, T0, Chan)
    conv = [(next(it), next(it), next(it)) for _ in range(4)]   # (Wstack, scale, shift)
    layers = [[next(it) for _ in range(16)] for _ in range(2)]
    wh1, bh1, wh2, bh2 = next(it), next(it), next(it), next(it)

    # ---- grouped Conv1d('same') + folded BatchNorm(eval) + ELU, via im2col ----
    def im2col(x, T, C):
        # zero-pad time (sublanes), then K statically shifted copies concatenated
        # on the lane axis -> (T, K*C); matches out[t] = sum_k w_k * x[t + k - pad].
        zeros = jnp.zeros((pad, C), F32)
        xp = jnp.concatenate([zeros, x, zeros], axis=0)    # (T + 2*pad, C)
        cols = [xp[k:k + T, :] for k in range(K)]
        return jnp.concatenate(cols, axis=-1)              # (T, K*C)

    def conv_bn_elu(x, T, C, w_ref, sc_ref, sh_ref):
        xi = im2col(x, T, C).astype(BF)
        y = jnp.dot(xi, w_ref[...], preferred_element_type=F32)   # one wide matmul
        y = y * sc_ref[...] + sh_ref[...]                          # bias+BN folded
        # ELU(alpha=0.1), computed in f32 on the VPU/EUP
        return jnp.where(y > 0.0, y,
                         ELU_ALPHA * (jnp.exp(jnp.minimum(y, 0.0)) - 1.0))

    # ---- AvgPool1d(pool, stride), averaging matrix generated in-kernel (iota) ----
    def avg_pool(x, T):
        To = (T - pool) // stride + 1
        r = lax.broadcasted_iota(jnp.int32, (To, T), 0)
        c = lax.broadcasted_iota(jnp.int32, (To, T), 1)
        d = c - stride * r
        P = jnp.where((d >= 0) & (d < pool), 1.0 / pool, 0.0).astype(BF)
        return jnp.dot(P, x.astype(BF), preferred_element_type=F32)

    # ---- Conv1DEncoder (time on sublanes, channels on lanes) ----
    x = x_ref[0].astype(F32)                                 # (T0, Chan)
    h1 = conv_bn_elu(x, T0, Chan, *conv[0])                  # blck1       (T0, F1)
    h1 = avg_pool(h1, T0)                                    # pool1/drop1 (T1, F1)
    h2 = h1 + conv_bn_elu(h1, T1, F1, *conv[1])              # blck2 + res (T1, F1)
    h3 = conv_bn_elu(h2, T1, F1, *conv[2])                   # blck3       (T1, F2)
    h3 = avg_pool(h3, T1)                                    # pool2/drop2 (T2, F2)
    h = h3 + conv_bn_elu(h3, T2, F2, *conv[3])               # blck4 + res -> tokens

    # ---- 2x TransformerEncoderLayer (nhead=1, post-norm, hardswish FFN, eval) ----
    inv_sqrt_d = 1.0 / math.sqrt(F2)

    def layernorm(v, g, b):
        mu = jnp.mean(v, axis=-1, keepdims=True)
        vc = v - mu
        var = jnp.mean(vc * vc, axis=-1, keepdims=True)
        return vc * lax.rsqrt(var + LN_EPS) * g + b

    for lp in layers:
        (wq, bq, wk, bk, wv, bv, wo, bo,
         g1, be1, wf1, bf1, wf2, bf2, g2, be2) = lp
        hb = h.astype(BF)
        q = jnp.dot(hb, wq[...], preferred_element_type=F32) + bq[...]
        kk = jnp.dot(hb, wk[...], preferred_element_type=F32) + bk[...]
        v = jnp.dot(hb, wv[...], preferred_element_type=F32) + bv[...]
        # scores via dot_general contracting last dims (no explicit transpose)
        s = lax.dot_general(q.astype(BF), kk.astype(BF),
                            dimension_numbers=(((1,), (1,)), ((), ())),
                            preferred_element_type=F32) * inv_sqrt_d
        s = s - jnp.max(s, axis=-1, keepdims=True)
        e = jnp.exp(s)
        p = e / jnp.sum(e, axis=-1, keepdims=True)
        attn = jnp.dot(p.astype(BF), v.astype(BF), preferred_element_type=F32)
        attn = jnp.dot(attn.astype(BF), wo[...], preferred_element_type=F32) + bo[...]
        h = layernorm(h + attn, g1[...], be1[...])
        ff = jnp.dot(h.astype(BF), wf1[...], preferred_element_type=F32) + bf1[...]
        ff = ff * jnp.clip(ff + 3.0, 0.0, 6.0) * (1.0 / 6.0)       # hardswish
        ff = jnp.dot(ff.astype(BF), wf2[...], preferred_element_type=F32) + bf2[...]
        h = layernorm(h + ff, g2[...], be2[...])

    # ---- AdaptiveAvgPool1d(1) over sequence + Linear -> LeakyReLU -> Linear ----
    pooled = jnp.mean(h, axis=0, keepdims=True)                     # (1, F2)
    z = jnp.dot(pooled.astype(BF), wh1[...], preferred_element_type=F32) + bh1[...]
    z = jnp.where(z > 0.0, z, 0.01 * z)                             # LeakyReLU
    out = jnp.dot(z.astype(BF), wh2[...], preferred_element_type=F32) + bh2[...]
    o_ref[...] = out.reshape(1, 1, out.shape[-1]).astype(F32)


# ----------------------------------------------------------------------------- #
# Parameter initialization (deterministic, synthetic; shapes match the nn.Module)
# ----------------------------------------------------------------------------- #
def init_params(key, Chan=8, D1=2, D2=2, K=5, Features=32, nb_classes=4):
    F1 = Chan * D1
    F2 = Chan * D1 * D2
    assert F2 == Features, "Features must equal Chan*D1*D2 (as in the PyTorch model)"
    hidden = Features // 2 if Features // 2 > 64 else 64
    n_out = 1 if nb_classes <= 2 else nb_classes
    keys = iter(jax.random.split(key, 128))

    def nrm(shape, scale=0.1):
        return (scale * jax.random.normal(next(keys), shape, dtype=F32)).astype(F32)

    def conv_block(Cin, Cout, depth):
        # grouped Conv1d weight (Cout, 1, K): output channel c reads input c//depth.
        # Stored as the im2col-stacked (K*Cin, Cout) matrix (bf16 for the MXU).
        taps = nrm((K, Cout), 0.3)
        mask = np.zeros((Cin, Cout), np.float32)
        for c in range(Cout):
            mask[c // depth, c] = 1.0
        W = taps[:, None, :] * jnp.asarray(mask)[None, :, :]        # (K, Cin, Cout)
        W_stack = W.reshape(K * Cin, Cout).astype(BF)
        bias = nrm((1, Cout))
        gamma = 1.0 + nrm((1, Cout))
        beta = nrm((1, Cout))
        rmean = nrm((1, Cout))
        rvar = 1.0 + jnp.abs(nrm((1, Cout)))
        scale = (gamma / jnp.sqrt(rvar + BN_EPS)).astype(F32)
        shift = ((bias - rmean) * scale + beta).astype(F32)          # conv bias folded
        return [W_stack, scale, shift]

    conv = [conv_block(Chan, F1, D1),     # blck1
            conv_block(F1, F1, 1),        # blck2 (depthwise)
            conv_block(F1, F2, D2),       # blck3
            conv_block(F2, F2, 1)]        # blck4 (depthwise)

    def tlayer():
        s = 1.0 / math.sqrt(F2)

        def lin(nin, nout):
            return [nrm((nin, nout), s).astype(BF), nrm((1, nout))]

        wq, bq = lin(F2, F2)
        wk, bk = lin(F2, F2)
        wv, bv = lin(F2, F2)
        wo, bo = lin(F2, F2)
        wf1, bf1 = lin(F2, F2)
        wf2, bf2 = lin(F2, F2)
        g1 = jnp.ones((1, F2), F32); be1 = jnp.zeros((1, F2), F32)
        g2 = jnp.ones((1, F2), F32); be2 = jnp.zeros((1, F2), F32)
        return [wq, bq, wk, bk, wv, bv, wo, bo,
                g1, be1, wf1, bf1, wf2, bf2, g2, be2]

    layers = [tlayer(), tlayer()]
    head = [nrm((F2, hidden), 1.0 / math.sqrt(F2)).astype(BF), nrm((1, hidden)),
            nrm((hidden, n_out), 1.0 / math.sqrt(hidden)).astype(BF), nrm((1, n_out))]

    cfg = dict(Chan=Chan, D1=D1, D2=D2, K=K, F1=F1, F2=F2,
               pool=4, stride=2, hidden=hidden, n_out=n_out)
    return dict(conv=conv, layers=layers, head=head, cfg=cfg)


# ----------------------------------------------------------------------------- #
# Full TransformEEG forward: one pallas_call, grid over batch, weights resident
# ----------------------------------------------------------------------------- #
def transform_eeg_forward(x, params):
    cfg = params["cfg"]
    B, Chan, T0 = x.shape
    K = cfg["K"]
    pad = (K - 1) // 2
    F1, F2 = cfg["F1"], cfg["F2"]
    pool, stride = cfg["pool"], cfg["stride"]
    T1 = (T0 - pool) // stride + 1
    T2 = (T1 - pool) // stride + 1
    n_out = cfg["n_out"]

    # time-major / channels-on-lanes layout: (B, Chan, T) -> (B, T, Chan)
    x_t = jnp.transpose(x, (0, 2, 1))

    weights = []
    for blk in params["conv"]:
        weights += list(blk)
    for lp in params["layers"]:
        weights += list(lp)
    weights += list(params["head"])

    in_specs = [pl.BlockSpec((1, T0, Chan), lambda b: (b, 0, 0))]
    for _ in weights:                       # all weights are 2-D, constant block
        in_specs.append(pl.BlockSpec(None, None))
    # replace the placeholder specs with full-shape, constant-index blocks
    in_specs = [in_specs[0]] + [
        pl.BlockSpec(w.shape, lambda b: (0, 0)) for w in weights
    ]

    kern = functools.partial(
        _transform_eeg_kernel,
        dims=dict(K=K, pad=pad, T0=T0, Chan=Chan, F1=F1, F2=F2,
                  pool=pool, stride=stride, T1=T1, T2=T2))

    out = pl.pallas_call(
        kern,
        grid=(B,),
        in_specs=in_specs,
        out_specs=pl.BlockSpec((1, 1, n_out), lambda b: (b, 0, 0)),
        out_shape=jax.ShapeDtypeStruct((B, 1, n_out), F32),
        compiler_params=pltpu.CompilerParams(
            dimension_semantics=("parallel",),
            vmem_limit_bytes=32 * 1024 * 1024),
    )(x_t, *weights)
    return out.reshape(B, n_out)


if __name__ == "__main__":
    key = jax.random.PRNGKey(0)
    kx, kp = jax.random.split(key)

    # small shapes: batch=2, Chan=8 EEG channels, T=64 time samples,
    # Features = Chan*D1*D2 = 32, nb_classes=4 -> output (2, 4)
    B, Chan, T = 2, 8, 64
    Features, nb_classes = 32, 4

    x = jax.random.normal(kx, (B, Chan, T), dtype=F32)
    params = init_params(kp, Chan=Chan, Features=Features, nb_classes=nb_classes)

    fwd = jax.jit(lambda xx: transform_eeg_forward(xx, params))
    out = fwd(x)
    jax.block_until_ready(out)
    assert out.shape == (B, nb_classes), out.shape
    assert bool(jnp.all(jnp.isfinite(out)))
    print("KERNEL_OK")
</pallas_src>

<mosaic_0001>
module attributes {stable_mosaic.version = 11 : i64} {
  func.func @_transform_eeg_kernel(%arg0: i32, %arg1: memref<1x64x8xf32, #tpu.memory_space<vmem>>, %arg2: memref<40x16xbf16, #tpu.memory_space<vmem>>, %arg3: memref<1x16xf32, #tpu.memory_space<vmem>>, %arg4: memref<1x16xf32, #tpu.memory_space<vmem>>, %arg5: memref<80x16xbf16, #tpu.memory_space<vmem>>, %arg6: memref<1x16xf32, #tpu.memory_space<vmem>>, %arg7: memref<1x16xf32, #tpu.memory_space<vmem>>, %arg8: memref<80x32xbf16, #tpu.memory_space<vmem>>, %arg9: memref<1x32xf32, #tpu.memory_space<vmem>>, %arg10: memref<1x32xf32, #tpu.memory_space<vmem>>, %arg11: memref<160x32xbf16, #tpu.memory_space<vmem>>, %arg12: memref<1x32xf32, #tpu.memory_space<vmem>>, %arg13: memref<1x32xf32, #tpu.memory_space<vmem>>, %arg14: memref<32x32xbf16, #tpu.memory_space<vmem>>, %arg15: memref<1x32xf32, #tpu.memory_space<vmem>>, %arg16: memref<32x32xbf16, #tpu.memory_space<vmem>>, %arg17: memref<1x32xf32, #tpu.memory_space<vmem>>, %arg18: memref<32x32xbf16, #tpu.memory_space<vmem>>, %arg19: memref<1x32xf32, #tpu.memory_space<vmem>>, %arg20: memref<32x32xbf16, #tpu.memory_space<vmem>>, %arg21: memref<1x32xf32, #tpu.memory_space<vmem>>, %arg22: memref<1x32xf32, #tpu.memory_space<vmem>>, %arg23: memref<1x32xf32, #tpu.memory_space<vmem>>, %arg24: memref<32x32xbf16, #tpu.memory_space<vmem>>, %arg25: memref<1x32xf32, #tpu.memory_space<vmem>>, %arg26: memref<32x32xbf16, #tpu.memory_space<vmem>>, %arg27: memref<1x32xf32, #tpu.memory_space<vmem>>, %arg28: memref<1x32xf32, #tpu.memory_space<vmem>>, %arg29: memref<1x32xf32, #tpu.memory_space<vmem>>, %arg30: memref<32x32xbf16, #tpu.memory_space<vmem>>, %arg31: memref<1x32xf32, #tpu.memory_space<vmem>>, %arg32: memref<32x32xbf16, #tpu.memory_space<vmem>>, %arg33: memref<1x32xf32, #tpu.memory_space<vmem>>, %arg34: memref<32x32xbf16, #tpu.memory_space<vmem>>, %arg35: memref<1x32xf32, #tpu.memory_space<vmem>>, %arg36: memref<32x32xbf16, #tpu.memory_space<vmem>>, %arg37: memref<1x32xf32, #tpu.memory_space<vmem>>, %arg38: memref<1x32xf32, #tpu.memory_space<vmem>>, %arg39: memref<1x32xf32, #tpu.memory_space<vmem>>, %arg40: memref<32x32xbf16, #tpu.memory_space<vmem>>, %arg41: memref<1x32xf32, #tpu.memory_space<vmem>>, %arg42: memref<32x32xbf16, #tpu.memory_space<vmem>>, %arg43: memref<1x32xf32, #tpu.memory_space<vmem>>, %arg44: memref<1x32xf32, #tpu.memory_space<vmem>>, %arg45: memref<1x32xf32, #tpu.memory_space<vmem>>, %arg46: memref<32x64xbf16, #tpu.memory_space<vmem>>, %arg47: memref<1x64xf32, #tpu.memory_space<vmem>>, %arg48: memref<64x4xbf16, #tpu.memory_space<vmem>>, %arg49: memref<1x4xf32, #tpu.memory_space<vmem>>, %arg50: memref<1x1x4xf32, #tpu.memory_space<vmem>>) attributes {dimension_semantics = [#tpu.dimension_semantics<parallel>], iteration_bounds = array<i64: 2>, scalar_prefetch = 0 : i64, scratch_operands = 0 : i64, tpu.core_type = #tpu.core_type<tc>, window_params = [{transform_indices = @transform_0, window_bounds = array<i64: 1, 64, 8>}, {pipeline_mode = #tpu.pipeline_mode<synchronous>, transform_indices = @transform_1, window_bounds = array<i64: 40, 16>}, {pipeline_mode = #tpu.pipeline_mode<synchronous>, transform_indices = @transform_2, window_bounds = array<i64: 1, 16>}, {pipeline_mode = #tpu.pipeline_mode<synchronous>, transform_indices = @transform_3, window_bounds = array<i64: 1, 16>}, {pipeline_mode = #tpu.pipeline_mode<synchronous>, transform_indices = @transform_4, window_bounds = array<i64: 80, 16>}, {pipeline_mode = #tpu.pipeline_mode<synchronous>, transform_indices = @transform_5, window_bounds = array<i64: 1, 16>}, {pipeline_mode = #tpu.pipeline_mode<synchronous>, transform_indices = @transform_6, window_bounds = array<i64: 1, 16>}, {pipeline_mode = #tpu.pipeline_mode<synchronous>, transform_indices = @transform_7, window_bounds = array<i64: 80, 32>}, {pipeline_mode = #tpu.pipeline_mode<synchronous>, transform_indices = @transform_8, window_bounds = array<i64: 1, 32>}, {pipeline_mode = #tpu.pipeline_mode<synchronous>, transform_indices = @transform_9, window_bounds = array<i64: 1, 32>}, {pipeline_mode = #tpu.pipeline_mode<synchronous>, transform_indices = @transform_10, window_bounds = array<i64: 160, 32>}, {pipeline_mode = #tpu.pipeline_mode<synchronous>, transform_indices = @transform_11, window_bounds = array<i64: 1, 32>}, {pipeline_mode = #tpu.pipeline_mode<synchronous>, transform_indices = @transform_12, window_bounds = array<i64: 1, 32>}, {pipeline_mode = #tpu.pipeline_mode<synchronous>, transform_indices = @transform_13, window_bounds = array<i64: 32, 32>}, {pipeline_mode = #tpu.pipeline_mode<synchronous>, transform_indices = @transform_14, window_bounds = array<i64: 1, 32>}, {pipeline_mode = #tpu.pipeline_mode<synchronous>, transform_indices = @transform_15, window_bounds = array<i64: 32, 32>}, {pipeline_mode = #tpu.pipeline_mode<synchronous>, transform_indices = @transform_16, window_bounds = array<i64: 1, 32>}, {pipeline_mode = #tpu.pipeline_mode<synchronous>, transform_indices = @transform_17, window_bounds = array<i64: 32, 32>}, {pipeline_mode = #tpu.pipeline_mode<synchronous>, transform_indices = @transform_18, window_bounds = array<i64: 1, 32>}, {pipeline_mode = #tpu.pipeline_mode<synchronous>, transform_indices = @transform_19, window_bounds = array<i64: 32, 32>}, {pipeline_mode = #tpu.pipeline_mode<synchronous>, transform_indices = @transform_20, window_bounds = array<i64: 1, 32>}, {pipeline_mode = #tpu.pipeline_mode<synchronous>, transform_indices = @transform_21, window_bounds = array<i64: 1, 32>}, {pipeline_mode = #tpu.pipeline_mode<synchronous>, transform_indices = @transform_22, window_bounds = array<i64: 1, 32>}, {pipeline_mode = #tpu.pipeline_mode<synchronous>, transform_indices = @transform_23, window_bounds = array<i64: 32, 32>}, {pipeline_mode = #tpu.pipeline_mode<synchronous>, transform_indices = @transform_24, window_bounds = array<i64: 1, 32>}, {pipeline_mode = #tpu.pipeline_mode<synchronous>, transform_indices = @transform_25, window_bounds = array<i64: 32, 32>}, {pipeline_mode = #tpu.pipeline_mode<synchronous>, transform_indices = @transform_26, window_bounds = array<i64: 1, 32>}, {pipeline_mode = #tpu.pipeline_mode<synchronous>, transform_indices = @transform_27, window_bounds = array<i64: 1, 32>}, {pipeline_mode = #tpu.pipeline_mode<synchronous>, transform_indices = @transform_28, window_bounds = array<i64: 1, 32>}, {pipeline_mode = #tpu.pipeline_mode<synchronous>, transform_indices = @transform_29, window_bounds = array<i64: 32, 32>}, {pipeline_mode = #tpu.pipeline_mode<synchronous>, transform_indices = @transform_30, window_bounds = array<i64: 1, 32>}, {pipeline_mode = #tpu.pipeline_mode<synchronous>, transform_indices = @transform_31, window_bounds = array<i64: 32, 32>}, {pipeline_mode = #tpu.pipeline_mode<synchronous>, transform_indices = @transform_32, window_bounds = array<i64: 1, 32>}, {pipeline_mode = #tpu.pipeline_mode<synchronous>, transform_indices = @transform_33, window_bounds = array<i64: 32, 32>}, {pipeline_mode = #tpu.pipeline_mode<synchronous>, transform_indices = @transform_34, window_bounds = array<i64: 1, 32>}, {pipeline_mode = #tpu.pipeline_mode<synchronous>, transform_indices = @transform_35, window_bounds = array<i64: 32, 32>}, {pipeline_mode = #tpu.pipeline_mode<synchronous>, transform_indices = @transform_36, window_bounds = array<i64: 1, 32>}, {pipeline_mode = #tpu.pipeline_mode<synchronous>, transform_indices = @transform_37, window_bounds = array<i64: 1, 32>}, {pipeline_mode = #tpu.pipeline_mode<synchronous>, transform_indices = @transform_38, window_bounds = array<i64: 1, 32>}, {pipeline_mode = #tpu.pipeline_mode<synchronous>, transform_indices = @transform_39, window_bounds = array<i64: 32, 32>}, {pipeline_mode = #tpu.pipeline_mode<synchronous>, transform_indices = @transform_40, window_bounds = array<i64: 1, 32>}, {pipeline_mode = #tpu.pipeline_mode<synchronous>, transform_indices = @transform_41, window_bounds = array<i64: 32, 32>}, {pipeline_mode = #tpu.pipeline_mode<synchronous>, transform_indices = @transform_42, window_bounds = array<i64: 1, 32>}, {pipeline_mode = #tpu.pipeline_mode<synchronous>, transform_indices = @transform_43, window_bounds = array<i64: 1, 32>}, {pipeline_mode = #tpu.pipeline_mode<synchronous>, transform_indices = @transform_44, window_bounds = array<i64: 1, 32>}, {pipeline_mode = #tpu.pipeline_mode<synchronous>, transform_indices = @transform_45, window_bounds = array<i64: 32, 64>}, {pipeline_mode = #tpu.pipeline_mode<synchronous>, transform_indices = @transform_46, window_bounds = array<i64: 1, 64>}, {pipeline_mode = #tpu.pipeline_mode<synchronous>, transform_indices = @transform_47, window_bounds = array<i64: 64, 4>}, {pipeline_mode = #tpu.pipeline_mode<synchronous>, transform_indices = @transform_48, window_bounds = array<i64: 1, 4>}, {transform_indices = @transform_49, window_bounds = array<i64: 1, 1, 4>}]} {
    %c0 = arith.constant 0 : index
    %c0_0 = arith.constant 0 : index
    %c0_1 = arith.constant 0 : index
    %0 = vector.load %arg1[%c0, %c0_0, %c0_1] : memref<1x64x8xf32, #tpu.memory_space<vmem>>, vector<1x64x8xf32>
    %1 = vector.shape_cast %0 : vector<1x64x8xf32> to vector<64x8xf32>
    %cst = arith.constant 0.000000e+00 : f32
    %2 = vector.broadcast %cst : f32 to vector<2x8xf32>
    %3 = tpu.concatenate %2, %1, %2 in 0 : vector<2x8xf32>, vector<64x8xf32>, vector<2x8xf32> -> vector<68x8xf32>
    %4 = vector.extract_strided_slice %3 {offsets = [0, 0], sizes = [64, 8], strides = [1, 1]} : vector<68x8xf32> to vector<64x8xf32>
    %5 = vector.extract_strided_slice %3 {offsets = [1, 0], sizes = [64, 8], strides = [1, 1]} : vector<68x8xf32> to vector<64x8xf32>
    %6 = vector.extract_strided_slice %3 {offsets = [2, 0], sizes = [64, 8], strides = [1, 1]} : vector<68x8xf32> to vector<64x8xf32>
    %7 = vector.extract_strided_slice %3 {offsets = [3, 0], sizes = [64, 8], strides = [1, 1]} : vector<68x8xf32> to vector<64x8xf32>
    %8 = vector.extract_strided_slice %3 {offsets = [4, 0], sizes = [64, 8], strides = [1, 1]} : vector<68x8xf32> to vector<64x8xf32>
    %9 = tpu.concatenate %4, %5, %6, %7, %8 in 1 : vector<64x8xf32>, vector<64x8xf32>, vector<64x8xf32>, vector<64x8xf32>, vector<64x8xf32> -> vector<64x40xf32>
    %10 = arith.truncf %9 : vector<64x40xf32> to vector<64x40xbf16>
    %c0_2 = arith.constant 0 : index
    %c0_3 = arith.constant 0 : index
    %11 = vector.load %arg2[%c0_2, %c0_3] : memref<40x16xbf16, #tpu.memory_space<vmem>>, vector<40x16xbf16>
    %cst_4 = arith.constant dense<0.000000e+00> : vector<64x16xf32>
    %12 = tpu.matmul %10, %11, %cst_4 {dimension_numbers = #tpu.dot_dimension_numbers<[1], [0], [0], [1], [0, 0, 1, 1], [], []>} : vector<64x40xbf16>, vector<40x16xbf16>, vector<64x16xf32> -> vector<64x16xf32>
    %c0_5 = arith.constant 0 : index
    %c0_6 = arith.constant 0 : index
    %13 = vector.load %arg3[%c0_5, %c0_6] : memref<1x16xf32, #tpu.memory_space<vmem>>, vector<1x16xf32>
    %14 = vector.broadcast %13 : vector<1x16xf32> to vector<64x16xf32>
    %15 = arith.mulf %12, %14 : vector<64x16xf32>
    %c0_7 = arith.constant 0 : index
    %c0_8 = arith.constant 0 : index
    %16 = vector.load %arg4[%c0_7, %c0_8] : memref<1x16xf32, #tpu.memory_space<vmem>>, vector<1x16xf32>
    %17 = vector.broadcast %16 : vector<1x16xf32> to vector<64x16xf32>
    %18 = arith.addf %15, %17 : vector<64x16xf32>
    %cst_9 = arith.constant 0.000000e+00 : f32
    %19 = vector.broadcast %cst_9 : f32 to vector<64x16xf32>
    %20 = arith.cmpf ogt, %18, %19 : vector<64x16xf32>
    %cst_10 = arith.constant 0.000000e+00 : f32
    %21 = vector.broadcast %cst_10 : f32 to vector<64x16xf32>
    %22 = arith.minimumf %18, %21 : vector<64x16xf32>
    %23 = math.exp %22 : vector<64x16xf32>
    %cst_11 = arith.constant 1.000000e+00 : f32
    %24 = vector.broadcast %cst_11 : f32 to vector<64x16xf32>
    %25 = arith.subf %23, %24 : vector<64x16xf32>
    %cst_12 = arith.constant 1.000000e-01 : f32
    %26 = vector.broadcast %cst_12 : f32 to vector<64x16xf32>
    %27 = arith.mulf %26, %25 : vector<64x16xf32>
    %28 = arith.select %20, %18, %27 : vector<64x16xi1>, vector<64x16xf32>
    %29 = tpu.iota {dimensions = array<i32: 0>} : vector<31x64xi32>
    %30 = tpu.iota {dimensions = array<i32: 1>} : vector<31x64xi32>
    %c2_i32 = arith.constant 2 : i32
    %31 = vector.broadcast %c2_i32 : i32 to vector<31x64xi32>
    %32 = arith.muli %31, %29 : vector<31x64xi32>
    %33 = arith.subi %30, %32 : vector<31x64xi32>
    %c0_i32 = arith.constant 0 : i32
    %34 = vector.broadcast %c0_i32 : i32 to vector<31x64xi32>
    %35 = arith.cmpi sge, %33, %34 : vector<31x64xi32>
    %c4_i32 = arith.constant 4 : i32
    %36 = vector.broadcast %c4_i32 : i32 to vector<31x64xi32>
    %37 = arith.cmpi slt, %33, %36 : vector<31x64xi32>
    %38 = arith.andi %35, %37 : vector<31x64xi1>
    %cst_13 = arith.constant 2.500000e-01 : f32
    %cst_14 = arith.constant 0.000000e+00 : f32
    %39 = vector.broadcast %cst_13 : f32 to vector<31x64xf32>
    %40 = vector.broadcast %cst_14 : f32 to vector<31x64xf32>
    %41 = arith.select %38, %39, %40 : vector<31x64xi1>, vector<31x64xf32>
    %42 = arith.truncf %41 : vector<31x64xf32> to vector<31x64xbf16>
    %43 = arith.truncf %28 : vector<64x16xf32> to vector<64x16xbf16>
    %cst_15 = arith.constant dense<0.000000e+00> : vector<31x16xf32>
    %44 = tpu.matmul %42, %43, %cst_15 {dimension_numbers = #tpu.dot_dimension_numbers<[1], [0], [0], [1], [0, 0, 1, 1], [], []>} : vector<31x64xbf16>, vector<64x16xbf16>, vector<31x16xf32> -> vector<31x16xf32>
    %cst_16 = arith.constant 0.000000e+00 : f32
    %45 = vector.broadcast %cst_16 : f32 to vector<2x16xf32>
    %46 = tpu.concatenate %45, %44, %45 in 0 : vector<2x16xf32>, vector<31x16xf32>, vector<2x16xf32> -> vector<35x16xf32>
    %47 = vector.extract_strided_slice %46 {offsets = [0, 0], sizes = [31, 16], strides = [1, 1]} : vector<35x16xf32> to vector<31x16xf32>
    %48 = vector.extract_strided_slice %46 {offsets = [1, 0], sizes = [31, 16], strides = [1, 1]} : vector<35x16xf32> to vector<31x16xf32>
    %49 = vector.extract_strided_slice %46 {offsets = [2, 0], sizes = [31, 16], strides = [1, 1]} : vector<35x16xf32> to vector<31x16xf32>
    %50 = vector.extract_strided_slice %46 {offsets = [3, 0], sizes = [31, 16], strides = [1, 1]} : vector<35x16xf32> to vector<31x16xf32>
    %51 = vector.extract_strided_slice %46 {offsets = [4, 0], sizes = [31, 16], strides = [1, 1]} : vector<35x16xf32> to vector<31x16xf32>
    %52 = tpu.concatenate %47, %48, %49, %50, %51 in 1 : vector<31x16xf32>, vector<31x16xf32>, vector<31x16xf32>, vector<31x16xf32>, vector<31x16xf32> -> vector<31x80xf32>
    %53 = arith.truncf %52 : vector<31x80xf32> to vector<31x80xbf16>
    %c0_17 = arith.constant 0 : index
    %c0_18 = arith.constant 0 : index
    %54 = vector.load %arg5[%c0_17, %c0_18] : memref<80x16xbf16, #tpu.memory_space<vmem>>, vector<80x16xbf16>
    %cst_19 = arith.constant dense<0.000000e+00> : vector<31x16xf32>
    %55 = tpu.matmul %53, %54, %cst_19 {dimension_numbers = #tpu.dot_dimension_numbers<[1], [0], [0], [1], [0, 0, 1, 1], [], []>} : vector<31x80xbf16>, vector<80x16xbf16>, vector<31x16xf32> -> vector<31x16xf32>
    %c0_20 = arith.constant 0 : index
    %c0_21 = arith.constant 0 : index
    %56 = vector.load %arg6[%c0_20, %c0_21] : memref<1x16xf32, #tpu.memory_space<vmem>>, vector<1x16xf32>
    %57 = vector.broadcast %56 : vector<1x16xf32> to vector<31x16xf32>
    %58 = arith.mulf %55, %57 : vector<31x16xf32>
    %c0_22 = arith.constant 0 : index
    %c0_23 = arith.constant 0 : index
    %59 = vector.load %arg7[%c0_22, %c0_23] : memref<1x16xf32, #tpu.memory_space<vmem>>, vector<1x16xf32>
    %60 = vector.broadcast %59 : vector<1x16xf32> to vector<31x16xf32>
    %61 = arith.addf %58, %60 : vector<31x16xf32>
    %cst_24 = arith.constant 0.000000e+00 : f32
    %62 = vector.broadcast %cst_24 : f32 to vector<31x16xf32>
    %63 = arith.cmpf ogt, %61, %62 : vector<31x16xf32>
    %cst_25 = arith.constant 0.000000e+00 : f32
    %64 = vector.broadcast %cst_25 : f32 to vector<31x16xf32>
    %65 = arith.minimumf %61, %64 : vector<31x16xf32>
    %66 = math.exp %65 : vector<31x16xf32>
    %cst_26 = arith.constant 1.000000e+00 : f32
    %67 = vector.broadcast %cst_26 : f32 to vector<31x16xf32>
    %68 = arith.subf %66, %67 : vector<31x16xf32>
    %cst_27 = arith.constant 1.000000e-01 : f32
    %69 = vector.broadcast %cst_27 : f32 to vector<31x16xf32>
    %70 = arith.mulf %69, %68 : vector<31x16xf32>
    %71 = arith.select %63, %61, %70 : vector<31x16xi1>, vector<31x16xf32>
    %72 = arith.addf %44, %71 : vector<31x16xf32>
    %cst_28 = arith.constant 0.000000e+00 : f32
    %73 = vector.broadcast %cst_28 : f32 to vector<2x16xf32>
    %74 = tpu.concatenate %73, %72, %73 in 0 : vector<2x16xf32>, vector<31x16xf32>, vector<2x16xf32> -> vector<35x16xf32>
    %75 = vector.extract_strided_slice %74 {offsets = [0, 0], sizes = [31, 16], strides = [1, 1]} : vector<35x16xf32> to vector<31x16xf32>
    %76 = vector.extract_strided_slice %74 {offsets = [1, 0], sizes = [31, 16], strides = [1, 1]} : vector<35x16xf32> to vector<31x16xf32>
    %77 = vector.extract_strided_slice %74 {offsets = [2, 0], sizes = [31, 16], strides = [1, 1]} : vector<35x16xf32> to vector<31x16xf32>
    %78 = vector.extract_strided_slice %74 {offsets = [3, 0], sizes = [31, 16], strides = [1, 1]} : vector<35x16xf32> to vector<31x16xf32>
    %79 = vector.extract_strided_slice %74 {offsets = [4, 0], sizes = [31, 16], strides = [1, 1]} : vector<35x16xf32> to vector<31x16xf32>
    %80 = tpu.concatenate %75, %76, %77, %78, %79 in 1 : vector<31x16xf32>, vector<31x16xf32>, vector<31x16xf32>, vector<31x16xf32>, vector<31x16xf32> -> vector<31x80xf32>
    %81 = arith.truncf %80 : vector<31x80xf32> to vector<31x80xbf16>
    %c0_29 = arith.constant 0 : index
    %c0_30 = arith.constant 0 : index
    %82 = vector.load %arg8[%c0_29, %c0_30] : memref<80x32xbf16, #tpu.memory_space<vmem>>, vector<80x32xbf16>
    %cst_31 = arith.constant dense<0.000000e+00> : vector<31x32xf32>
    %83 = tpu.matmul %81, %82, %cst_31 {dimension_numbers = #tpu.dot_dimension_numbers<[1], [0], [0], [1], [0, 0, 1, 1], [], []>} : vector<31x80xbf16>, vector<80x32xbf16>, vector<31x32xf32> -> vector<31x32xf32>
    %c0_32 = arith.constant 0 : index
    %c0_33 = arith.constant 0 : index
    %84 = vector.load %arg9[%c0_32, %c0_33] : memref<1x32xf32, #tpu.memory_space<vmem>>, vector<1x32xf32>
    %85 = vector.broadcast %84 : vector<1x32xf32> to vector<31x32xf32>
    %86 = arith.mulf %83, %85 : vector<31x32xf32>
    %c0_34 = arith.constant 0 : index
    %c0_35 = arith.constant 0 : index
    %87 = vector.load %arg10[%c0_34, %c0_35] : memref<1x32xf32, #tpu.memory_space<vmem>>, vector<1x32xf32>
    %88 = vector.broadcast %87 : vector<1x32xf32> to vector<31x32xf32>
    %89 = arith.addf %86, %88 : vector<31x32xf32>
    %cst_36 = arith.constant 0.000000e+00 : f32
    %90 = vector.broadcast %cst_36 : f32 to vector<31x32xf32>
    %91 = arith.cmpf ogt, %89, %90 : vector<31x32xf32>
    %cst_37 = arith.constant 0.000000e+00 : f32
    %92 = vector.broadcast %cst_37 : f32 to vector<31x32xf32>
    %93 = arith.minimumf %89, %92 : vector<31x32xf32>
    %94 = math.exp %93 : vector<31x32xf32>
    %cst_38 = arith.constant 1.000000e+00 : f32
    %95 = vector.broadcast %cst_38 : f32 to vector<31x32xf32>
    %96 = arith.subf %94, %95 : vector<31x32xf32>
    %cst_39 = arith.constant 1.000000e-01 : f32
    %97 = vector.broadcast %cst_39 : f32 to vector<31x32xf32>
    %98 = arith.mulf %97, %96 : vector<31x32xf32>
    %99 = arith.select %91, %89, %98 : vector<31x32xi1>, vector<31x32xf32>
    %100 = tpu.iota {dimensions = array<i32: 0>} : vector<14x31xi32>
    %101 = tpu.iota {dimensions = array<i32: 1>} : vector<14x31xi32>
    %c2_i32_40 = arith.constant 2 : i32
    %102 = vector.broadcast %c2_i32_40 : i32 to vector<14x31xi32>
    %103 = arith.muli %102, %100 : vector<14x31xi32>
    %104 = arith.subi %101, %103 : vector<14x31xi32>
    %c0_i32_41 = arith.constant 0 : i32
    %105 = vector.broadcast %c0_i32_41 : i32 to vector<14x31xi32>
    %106 = arith.cmpi sge, %104, %105 : vector<14x31xi32>
    %c4_i32_42 = arith.constant 4 : i32
    %107 = vector.broadcast %c4_i32_42 : i32 to vector<14x31xi32>
    %108 = arith.cmpi slt, %104, %107 : vector<14x31xi32>
    %109 = arith.andi %106, %108 : vector<14x31xi1>
    %cst_43 = arith.constant 2.500000e-01 : f32
    %cst_44 = arith.constant 0.000000e+00 : f32
    %110 = vector.broadcast %cst_43 : f32 to vector<14x31xf32>
    %111 = vector.broadcast %cst_44 : f32 to vector<14x31xf32>
    %112 = arith.select %109, %110, %111 : vector<14x31xi1>, vector<14x31xf32>
    %113 = arith.truncf %112 : vector<14x31xf32> to vector<14x31xbf16>
    %114 = arith.truncf %99 : vector<31x32xf32> to vector<31x32xbf16>
    %cst_45 = arith.constant dense<0.000000e+00> : vector<14x32xf32>
    %115 = tpu.matmul %113, %114, %cst_45 {dimension_numbers = #tpu.dot_dimension_numbers<[1], [0], [0], [1], [0, 0, 1, 1], [], []>} : vector<14x31xbf16>, vector<31x32xbf16>, vector<14x32xf32> -> vector<14x32xf32>
    %cst_46 = arith.constant 0.000000e+00 : f32
    %116 = vector.broadcast %cst_46 : f32 to vector<2x32xf32>
    %117 = tpu.concatenate %116, %115, %116 in 0 : vector<2x32xf32>, vector<14x32xf32>, vector<2x32xf32> -> vector<18x32xf32>
    %118 = vector.extract_strided_slice %117 {offsets = [0, 0], sizes = [14, 32], strides = [1, 1]} : vector<18x32xf32> to vector<14x32xf32>
    %119 = vector.extract_strided_slice %117 {offsets = [1, 0], sizes = [14, 32], strides = [1, 1]} : vector<18x32xf32> to vector<14x32xf32>
    %120 = vector.extract_strided_slice %117 {offsets = [2, 0], sizes = [14, 32], strides = [1, 1]} : vector<18x32xf32> to vector<14x32xf32>
    %121 = vector.extract_strided_slice %117 {offsets = [3, 0], sizes = [14, 32], strides = [1, 1]} : vector<18x32xf32> to vector<14x32xf32>
    %122 = vector.extract_strided_slice %117 {offsets = [4, 0], sizes = [14, 32], strides = [1, 1]} : vector<18x32xf32> to vector<14x32xf32>
    %123 = tpu.concatenate %118, %119, %120, %121, %122 in 1 : vector<14x32xf32>, vector<14x32xf32>, vector<14x32xf32>, vector<14x32xf32>, vector<14x32xf32> -> vector<14x160xf32>
    %124 = arith.truncf %123 : vector<14x160xf32> to vector<14x160xbf16>
    %c0_47 = arith.constant 0 : index
    %c0_48 = arith.constant 0 : index
    %125 = vector.load %arg11[%c0_47, %c0_48] : memref<160x32xbf16, #tpu.memory_space<vmem>>, vector<160x32xbf16>
    %cst_49 = arith.constant dense<0.000000e+00> : vector<14x32xf32>
    %126 = tpu.matmul %124, %125, %cst_49 {dimension_numbers = #tpu.dot_dimension_numbers<[1], [0], [0], [1], [0, 0, 1, 1], [], []>} : vector<14x160xbf16>, vector<160x32xbf16>, vector<14x32xf32> -> vector<14x32xf32>
    %c0_50 = arith.constant 0 : index
    %c0_51 = arith.constant 0 : index
    %127 = vector.load %arg12[%c0_50, %c0_51] : memref<1x32xf32, #tpu.memory_space<vmem>>, vector<1x32xf32>
    %128 = vector.broadcast %127 : vector<1x32xf32> to vector<14x32xf32>
    %129 = arith.mulf %126, %128 : vector<14x32xf32>
    %c0_52 = arith.constant 0 : index
    %c0_53 = arith.constant 0 : index
    %130 = vector.load %arg13[%c0_52, %c0_53] : memref<1x32xf32, #tpu.memory_space<vmem>>, vector<1x32xf32>
    %131 = vector.broadcast %130 : vector<1x32xf32> to vector<14x32xf32>
    %132 = arith.addf %129, %131 : vector<14x32xf32>
    %cst_54 = arith.constant 0.000000e+00 : f32
    %133 = vector.broadcast %cst_54 : f32 to vector<14x32xf32>
    %134 = arith.cmpf ogt, %132, %133 : vector<14x32xf32>
    %cst_55 = arith.constant 0.000000e+00 : f32
    %135 = vector.broadcast %cst_55 : f32 to vector<14x32xf32>
    %136 = arith.minimumf %132, %135 : vector<14x32xf32>
    %137 = math.exp %136 : vector<14x32xf32>
    %cst_56 = arith.constant 1.000000e+00 : f32
    %138 = vector.broadcast %cst_56 : f32 to vector<14x32xf32>
    %139 = arith.subf %137, %138 : vector<14x32xf32>
    %cst_57 = arith.constant 1.000000e-01 : f32
    %140 = vector.broadcast %cst_57 : f32 to vector<14x32xf32>
    %141 = arith.mulf %140, %139 : vector<14x32xf32>
    %142 = arith.select %134, %132, %141 : vector<14x32xi1>, vector<14x32xf32>
    %143 = arith.addf %115, %142 : vector<14x32xf32>
    %144 = arith.truncf %143 : vector<14x32xf32> to vector<14x32xbf16>
    %c0_58 = arith.constant 0 : index
    %c0_59 = arith.constant 0 : index
    %145 = vector.load %arg14[%c0_58, %c0_59] : memref<32x32xbf16, #tpu.memory_space<vmem>>, vector<32x32xbf16>
    %cst_60 = arith.constant dense<0.000000e+00> : vector<14x32xf32>
    %146 = tpu.matmul %144, %145, %cst_60 {dimension_numbers = #tpu.dot_dimension_numbers<[1], [0], [0], [1], [0, 0, 1, 1], [], []>} : vector<14x32xbf16>, vector<32x32xbf16>, vector<14x32xf32> -> vector<14x32xf32>
    %c0_61 = arith.constant 0 : index
    %c0_62 = arith.constant 0 : index
    %147 = vector.load %arg15[%c0_61, %c0_62] : memref<1x32xf32, #tpu.memory_space<vmem>>, vector<1x32xf32>
    %148 = vector.broadcast %147 : vector<1x32xf32> to vector<14x32xf32>
    %149 = arith.addf %146, %148 : vector<14x32xf32>
    %c0_63 = arith.constant 0 : index
    %c0_64 = arith.constant 0 : index
    %150 = vector.load %arg16[%c0_63, %c0_64] : memref<32x32xbf16, #tpu.memory_space<vmem>>, vector<32x32xbf16>
    %cst_65 = arith.constant dense<0.000000e+00> : vector<14x32xf32>
    %151 = tpu.matmul %144, %150, %cst_65 {dimension_numbers = #tpu.dot_dimension_numbers<[1], [0], [0], [1], [0, 0, 1, 1], [], []>} : vector<14x32xbf16>, vector<32x32xbf16>, vector<14x32xf32> -> vector<14x32xf32>
    %c0_66 = arith.constant 0 : index
    %c0_67 = arith.constant 0 : index
    %152 = vector.load %arg17[%c0_66, %c0_67] : memref<1x32xf32, #tpu.memory_space<vmem>>, vector<1x32xf32>
    %153 = vector.broadcast %152 : vector<1x32xf32> to vector<14x32xf32>
    %154 = arith.addf %151, %153 : vector<14x32xf32>
    %c0_68 = arith.constant 0 : index
    %c0_69 = arith.constant 0 : index
    %155 = vector.load %arg18[%c0_68, %c0_69] : memref<32x32xbf16, #tpu.memory_space<vmem>>, vector<32x32xbf16>
    %cst_70 = arith.constant dense<0.000000e+00> : vector<14x32xf32>
    %156 = tpu.matmul %144, %155, %cst_70 {dimension_numbers = #tpu.dot_dimension_numbers<[1], [0], [0], [1], [0, 0, 1, 1], [], []>} : vector<14x32xbf16>, vector<32x32xbf16>, vector<14x32xf32> -> vector<14x32xf32>
    %c0_71 = arith.constant 0 : index
    %c0_72 = arith.constant 0 : index
    %157 = vector.load %arg19[%c0_71, %c0_72] : memref<1x32xf32, #tpu.memory_space<vmem>>, vector<1x32xf32>
    %158 = vector.broadcast %157 : vector<1x32xf32> to vector<14x32xf32>
    %159 = arith.addf %156, %158 : vector<14x32xf32>
    %160 = arith.truncf %149 : vector<14x32xf32> to vector<14x32xbf16>
    %161 = arith.truncf %154 : vector<14x32xf32> to vector<14x32xbf16>
    %cst_73 = arith.constant dense<0.000000e+00> : vector<14x14xf32>
    %162 = tpu.matmul %160, %161, %cst_73 {dimension_numbers = #tpu.dot_dimension_numbers<[1], [1], [0], [0], [0, 0, 1, 0], [], []>} : vector<14x32xbf16>, vector<14x32xbf16>, vector<14x14xf32> -> vector<14x14xf32>
    %cst_74 = arith.constant 0.176776692 : f32
    %163 = vector.broadcast %cst_74 : f32 to vector<14x14xf32>
    %164 = arith.mulf %162, %163 : vector<14x14xf32>
    %cst_75 = arith.constant dense<0xFF800000> : vector<14xf32>
    %165 = vector.multi_reduction <maximumf>, %164, %cst_75 [1] : vector<14x14xf32> to vector<14xf32>
    %166 = vector.shape_cast %165 : vector<14xf32> to vector<14x1xf32>
    %167 = vector.broadcast %166 : vector<14x1xf32> to vector<14x14xf32>
    %168 = arith.subf %164, %167 : vector<14x14xf32>
    %169 = math.exp %168 : vector<14x14xf32>
    %cst_76 = arith.constant dense<0.000000e+00> : vector<14xf32>
    %170 = vector.multi_reduction <add>, %169, %cst_76 [1] : vector<14x14xf32> to vector<14xf32>
    %171 = vector.shape_cast %170 : vector<14xf32> to vector<14x1xf32>
    %172 = vector.broadcast %171 : vector<14x1xf32> to vector<14x14xf32>
    %173 = arith.divf %169, %172 : vector<14x14xf32>
    %174 = arith.truncf %173 : vector<14x14xf32> to vector<14x14xbf16>
    %175 = arith.truncf %159 : vector<14x32xf32> to vector<14x32xbf16>
    %cst_77 = arith.constant dense<0.000000e+00> : vector<14x32xf32>
    %176 = tpu.matmul %174, %175, %cst_77 {dimension_numbers = #tpu.dot_dimension_numbers<[1], [0], [0], [1], [0, 0, 1, 1], [], []>} : vector<14x14xbf16>, vector<14x32xbf16>, vector<14x32xf32> -> vector<14x32xf32>
    %177 = arith.truncf %176 : vector<14x32xf32> to vector<14x32xbf16>
    %c0_78 = arith.constant 0 : index
    %c0_79 = arith.constant 0 : index
    %178 = vector.load %arg20[%c0_78, %c0_79] : memref<32x32xbf16, #tpu.memory_space<vmem>>, vector<32x32xbf16>
    %cst_80 = arith.constant dense<0.000000e+00> : vector<14x32xf32>
    %179 = tpu.matmul %177, %178, %cst_80 {dimension_numbers = #tpu.dot_dimension_numbers<[1], [0], [0], [1], [0, 0, 1, 1], [], []>} : vector<14x32xbf16>, vector<32x32xbf16>, vector<14x32xf32> -> vector<14x32xf32>
    %c0_81 = arith.constant 0 : index
    %c0_82 = arith.constant 0 : index
    %180 = vector.load %arg21[%c0_81, %c0_82] : memref<1x32xf32, #tpu.memory_space<vmem>>, vector<1x32xf32>
    %181 = vector.broadcast %180 : vector<1x32xf32> to vector<14x32xf32>
    %182 = arith.addf %179, %181 : vector<14x32xf32>
    %183 = arith.addf %143, %182 : vector<14x32xf32>
    %c0_83 = arith.constant 0 : index
    %c0_84 = arith.constant 0 : index
    %184 = vector.load %arg22[%c0_83, %c0_84] : memref<1x32xf32, #tpu.memory_space<vmem>>, vector<1x32xf32>
    %c0_85 = arith.constant 0 : index
    %c0_86 = arith.constant 0 : index
    %185 = vector.load %arg23[%c0_85, %c0_86] : memref<1x32xf32, #tpu.memory_space<vmem>>, vector<1x32xf32>
    %cst_87 = arith.constant dense<0.000000e+00> : vector<14xf32>
    %186 = vector.multi_reduction <add>, %183, %cst_87 [1] : vector<14x32xf32> to vector<14xf32>
    %187 = vector.shape_cast %186 : vector<14xf32> to vector<14x1xf32>
    %cst_88 = arith.constant 3.200000e+01 : f32
    %188 = vector.broadcast %cst_88 : f32 to vector<14x1xf32>
    %189 = arith.divf %187, %188 : vector<14x1xf32>
    %190 = vector.broadcast %189 : vector<14x1xf32> to vector<14x32xf32>
    %191 = arith.subf %183, %190 : vector<14x32xf32>
    %192 = arith.mulf %191, %191 : vector<14x32xf32>
    %cst_89 = arith.constant dense<0.000000e+00> : vector<14xf32>
    %193 = vector.multi_reduction <add>, %192, %cst_89 [1] : vector<14x32xf32> to vector<14xf32>
    %194 = vector.shape_cast %193 : vector<14xf32> to vector<14x1xf32>
    %cst_90 = arith.constant 3.200000e+01 : f32
    %195 = vector.broadcast %cst_90 : f32 to vector<14x1xf32>
    %196 = arith.divf %194, %195 : vector<14x1xf32>
    %cst_91 = arith.constant 9.99999974E-6 : f32
    %197 = vector.broadcast %cst_91 : f32 to vector<14x1xf32>
    %198 = arith.addf %196, %197 : vector<14x1xf32>
    %199 = math.rsqrt %198 : vector<14x1xf32>
    %200 = vector.broadcast %199 : vector<14x1xf32> to vector<14x32xf32>
    %201 = arith.mulf %191, %200 : vector<14x32xf32>
    %202 = vector.broadcast %184 : vector<1x32xf32> to vector<14x32xf32>
    %203 = arith.mulf %201, %202 : vector<14x32xf32>
    %204 = vector.broadcast %185 : vector<1x32xf32> to vector<14x32xf32>
    %205 = arith.addf %203, %204 : vector<14x32xf32>
    %206 = arith.truncf %205 : vector<14x32xf32> to vector<14x32xbf16>
    %c0_92 = arith.constant 0 : index
    %c0_93 = arith.constant 0 : index
    %207 = vector.load %arg24[%c0_92, %c0_93] : memref<32x32xbf16, #tpu.memory_space<vmem>>, vector<32x32xbf16>
    %cst_94 = arith.constant dense<0.000000e+00> : vector<14x32xf32>
    %208 = tpu.matmul %206, %207, %cst_94 {dimension_numbers = #tpu.dot_dimension_numbers<[1], [0], [0], [1], [0, 0, 1, 1], [], []>} : vector<14x32xbf16>, vector<32x32xbf16>, vector<14x32xf32> -> vector<14x32xf32>
    %c0_95 = arith.constant 0 : index
    %c0_96 = arith.constant 0 : index
    %209 = vector.load %arg25[%c0_95, %c0_96] : memref<1x32xf32, #tpu.memory_space<vmem>>, vector<1x32xf32>
    %210 = vector.broadcast %209 : vector<1x32xf32> to vector<14x32xf32>
    %211 = arith.addf %208, %210 : vector<14x32xf32>
    %cst_97 = arith.constant 3.000000e+00 : f32
    %212 = vector.broadcast %cst_97 : f32 to vector<14x32xf32>
    %213 = arith.addf %211, %212 : vector<14x32xf32>
    %cst_98 = arith.constant 0.000000e+00 : f32
    %cst_99 = arith.constant 6.000000e+00 : f32
    %214 = vector.broadcast %cst_98 : f32 to vector<14x32xf32>
    %215 = arith.maximumf %214, %213 : vector<14x32xf32>
    %216 = vector.broadcast %cst_99 : f32 to vector<14x32xf32>
    %217 = arith.minimumf %216, %215 : vector<14x32xf32>
    %218 = arith.mulf %211, %217 : vector<14x32xf32>
    %cst_100 = arith.constant 0.166666672 : f32
    %219 = vector.broadcast %cst_100 : f32 to vector<14x32xf32>
    %220 = arith.mulf %218, %219 : vector<14x32xf32>
    %221 = arith.truncf %220 : vector<14x32xf32> to vector<14x32xbf16>
    %c0_101 = arith.constant 0 : index
    %c0_102 = arith.constant 0 : index
    %222 = vector.load %arg26[%c0_101, %c0_102] : memref<32x32xbf16, #tpu.memory_space<vmem>>, vector<32x32xbf16>
    %cst_103 = arith.constant dense<0.000000e+00> : vector<14x32xf32>
    %223 = tpu.matmul %221, %222, %cst_103 {dimension_numbers = #tpu.dot_dimension_numbers<[1], [0], [0], [1], [0, 0, 1, 1], [], []>} : vector<14x32xbf16>, vector<32x32xbf16>, vector<14x32xf32> -> vector<14x32xf32>
    %c0_104 = arith.constant 0 : index
    %c0_105 = arith.constant 0 : index
    %224 = vector.load %arg27[%c0_104, %c0_105] : memref<1x32xf32, #tpu.memory_space<vmem>>, vector<1x32xf32>
    %225 = vector.broadcast %224 : vector<1x32xf32> to vector<14x32xf32>
    %226 = arith.addf %223, %225 : vector<14x32xf32>
    %227 = arith.addf %205, %226 : vector<14x32xf32>
    %c0_106 = arith.constant 0 : index
    %c0_107 = arith.constant 0 : index
    %228 = vector.load %arg28[%c0_106, %c0_107] : memref<1x32xf32, #tpu.memory_space<vmem>>, vector<1x32xf32>
    %c0_108 = arith.constant 0 : index
    %c0_109 = arith.constant 0 : index
    %229 = vector.load %arg29[%c0_108, %c0_109] : memref<1x32xf32, #tpu.memory_space<vmem>>, vector<1x32xf32>
    %cst_110 = arith.constant dense<0.000000e+00> : vector<14xf32>
    %230 = vector.multi_reduction <add>, %227, %cst_110 [1] : vector<14x32xf32> to vector<14xf32>
    %231 = vector.shape_cast %230 : vector<14xf32> to vector<14x1xf32>
    %cst_111 = arith.constant 3.200000e+01 : f32
    %232 = vector.broadcast %cst_111 : f32 to vector<14x1xf32>
    %233 = arith.divf %231, %232 : vector<14x1xf32>
    %234 = vector.broadcast %233 : vector<14x1xf32> to vector<14x32xf32>
    %235 = arith.subf %227, %234 : vector<14x32xf32>
    %236 = arith.mulf %235, %235 : vector<14x32xf32>
    %cst_112 = arith.constant dense<0.000000e+00> : vector<14xf32>
    %237 = vector.multi_reduction <add>, %236, %cst_112 [1] : vector<14x32xf32> to vector<14xf32>
    %238 = vector.shape_cast %237 : vector<14xf32> to vector<14x1xf32>
    %cst_113 = arith.constant 3.200000e+01 : f32
    %239 = vector.broadcast %cst_113 : f32 to vector<14x1xf32>
    %240 = arith.divf %238, %239 : vector<14x1xf32>
    %cst_114 = arith.constant 9.99999974E-6 : f32
    %241 = vector.broadcast %cst_114 : f32 to vector<14x1xf32>
    %242 = arith.addf %240, %241 : vector<14x1xf32>
    %243 = math.rsqrt %242 : vector<14x1xf32>
    %244 = vector.broadcast %243 : vector<14x1xf32> to vector<14x32xf32>
    %245 = arith.mulf %235, %244 : vector<14x32xf32>
    %246 = vector.broadcast %228 : vector<1x32xf32> to vector<14x32xf32>
    %247 = arith.mulf %245, %246 : vector<14x32xf32>
    %248 = vector.broadcast %229 : vector<1x32xf32> to vector<14x32xf32>
    %249 = arith.addf %247, %248 : vector<14x32xf32>
    %250 = arith.truncf %249 : vector<14x32xf32> to vector<14x32xbf16>
    %c0_115 = arith.constant 0 : index
    %c0_116 = arith.constant 0 : index
    %251 = vector.load %arg30[%c0_115, %c0_116] : memref<32x32xbf16, #tpu.memory_space<vmem>>, vector<32x32xbf16>
    %cst_117 = arith.constant dense<0.000000e+00> : vector<14x32xf32>
    %252 = tpu.matmul %250, %251, %cst_117 {dimension_numbers = #tpu.dot_dimension_numbers<[1], [0], [0], [1], [0, 0, 1, 1], [], []>} : vector<14x32xbf16>, vector<32x32xbf16>, vector<14x32xf32> -> vector<14x32xf32>
    %c0_118 = arith.constant 0 : index
    %c0_119 = arith.constant 0 : index
    %253 = vector.load %arg31[%c0_118, %c0_119] : memref<1x32xf32, #tpu.memory_space<vmem>>, vector<1x32xf32>
    %254 = vector.broadcast %253 : vector<1x32xf32> to vector<14x32xf32>
    %255 = arith.addf %252, %254 : vector<14x32xf32>
    %c0_120 = arith.constant 0 : index
    %c0_121 = arith.constant 0 : index
    %256 = vector.load %arg32[%c0_120, %c0_121] : memref<32x32xbf16, #tpu.memory_space<vmem>>, vector<32x32xbf16>
    %cst_122 = arith.constant dense<0.000000e+00> : vector<14x32xf32>
    %257 = tpu.matmul %250, %256, %cst_122 {dimension_numbers = #tpu.dot_dimension_numbers<[1], [0], [0], [1], [0, 0, 1, 1], [], []>} : vector<14x32xbf16>, vector<32x32xbf16>, vector<14x32xf32> -> vector<14x32xf32>
    %c0_123 = arith.constant 0 : index
    %c0_124 = arith.constant 0 : index
    %258 = vector.load %arg33[%c0_123, %c0_124] : memref<1x32xf32, #tpu.memory_space<vmem>>, vector<1x32xf32>
    %259 = vector.broadcast %258 : vector<1x32xf32> to vector<14x32xf32>
    %260 = arith.addf %257, %259 : vector<14x32xf32>
    %c0_125 = arith.constant 0 : index
    %c0_126 = arith.constant 0 : index
    %261 = vector.load %arg34[%c0_125, %c0_126] : memref<32x32xbf16, #tpu.memory_space<vmem>>, vector<32x32xbf16>
    %cst_127 = arith.constant dense<0.000000e+00> : vector<14x32xf32>
    %262 = tpu.matmul %250, %261, %cst_127 {dimension_numbers = #tpu.dot_dimension_numbers<[1], [0], [0], [1], [0, 0, 1, 1], [], []>} : vector<14x32xbf16>, vector<32x32xbf16>, vector<14x32xf32> -> vector<14x32xf32>
    %c0_128 = arith.constant 0 : index
    %c0_129 = arith.constant 0 : index
    %263 = vector.load %arg35[%c0_128, %c0_129] : memref<1x32xf32, #tpu.memory_space<vmem>>, vector<1x32xf32>
    %264 = vector.broadcast %263 : vector<1x32xf32> to vector<14x32xf32>
    %265 = arith.addf %262, %264 : vector<14x32xf32>
    %266 = arith.truncf %255 : vector<14x32xf32> to vector<14x32xbf16>
    %267 = arith.truncf %260 : vector<14x32xf32> to vector<14x32xbf16>
    %cst_130 = arith.constant dense<0.000000e+00> : vector<14x14xf32>
    %268 = tpu.matmul %266, %267, %cst_130 {dimension_numbers = #tpu.dot_dimension_numbers<[1], [1], [0], [0], [0, 0, 1, 0], [], []>} : vector<14x32xbf16>, vector<14x32xbf16>, vector<14x14xf32> -> vector<14x14xf32>
    %cst_131 = arith.constant 0.176776692 : f32
    %269 = vector.broadcast %cst_131 : f32 to vector<14x14xf32>
    %270 = arith.mulf %268, %269 : vector<14x14xf32>
    %cst_132 = arith.constant dense<0xFF800000> : vector<14xf32>
    %271 = vector.multi_reduction <maximumf>, %270, %cst_132 [1] : vector<14x14xf32> to vector<14xf32>
    %272 = vector.shape_cast %271 : vector<14xf32> to vector<14x1xf32>
    %273 = vector.broadcast %272 : vector<14x1xf32> to vector<14x14xf32>
    %274 = arith.subf %270, %273 : vector<14x14xf32>
    %275 = math.exp %274 : vector<14x14xf32>
    %cst_133 = arith.constant dense<0.000000e+00> : vector<14xf32>
    %276 = vector.multi_reduction <add>, %275, %cst_133 [1] : vector<14x14xf32> to vector<14xf32>
    %277 = vector.shape_cast %276 : vector<14xf32> to vector<14x1xf32>
    %278 = vector.broadcast %277 : vector<14x1xf32> to vector<14x14xf32>
    %279 = arith.divf %275, %278 : vector<14x14xf32>
    %280 = arith.truncf %279 : vector<14x14xf32> to vector<14x14xbf16>
    %281 = arith.truncf %265 : vector<14x32xf32> to vector<14x32xbf16>
    %cst_134 = arith.constant dense<0.000000e+00> : vector<14x32xf32>
    %282 = tpu.matmul %280, %281, %cst_134 {dimension_numbers = #tpu.dot_dimension_numbers<[1], [0], [0], [1], [0, 0, 1, 1], [], []>} : vector<14x14xbf16>, vector<14x32xbf16>, vector<14x32xf32> -> vector<14x32xf32>
    %283 = arith.truncf %282 : vector<14x32xf32> to vector<14x32xbf16>
    %c0_135 = arith.constant 0 : index
    %c0_136 = arith.constant 0 : index
    %284 = vector.load %arg36[%c0_135, %c0_136] : memref<32x32xbf16, #tpu.memory_space<vmem>>, vector<32x32xbf16>
    %cst_137 = arith.constant dense<0.000000e+00> : vector<14x32xf32>
    %285 = tpu.matmul %283, %284, %cst_137 {dimension_numbers = #tpu.dot_dimension_numbers<[1], [0], [0], [1], [0, 0, 1, 1], [], []>} : vector<14x32xbf16>, vector<32x32xbf16>, vector<14x32xf32> -> vector<14x32xf32>
    %c0_138 = arith.constant 0 : index
    %c0_139 = arith.constant 0 : index
    %286 = vector.load %arg37[%c0_138, %c0_139] : memref<1x32xf32, #tpu.memory_space<vmem>>, vector<1x32xf32>
    %287 = vector.broadcast %286 : vector<1x32xf32> to vector<14x32xf32>
    %288 = arith.addf %285, %287 : vector<14x32xf32>
    %289 = arith.addf %249, %288 : vector<14x32xf32>
    %c0_140 = arith.constant 0 : index
    %c0_141 = arith.constant 0 : index
    %290 = vector.load %arg38[%c0_140, %c0_141] : memref<1x32xf32, #tpu.memory_space<vmem>>, vector<1x32xf32>
    %c0_142 = arith.constant 0 : index
    %c0_143 = arith.constant 0 : index
    %291 = vector.load %arg39[%c0_142, %c0_143] : memref<1x32xf32, #tpu.memory_space<vmem>>, vector<1x32xf32>
    %cst_144 = arith.constant dense<0.000000e+00> : vector<14xf32>
    %292 = vector.multi_reduction <add>, %289, %cst_144 [1] : vector<14x32xf32> to vector<14xf32>
    %293 = vector.shape_cast %292 : vector<14xf32> to vector<14x1xf32>
    %cst_145 = arith.constant 3.200000e+01 : f32
    %294 = vector.broadcast %cst_145 : f32 to vector<14x1xf32>
    %295 = arith.divf %293, %294 : vector<14x1xf32>
    %296 = vector.broadcast %295 : vector<14x1xf32> to vector<14x32xf32>
    %297 = arith.subf %289, %296 : vector<14x32xf32>
    %298 = arith.mulf %297, %297 : vector<14x32xf32>
    %cst_146 = arith.constant dense<0.000000e+00> : vector<14xf32>
    %299 = vector.multi_reduction <add>, %298, %cst_146 [1] : vector<14x32xf32> to vector<14xf32>
    %300 = vector.shape_cast %299 : vector<14xf32> to vector<14x1xf32>
    %cst_147 = arith.constant 3.200000e+01 : f32
    %301 = vector.broadcast %cst_147 : f32 to vector<14x1xf32>
    %302 = arith.divf %300, %301 : vector<14x1xf32>
    %cst_148 = arith.constant 9.99999974E-6 : f32
    %303 = vector.broadcast %cst_148 : f32 to vector<14x1xf32>
    %304 = arith.addf %302, %303 : vector<14x1xf32>
    %305 = math.rsqrt %304 : vector<14x1xf32>
    %306 = vector.broadcast %305 : vector<14x1xf32> to vector<14x32xf32>
    %307 = arith.mulf %297, %306 : vector<14x32xf32>
    %308 = vector.broadcast %290 : vector<1x32xf32> to vector<14x32xf32>
    %309 = arith.mulf %307, %308 : vector<14x32xf32>
    %310 = vector.broadcast %291 : vector<1x32xf32> to vector<14x32xf32>
    %311 = arith.addf %309, %310 : vector<14x32xf32>
    %312 = arith.truncf %311 : vector<14x32xf32> to vector<14x32xbf16>
    %c0_149 = arith.constant 0 : index
    %c0_150 = arith.constant 0 : index
    %313 = vector.load %arg40[%c0_149, %c0_150] : memref<32x32xbf16, #tpu.memory_space<vmem>>, vector<32x32xbf16>
    %cst_151 = arith.constant dense<0.000000e+00> : vector<14x32xf32>
    %314 = tpu.matmul %312, %313, %cst_151 {dimension_numbers = #tpu.dot_dimension_numbers<[1], [0], [0], [1], [0, 0, 1, 1], [], []>} : vector<14x32xbf16>, vector<32x32xbf16>, vector<14x32xf32> -> vector<14x32xf32>
    %c0_152 = arith.constant 0 : index
    %c0_153 = arith.constant 0 : index
    %315 = vector.load %arg41[%c0_152, %c0_153] : memref<1x32xf32, #tpu.memory_space<vmem>>, vector<1x32xf32>
    %316 = vector.broadcast %315 : vector<1x32xf32> to vector<14x32xf32>
    %317 = arith.addf %314, %316 : vector<14x32xf32>
    %cst_154 = arith.constant 3.000000e+00 : f32
    %318 = vector.broadcast %cst_154 : f32 to vector<14x32xf32>
    %319 = arith.addf %317, %318 : vector<14x32xf32>
    %cst_155 = arith.constant 0.000000e+00 : f32
    %cst_156 = arith.constant 6.000000e+00 : f32
    %320 = vector.broadcast %cst_155 : f32 to vector<14x32xf32>
    %321 = arith.maximumf %320, %319 : vector<14x32xf32>
    %322 = vector.broadcast %cst_156 : f32 to vector<14x32xf32>
    %323 = arith.minimumf %322, %321 : vector<14x32xf32>
    %324 = arith.mulf %317, %323 : vector<14x32xf32>
    %cst_157 = arith.constant 0.166666672 : f32
    %325 = vector.broadcast %cst_157 : f32 to vector<14x32xf32>
    %326 = arith.mulf %324, %325 : vector<14x32xf32>
    %327 = arith.truncf %326 : vector<14x32xf32> to vector<14x32xbf16>
    %c0_158 = arith.constant 0 : index
    %c0_159 = arith.constant 0 : index
    %328 = vector.load %arg42[%c0_158, %c0_159] : memref<32x32xbf16, #tpu.memory_space<vmem>>, vector<32x32xbf16>
    %cst_160 = arith.constant dense<0.000000e+00> : vector<14x32xf32>
    %329 = tpu.matmul %327, %328, %cst_160 {dimension_numbers = #tpu.dot_dimension_numbers<[1], [0], [0], [1], [0, 0, 1, 1], [], []>} : vector<14x32xbf16>, vector<32x32xbf16>, vector<14x32xf32> -> vector<14x32xf32>
    %c0_161 = arith.constant 0 : index
    %c0_162 = arith.constant 0 : index
    %330 = vector.load %arg43[%c0_161, %c0_162] : memref<1x32xf32, #tpu.memory_space<vmem>>, vector<1x32xf32>
    %331 = vector.broadcast %330 : vector<1x32xf32> to vector<14x32xf32>
    %332 = arith.addf %329, %331 : vector<14x32xf32>
    %333 = arith.addf %311, %332 : vector<14x32xf32>
    %c0_163 = arith.constant 0 : index
    %c0_164 = arith.constant 0 : index
    %334 = vector.load %arg44[%c0_163, %c0_164] : memref<1x32xf32, #tpu.memory_space<vmem>>, vector<1x32xf32>
    %c0_165 = arith.constant 0 : index
    %c0_166 = arith.constant 0 : index
    %335 = vector.load %arg45[%c0_165, %c0_166] : memref<1x32xf32, #tpu.memory_space<vmem>>, vector<1x32xf32>
    %cst_167 = arith.constant dense<0.000000e+00> : vector<14xf32>
    %336 = vector.multi_reduction <add>, %333, %cst_167 [1] : vector<14x32xf32> to vector<14xf32>
    %337 = vector.shape_cast %336 : vector<14xf32> to vector<14x1xf32>
    %cst_168 = arith.constant 3.200000e+01 : f32
    %338 = vector.broadcast %cst_168 : f32 to vector<14x1xf32>
    %339 = arith.divf %337, %338 : vector<14x1xf32>
    %340 = vector.broadcast %339 : vector<14x1xf32> to vector<14x32xf32>
    %341 = arith.subf %333, %340 : vector<14x32xf32>
    %342 = arith.mulf %341, %341 : vector<14x32xf32>
    %cst_169 = arith.constant dense<0.000000e+00> : vector<14xf32>
    %343 = vector.multi_reduction <add>, %342, %cst_169 [1] : vector<14x32xf32> to vector<14xf32>
    %344 = vector.shape_cast %343 : vector<14xf32> to vector<14x1xf32>
    %cst_170 = arith.constant 3.200000e+01 : f32
    %345 = vector.broadcast %cst_170 : f32 to vector<14x1xf32>
    %346 = arith.divf %344, %345 : vector<14x1xf32>
    %cst_171 = arith.constant 9.99999974E-6 : f32
    %347 = vector.broadcast %cst_171 : f32 to vector<14x1xf32>
    %348 = arith.addf %346, %347 : vector<14x1xf32>
    %349 = math.rsqrt %348 : vector<14x1xf32>
    %350 = vector.broadcast %349 : vector<14x1xf32> to vector<14x32xf32>
    %351 = arith.mulf %341, %350 : vector<14x32xf32>
    %352 = vector.broadcast %334 : vector<1x32xf32> to vector<14x32xf32>
    %353 = arith.mulf %351, %352 : vector<14x32xf32>
    %354 = vector.broadcast %335 : vector<1x32xf32> to vector<14x32xf32>
    %355 = arith.addf %353, %354 : vector<14x32xf32>
    %cst_172 = arith.constant dense<0.000000e+00> : vector<32xf32>
    %356 = vector.multi_reduction <add>, %355, %cst_172 [0] : vector<14x32xf32> to vector<32xf32>
    %357 = vector.shape_cast %356 : vector<32xf32> to vector<1x32xf32>
    %cst_173 = arith.constant 1.400000e+01 : f32
    %358 = vector.broadcast %cst_173 : f32 to vector<1x32xf32>
    %359 = arith.divf %357, %358 : vector<1x32xf32>
    %360 = arith.truncf %359 : vector<1x32xf32> to vector<1x32xbf16>
    %c0_174 = arith.constant 0 : index
    %c0_175 = arith.constant 0 : index
    %361 = vector.load %arg46[%c0_174, %c0_175] : memref<32x64xbf16, #tpu.memory_space<vmem>>, vector<32x64xbf16>
    %cst_176 = arith.constant dense<0.000000e+00> : vector<1x64xf32>
    %362 = tpu.matmul %360, %361, %cst_176 {dimension_numbers = #tpu.dot_dimension_numbers<[1], [0], [0], [1], [0, 0, 1, 1], [], []>} : vector<1x32xbf16>, vector<32x64xbf16>, vector<1x64xf32> -> vector<1x64xf32>
    %c0_177 = arith.constant 0 : index
    %c0_178 = arith.constant 0 : index
    %363 = vector.load %arg47[%c0_177, %c0_178] : memref<1x64xf32, #tpu.memory_space<vmem>>, vector<1x64xf32>
    %364 = arith.addf %362, %363 : vector<1x64xf32>
    %cst_179 = arith.constant 0.000000e+00 : f32
    %365 = vector.broadcast %cst_179 : f32 to vector<1x64xf32>
    %366 = arith.cmpf ogt, %364, %365 : vector<1x64xf32>
    %cst_180 = arith.constant 0.00999999977 : f32
    %367 = vector.broadcast %cst_180 : f32 to vector<1x64xf32>
    %368 = arith.mulf %367, %364 : vector<1x64xf32>
    %369 = arith.select %366, %364, %368 : vector<1x64xi1>, vector<1x64xf32>
    %370 = arith.truncf %369 : vector<1x64xf32> to vector<1x64xbf16>
    %c0_181 = arith.constant 0 : index
    %c0_182 = arith.constant 0 : index
    %371 = vector.load %arg48[%c0_181, %c0_182] : memref<64x4xbf16, #tpu.memory_space<vmem>>, vector<64x4xbf16>
    %cst_183 = arith.constant dense<0.000000e+00> : vector<1x4xf32>
    %372 = tpu.matmul %370, %371, %cst_183 {dimension_numbers = #tpu.dot_dimension_numbers<[1], [0], [0], [1], [0, 0, 1, 1], [], []>} : vector<1x64xbf16>, vector<64x4xbf16>, vector<1x4xf32> -> vector<1x4xf32>
    %c0_184 = arith.constant 0 : index
    %c0_185 = arith.constant 0 : index
    %373 = vector.load %arg49[%c0_184, %c0_185] : memref<1x4xf32, #tpu.memory_space<vmem>>, vector<1x4xf32>
    %374 = arith.addf %372, %373 : vector<1x4xf32>
    %375 = vector.shape_cast %374 : vector<1x4xf32> to vector<1x1x4xf32>
    %c0_186 = arith.constant 0 : index
    %c0_187 = arith.constant 0 : index
    %c0_188 = arith.constant 0 : index
    %376 = vector.load %arg50[%c0_186, %c0_187, %c0_188] : memref<1x1x4xf32, #tpu.memory_space<vmem>>, vector<1x1x4xf32>
    tpu.vector_store %arg50[%c0_186, %c0_187, %c0_188], %375 {strides = array<i32>} : memref<1x1x4xf32, #tpu.memory_space<vmem>>, vector<1x1x4xf32>,
    return
  }
  func.func @transform_0(%arg0: i32) -> (i32, i32, i32) {
    %c0_i32 = arith.constant 0 : i32
    %c0_i32_0 = arith.constant 0 : i32
    %c0_i32_1 = arith.constant 0 : i32
    return %arg0, %c0_i32, %c0_i32_0 : i32, i32, i32
  }
  func.func @transform_1(%arg0: i32) -> (i32, i32) {
    %c0_i32 = arith.constant 0 : i32
    %c0_i32_0 = arith.constant 0 : i32
    %c0_i32_1 = arith.constant 0 : i32
    return %c0_i32, %c0_i32_0 : i32, i32
  }
  func.func @transform_2(%arg0: i32) -> (i32, i32) {
    %c0_i32 = arith.constant 0 : i32
    %c0_i32_0 = arith.constant 0 : i32
    %c0_i32_1 = arith.constant 0 : i32
    return %c0_i32, %c0_i32_0 : i32, i32
  }
  func.func @transform_3(%arg0: i32) -> (i32, i32) {
    %c0_i32 = arith.constant 0 : i32
    %c0_i32_0 = arith.constant 0 : i32
    %c0_i32_1 = arith.constant 0 : i32
    return %c0_i32, %c0_i32_0 : i32, i32
  }
  func.func @transform_4(%arg0: i32) -> (i32, i32) {
    %c0_i32 = arith.constant 0 : i32
    %c0_i32_0 = arith.constant 0 : i32
    %c0_i32_1 = arith.constant 0 : i32
    return %c0_i32, %c0_i32_0 : i32, i32
  }
  func.func @transform_5(%arg0: i32) -> (i32, i32) {
    %c0_i32 = arith.constant 0 : i32
    %c0_i32_0 = arith.constant 0 : i32
    %c0_i32_1 = arith.constant 0 : i32
    return %c0_i32, %c0_i32_0 : i32, i32
  }
  func.func @transform_6(%arg0: i32) -> (i32, i32) {
    %c0_i32 = arith.constant 0 : i32
    %c0_i32_0 = arith.constant 0 : i32
    %c0_i32_1 = arith.constant 0 : i32
    return %c0_i32, %c0_i32_0 : i32, i32
  }
  func.func @transform_7(%arg0: i32) -> (i32, i32) {
    %c0_i32 = arith.constant 0 : i32
    %c0_i32_0 = arith.constant 0 : i32
    %c0_i32_1 = arith.constant 0 : i32
    return %c0_i32, %c0_i32_0 : i32, i32
  }
  func.func @transform_8(%arg0: i32) -> (i32, i32) {
    %c0_i32 = arith.constant 0 : i32
    %c0_i32_0 = arith.constant 0 : i32
    %c0_i32_1 = arith.constant 0 : i32
    return %c0_i32, %c0_i32_0 : i32, i32
  }
  func.func @transform_9(%arg0: i32) -> (i32, i32) {
    %c0_i32 = arith.constant 0 : i32
    %c0_i32_0 = arith.constant 0 : i32
    %c0_i32_1 = arith.constant 0 : i32
    return %c0_i32, %c0_i32_0 : i32, i32
  }
  func.func @transform_10(%arg0: i32) -> (i32, i32) {
    %c0_i32 = arith.constant 0 : i32
    %c0_i32_0 = arith.constant 0 : i32
    %c0_i32_1 = arith.constant 0 : i32
    return %c0_i32, %c0_i32_0 : i32, i32
  }
  func.func @transform_11(%arg0: i32) -> (i32, i32) {
    %c0_i32 = arith.constant 0 : i32
    %c0_i32_0 = arith.constant 0 : i32
    %c0_i32_1 = arith.constant 0 : i32
    return %c0_i32, %c0_i32_0 : i32, i32
  }
  func.func @transform_12(%arg0: i32) -> (i32, i32) {
    %c0_i32 = arith.constant 0 : i32
    %c0_i32_0 = arith.constant 0 : i32
    %c0_i32_1 = arith.constant 0 : i32
    return %c0_i32, %c0_i32_0 : i32, i32
  }
  func.func @transform_13(%arg0: i32) -> (i32, i32) {
    %c0_i32 = arith.constant 0 : i32
    %c0_i32_0 = arith.constant 0 : i32
    %c0_i32_1 = arith.constant 0 : i32
    return %c0_i32, %c0_i32_0 : i32, i32
  }
  func.func @transform_14(%arg0: i32) -> (i32, i32) {
    %c0_i32 = arith.constant 0 : i32
    %c0_i32_0 = arith.constant 0 : i32
    %c0_i32_1 = arith.constant 0 : i32
    return %c0_i32, %c0_i32_0 : i32, i32
  }
  func.func @transform_15(%arg0: i32) -> (i32, i32) {
    %c0_i32 = arith.constant 0 : i32
    %c0_i32_0 = arith.constant 0 : i32
    %c0_i32_1 = arith.constant 0 : i32
    return %c0_i32, %c0_i32_0 : i32, i32
  }
  func.func @transform_16(%arg0: i32) -> (i32, i32) {
    %c0_i32 = arith.constant 0 : i32
    %c0_i32_0 = arith.constant 0 : i32
    %c0_i32_1 = arith.constant 0 : i32
    return %c0_i32, %c0_i32_0 : i32, i32
  }
  func.func @transform_17(%arg0: i32) -> (i32, i32) {
    %c0_i32 = arith.constant 0 : i32
    %c0_i32_0 = arith.constant 0 : i32
    %c0_i32_1 = arith.constant 0 : i32
    return %c0_i32, %c0_i32_0 : i32, i32
  }
  func.func @transform_18(%arg0: i32) -> (i32, i32) {
    %c0_i32 = arith.constant 0 : i32
    %c0_i32_0 = arith.constant 0 : i32
    %c0_i32_1 = arith.constant 0 : i32
    return %c0_i32, %c0_i32_0 : i32, i32
  }
  func.func @transform_19(%arg0: i32) -> (i32, i32) {
    %c0_i32 = arith.constant 0 : i32
    %c0_i32_0 = arith.constant 0 : i32
    %c0_i32_1 = arith.constant 0 : i32
    return %c0_i32, %c0_i32_0 : i32, i32
  }
  func.func @transform_20(%arg0: i32) -> (i32, i32) {
    %c0_i32 = arith.constant 0 : i32
    %c0_i32_0 = arith.constant 0 : i32
    %c0_i32_1 = arith.constant 0 : i32
    return %c0_i32, %c0_i32_0 : i32, i32
  }
  func.func @transform_21(%arg0: i32) -> (i32, i32) {
    %c0_i32 = arith.constant 0 : i32
    %c0_i32_0 = arith.constant 0 : i32
    %c0_i32_1 = arith.constant 0 : i32
    return %c0_i32, %c0_i32_0 : i32, i32
  }
  func.func @transform_22(%arg0: i32) -> (i32, i32) {
    %c0_i32 = arith.constant 0 : i32
    %c0_i32_0 = arith.constant 0 : i32
    %c0_i32_1 = arith.constant 0 : i32
    return %c0_i32, %c0_i32_0 : i32, i32
  }
  func.func @transform_23(%arg0: i32) -> (i32, i32) {
    %c0_i32 = arith.constant 0 : i32
    %c0_i32_0 = arith.constant 0 : i32
    %c0_i32_1 = arith.constant 0 : i32
    return %c0_i32, %c0_i32_0 : i32, i32
  }
  func.func @transform_24(%arg0: i32) -> (i32, i32) {
    %c0_i32 = arith.constant 0 : i32
    %c0_i32_0 = arith.constant 0 : i32
    %c0_i32_1 = arith.constant 0 : i32
    return %c0_i32, %c0_i32_0 : i32, i32
  }
  func.func @transform_25(%arg0: i32) -> (i32, i32) {
    %c0_i32 = arith.constant 0 : i32
    %c0_i32_0 = arith.constant 0 : i32
    %c0_i32_1 = arith.constant 0 : i32
    return %c0_i32, %c0_i32_0 : i32, i32
  }
  func.func @transform_26(%arg0: i32) -> (i32, i32) {
    %c0_i32 = arith.constant 0 : i32
    %c0_i32_0 = arith.constant 0 : i32
    %c0_i32_1 = arith.constant 0 : i32
    return %c0_i32, %c0_i32_0 : i32, i32
  }
  func.func @transform_27(%arg0: i32) -> (i32, i32) {
    %c0_i32 = arith.constant 0 : i32
    %c0_i32_0 = arith.constant 0 : i32
    %c0_i32_1 = arith.constant 0 : i32
    return %c0_i32, %c0_i32_0 : i32, i32
  }
  func.func @transform_28(%arg0: i32) -> (i32, i32) {
    %c0_i32 = arith.constant 0 : i32
    %c0_i32_0 = arith.constant 0 : i32
    %c0_i32_1 = arith.constant 0 : i32
    return %c0_i32, %c0_i32_0 : i32, i32
  }
  func.func @transform_29(%arg0: i32) -> (i32, i32) {
    %c0_i32 = arith.constant 0 : i32
    %c0_i32_0 = arith.constant 0 : i32
    %c0_i32_1 = arith.constant 0 : i32
    return %c0_i32, %c0_i32_0 : i32, i32
  }
  func.func @transform_30(%arg0: i32) -> (i32, i32) {
    %c0_i32 = arith.constant 0 : i32
    %c0_i32_0 = arith.constant 0 : i32
    %c0_i32_1 = arith.constant 0 : i32
    return %c0_i32, %c0_i32_0 : i32, i32
  }
  func.func @transform_31(%arg0: i32) -> (i32, i32) {
    %c0_i32 = arith.constant 0 : i32
    %c0_i32_0 = arith.constant 0 : i32
    %c0_i32_1 = arith.constant 0 : i32
    return %c0_i32, %c0_i32_0 : i32, i32
  }
  func.func @transform_32(%arg0: i32) -> (i32, i32) {
    %c0_i32 = arith.constant 0 : i32
    %c0_i32_0 = arith.constant 0 : i32
    %c0_i32_1 = arith.constant 0 : i32
    return %c0_i32, %c0_i32_0 : i32, i32
  }
  func.func @transform_33(%arg0: i32) -> (i32, i32) {
    %c0_i32 = arith.constant 0 : i32
    %c0_i32_0 = arith.constant 0 : i32
    %c0_i32_1 = arith.constant 0 : i32
    return %c0_i32, %c0_i32_0 : i32, i32
  }
  func.func @transform_34(%arg0: i32) -> (i32, i32) {
    %c0_i32 = arith.constant 0 : i32
    %c0_i32_0 = arith.constant 0 : i32
    %c0_i32_1 = arith.constant 0 : i32
    return %c0_i32, %c0_i32_0 : i32, i32
  }
  func.func @transform_35(%arg0: i32) -> (i32, i32) {
    %c0_i32 = arith.constant 0 : i32
    %c0_i32_0 = arith.constant 0 : i32
    %c0_i32_1 = arith.constant 0 : i32
    return %c0_i32, %c0_i32_0 : i32, i32
  }
  func.func @transform_36(%arg0: i32) -> (i32, i32) {
    %c0_i32 = arith.constant 0 : i32
    %c0_i32_0 = arith.constant 0 : i32
    %c0_i32_1 = arith.constant 0 : i32
    return %c0_i32, %c0_i32_0 : i32, i32
  }
  func.func @transform_37(%arg0: i32) -> (i32, i32) {
    %c0_i32 = arith.constant 0 : i32
    %c0_i32_0 = arith.constant 0 : i32
    %c0_i32_1 = arith.constant 0 : i32
    return %c0_i32, %c0_i32_0 : i32, i32
  }
  func.func @transform_38(%arg0: i32) -> (i32, i32) {
    %c0_i32 = arith.constant 0 : i32
    %c0_i32_0 = arith.constant 0 : i32
    %c0_i32_1 = arith.constant 0 : i32
    return %c0_i32, %c0_i32_0 : i32, i32
  }
  func.func @transform_39(%arg0: i32) -> (i32, i32) {
    %c0_i32 = arith.constant 0 : i32
    %c0_i32_0 = arith.constant 0 : i32
    %c0_i32_1 = arith.constant 0 : i32
    return %c0_i32, %c0_i32_0 : i32, i32
  }
  func.func @transform_40(%arg0: i32) -> (i32, i32) {
    %c0_i32 = arith.constant 0 : i32
    %c0_i32_0 = arith.constant 0 : i32
    %c0_i32_1 = arith.constant 0 : i32
    return %c0_i32, %c0_i32_0 : i32, i32
  }
  func.func @transform_41(%arg0: i32) -> (i32, i32) {
    %c0_i32 = arith.constant 0 : i32
    %c0_i32_0 = arith.constant 0 : i32
    %c0_i32_1 = arith.constant 0 : i32
    return %c0_i32, %c0_i32_0 : i32, i32
  }
  func.func @transform_42(%arg0: i32) -> (i32, i32) {
    %c0_i32 = arith.constant 0 : i32
    %c0_i32_0 = arith.constant 0 : i32
    %c0_i32_1 = arith.constant 0 : i32
    return %c0_i32, %c0_i32_0 : i32, i32
  }
  func.func @transform_43(%arg0: i32) -> (i32, i32) {
    %c0_i32 = arith.constant 0 : i32
    %c0_i32_0 = arith.constant 0 : i32
    %c0_i32_1 = arith.constant 0 : i32
    return %c0_i32, %c0_i32_0 : i32, i32
  }
  func.func @transform_44(%arg0: i32) -> (i32, i32) {
    %c0_i32 = arith.constant 0 : i32
    %c0_i32_0 = arith.constant 0 : i32
    %c0_i32_1 = arith.constant 0 : i32
    return %c0_i32, %c0_i32_0 : i32, i32
  }
  func.func @transform_45(%arg0: i32) -> (i32, i32) {
    %c0_i32 = arith.constant 0 : i32
    %c0_i32_0 = arith.constant 0 : i32
    %c0_i32_1 = arith.constant 0 : i32
    return %c0_i32, %c0_i32_0 : i32, i32
  }
  func.func @transform_46(%arg0: i32) -> (i32, i32) {
    %c0_i32 = arith.constant 0 : i32
    %c0_i32_0 = arith.constant 0 : i32
    %c0_i32_1 = arith.constant 0 : i32
    return %c0_i32, %c0_i32_0 : i32, i32
  }
  func.func @transform_47(%arg0: i32) -> (i32, i32) {
    %c0_i32 = arith.constant 0 : i32
    %c0_i32_0 = arith.constant 0 : i32
    %c0_i32_1 = arith.constant 0 : i32
    return %c0_i32, %c0_i32_0 : i32, i32
  }
  func.func @transform_48(%arg0: i32) -> (i32, i32) {
    %c0_i32 = arith.constant 0 : i32
    %c0_i32_0 = arith.constant 0 : i32
    %c0_i32_1 = arith.constant 0 : i32
    return %c0_i32, %c0_i32_0 : i32, i32
  }
  func.func @transform_49(%arg0: i32) -> (i32, i32, i32) {
    %c0_i32 = arith.constant 0 : i32
    %c0_i32_0 = arith.constant 0 : i32
    %c0_i32_1 = arith.constant 0 : i32
    return %arg0, %c0_i32, %c0_i32_0 : i32, i32, i32
  }
}

</mosaic_0001>

<bundles_post_ra>
// kernel: _lambda_.1
= control target key start
LH: loop header
LB: loop body
LE: loop exit
PB: predicated region body
PF: predicated region fallthrough
CT: control target
= control target key end

     0   :  { %s6948_s6 = smov 1   ;;  %s6949_s10 = smov 2   ;;  %s8396_s0 = inlined_call_operand.smem [shape: u32[50], index: -1, kind: input, shape index: {}] }
   0x1   :  { %s7046_s5 = sld [smem:[%s8396_s0]]   ;;  %s6950_s14 = smov 3  }
   0x2   :  { %s7051_s9 = sld [smem:[%s8396_s0 + %s6948_s6]]   ;;  %s6951_s18 = smov 4  }
   0x3   :  { %s7056_s13 = sld [smem:[%s8396_s0 + %s6949_s10]]   ;;  %s6952_s22 = smov 5  }
   0x4   :  { %s7061_s17 = sld [smem:[%s8396_s0 + %s6950_s14]]   ;;  %s6953_s26 = smov 6  }
   0x5   :  { %s7066_s21 = sld [smem:[%s8396_s0 + %s6951_s18]]   ;;  %s6954_s30 = smov 7  }
   0x6   :  { %s7071_s25 = sld [smem:[%s8396_s0 + %s6952_s22]]   ;;  %s6955_s4 = smov 8  }
   0x7   :  { %8455 = sst [smem:[#allocation60_spill]] %s7046_s5  ;;  %s6956_s10 = smov 9  }
   0x8   :  { %8456 = sst [smem:[#allocation61_spill]] %s7051_s9  ;;  %s6957_s15 = smov 10  }
   0x9   :  { %8457 = sst [smem:[#allocation62_spill]] %s7056_s13  ;;  %s6958_s20 = smov 11  }
   0xa   :  { %8458 = sst [smem:[#allocation63_spill]] %s7061_s17  ;;  %s6960_s1 = smov 13  }
   0xb   :  { %8459 = sst [smem:[#allocation64_spill]] %s7066_s21  ;;  %s6961_s7 = smov 14  }
   0xc   :  { %s7076_s29 = sld [smem:[%s8396_s0 + %s6953_s26]]   ;;  %s6959_s26 = smov 12  }
   0xd   :  { %s7081_s3 = sld [smem:[%s8396_s0 + %s6954_s30]]   ;;  %s6963_s22 = smov 16  }
   0xe   :  { %s7086_s8 = sld [smem:[%s8396_s0 + %s6955_s4]]   ;;  %s6964_s28 = smov 17  }
   0xf   :  { %s7091_s14 = sld [smem:[%s8396_s0 + %s6956_s10]]  }
  0x10   :  { %s7096_s19 = sld [smem:[%s8396_s0 + %s6957_s15]]   ;;  %s6962_s15 = smov 15  }
  0x11   :  { %s7101_s24 = sld [smem:[%s8396_s0 + %s6958_s20]]  }
  0x12   :  { %8460 = sst [smem:[#allocation65_spill]] %s7076_s29 }
  0x13   :  { %8461 = sst [smem:[#allocation66_spill]] %s7081_s3 }
  0x14   :  { %8462 = sst [smem:[#allocation67_spill]] %s7086_s8 }
  0x15   :  { %8463 = sst [smem:[#allocation68_spill]] %s7091_s14 }
  0x16   :  { %8464 = sst [smem:[#allocation69_spill]] %s7096_s19 }
  0x17   :  { %8465 = sst [smem:[#allocation70_spill]] %s7101_s24 }
  0x18   :  { %s7106_s30 = sld [smem:[%s8396_s0 + %s6959_s26]]  }
  0x19   :  { %s7111_s6 = sld [smem:[%s8396_s0 + %s6960_s1]]  }
  0x1a   :  { %s7116_s12 = sld [smem:[%s8396_s0 + %s6961_s7]]   ;;  %s6965_s7 = smov 18  }
  0x1b   :  { %s7121_s20 = sld [smem:[%s8396_s0 + %s6962_s15]]   ;;  %s6966_s15 = smov 19  }
  0x1c   :  { %s7126_s27 = sld [smem:[%s8396_s0 + %s6963_s22]]   ;;  %s6967_s22 = smov 20  }
  0x1d   :  { %s7131_s4 = sld [smem:[%s8396_s0 + %s6964_s28]]   ;;  %s6968_s28 = smov 21  }
  0x1e   :  { %s7136_s19 = sld [smem:[%s8396_s0 + %s6965_s7]]   ;;  %s6969_s7 = smov 22  }
  0x1f   :  { %8466 = sst [smem:[#allocation71_spill]] %s7111_s6 }
  0x20   :  { %8467 = sst [smem:[#allocation72_spill]] %s7116_s12 }
  0x21   :  { %8468 = sst [smem:[#allocation73_spill]] %s7121_s20 }
  0x22   :  { %s7141_s3 = sld [smem:[%s8396_s0 + %s6966_s15]]   ;;  %s6970_s15 = smov 23  }
  0x23   :  { %8469 = sst [smem:[#allocation74_spill]] %s7131_s4 }
  0x24   :  { %s7146_s21 = sld [smem:[%s8396_s0 + %s6967_s22]]   ;;  %s6971_s22 = smov 24  }
  0x25   :  { %s7151_s9 = sld [smem:[%s8396_s0 + %s6968_s28]]   ;;  %s6972_s28 = smov 25  }
  0x26   :  { %s7156_s5 = sld [smem:[%s8396_s0 + %s6969_s7]]   ;;  %s6973_s7 = smov 26  }
  0x27   :  { %s7166_s4 = sld [smem:[%s8396_s0 + %s6971_s22]]   ;;  %s6975_s22 = smov 28  }
  0x28   :  { %8470 = sst [smem:[#allocation75_spill]] %s7141_s3 }
  0x29   :  { %s7161_s3 = sld [smem:[%s8396_s0 + %s6970_s15]]   ;;  %s6974_s15 = smov 27  }
  0x2a   :  { %s7186_s20 = sld [smem:[%s8396_s0 + %s6975_s22]]   ;;  %s6979_s22 = smov 32  }
  0x2b   :  { %8471 = sst [smem:[#allocation76_spill]] %s7151_s9 }
  0x2c   :  { %8472 = sst [smem:[#allocation77_spill]] %s7156_s5 }
  0x2d   :  { %8474 = sst [smem:[#allocation79_spill]] %s7166_s4 }
  0x2e   :  { %s7171_s9 = sld [smem:[%s8396_s0 + %s6972_s28]]   ;;  %s6976_s28 = smov 29  }
  0x2f   :  { %8473 = sst [smem:[#allocation78_spill]] %s7161_s3 }
  0x30   :  { %s7176_s5 = sld [smem:[%s8396_s0 + %s6973_s7]]   ;;  %s6977_s7 = smov 30  }
  0x31   :  { %s7181_s3 = sld [smem:[%s8396_s0 + %s6974_s15]]   ;;  %s6978_s15 = smov 31  }
  0x32   :  { %8478 = sst [smem:[#allocation83_spill]] %s7186_s20 }
  0x33   :  { %s7206_s20 = sld [smem:[%s8396_s0 + %s6979_s22]]   ;;  %s6983_s22 = smov 36  }
  0x34   :  { %8475 = sst [smem:[#allocation80_spill]] %s7171_s9 }
  0x35   :  { %s7191_s9 = sld [smem:[%s8396_s0 + %s6976_s28]]   ;;  %s6980_s28 = smov 33  }
  0x36   :  { %8476 = sst [smem:[#allocation81_spill]] %s7176_s5 }
  0x37   :  { %8477 = sst [smem:[#allocation82_spill]] %s7181_s3 }
  0x38   :  { %s7196_s5 = sld [smem:[%s8396_s0 + %s6977_s7]]   ;;  %s6981_s7 = smov 34  }
  0x39   :  { %s7201_s3 = sld [smem:[%s8396_s0 + %s6978_s15]]   ;;  %s6982_s15 = smov 35  }
  0x3a   :  { %8482 = sst [smem:[#allocation87_spill]] %s7206_s20 }
  0x3b   :  { %8479 = sst [smem:[#allocation84_spill]] %s7191_s9 }
  0x3c   :  { %s7211_s9 = sld [smem:[%s8396_s0 + %s6980_s28]]   ;;  %s6984_s28 = smov 37  }
  0x3d   :  { %s7216_s6 = sld [smem:[%s8396_s0 + %s6981_s7]]   ;;  %s6985_s7 = smov 38  }
  0x3e   :  { %8480 = sst [smem:[#allocation85_spill]] %s7196_s5 }
  0x3f   :  { %8481 = sst [smem:[#allocation86_spill]] %s7201_s3 }
  0x40   :  { %s7221_s3 = sld [smem:[%s8396_s0 + %s6982_s15]]   ;;  %s6986_s15 = smov 39  }
  0x41   :  { %s7226_s20 = sld [smem:[%s8396_s0 + %s6983_s22]]   ;;  %s6987_s22 = smov 40  }
  0x42   :  { %8483 = sst [smem:[#allocation88_spill]] %s7211_s9 }
  0x43   :  { %8484 = sst [smem:[#allocation89_spill]] %s7216_s6 }
  0x44   :  { %s7231_s9 = sld [smem:[%s8396_s0 + %s6984_s28]]   ;;  %s6988_s28 = smov 41  }
  0x45   :  { %s7236_s24 = sld [smem:[%s8396_s0 + %s6985_s7]]   ;;  %s6989_s7 = smov 42  }
  0x46   :  { %8485 = sst [smem:[#allocation90_spill]] %s7221_s3 }
  0x47   :  { %8486 = sst [smem:[#allocation91_spill]] %s7226_s20 }
  0x48   :  { %s7241_s3 = sld [smem:[%s8396_s0 + %s6986_s15]]   ;;  %s6990_s15 = smov 43  }
  0x49   :  { %s7246_s20 = sld [smem:[%s8396_s0 + %s6987_s22]]   ;;  %s6991_s22 = smov 44  }
  0x4a   :  { %8487 = sst [smem:[#allocation92_spill]] %s7231_s9 }
  0x4b   :  { %8488 = sst [smem:[#allocation93_spill]] %s7236_s24 }
  0x4c   :  { %s7251_s9 = sld [smem:[%s8396_s0 + %s6988_s28]]   ;;  %s6992_s28 = smov 45  }
  0x4d   :  { %s7256_s24 = sld [smem:[%s8396_s0 + %s6989_s7]]   ;;  %s6993_s7 = smov 46  }
  0x4e   :  { %8489 = sst [smem:[#allocation94_spill]] %s7241_s3 }
  0x4f   :  { %s7261_s3 = sld [smem:[%s8396_s0 + %s6990_s15]]   ;;  %s6994_s15 = smov 47  }
  0x50   :  { %s7266_s8 = sld [smem:[%s8396_s0 + %s6991_s22]]   ;;  %s6995_s22 = smov 48  }
  0x52   :  { %8490 = sst [smem:[#allocation95_spill]] %s7251_s9 }
  0x53   :  { %8491 = sst [smem:[#allocation96_spill]] %s7256_s24 }
  0x54   :  { %s7271_s9 = sld [smem:[%s8396_s0 + %s6992_s28]]   ;;  %s6996_s28 = smov 49  }
  0x55   :  { %8492 = sst [smem:[#allocation97_spill]] %s7261_s3 }
  0x56   :  { %8493 = sst [smem:[#allocation98_spill]] %s7266_s8 }
  0x57   :  { %s7276_s24 = sld [smem:[%s8396_s0 + %s6993_s7]]  }
  0x58   :  { %s7281_s3 = sld [smem:[%s8396_s0 + %s6994_s15]]  }
  0x59   :  { %s7286_s8 = sld [smem:[%s8396_s0 + %s6995_s22]]  }
  0x5a   :  { %8494 = sst [smem:[#allocation99_spill]] %s7271_s9 }
  0x5b   :  { %s7291_s9 = sld [smem:[%s8396_s0 + %s6996_s28]]  }
  0x5e   :  { %8495 = sst [smem:[#allocation100_spill]] %s7281_s3 }
  0x5f   :  { %8496 = sst [smem:[#allocation101_spill]] %s7286_s8 }
  0x60   :  { %104 = vsyncpa [#allocation3], 0 }
  0x61   :  { %105 = vsyncpa [#allocation6], 0 }
  0x62   :  { %106 = vsyncpa [#allocation9], 0 }
  0x63   :  { %107 = vsyncpa [#allocation12], 0 }
  0x64   :  { %108 = vsyncpa [#allocation15], 0 }
  0x65   :  { %109 = vsyncpa [#allocation18], 0 }
  0x66   :  { %110 = vsyncpa [#allocation21], 0 }
  0x67   :  { %111 = vsyncpa [#allocation24], 0 }
  0x68   :  { %112 = vsyncpa [#allocation27], 0 }
  0x69   :  { %113 = vsyncpa [#allocation30], 0 }
  0x6a   :  { %114 = vsyncpa [#allocation33], 0 }
  0x6b   :  { %115 = vsyncpa [#allocation36], 0 }
  0x6c   :  { %116 = vsyncpa [#allocation39], 0 }
  0x6d   :  { %117 = vsyncpa [#allocation42], 0 }
  0x6e   :  { %118 = vsyncpa [#allocation4], 0 }
  0x6f   :  { %120 = vsyncpa [#allocation4 + $0x1], 0  ;;  %s7293_s7 = smov 0   ;;  %s7295_s0 = smov 0  }
  0x70   :  { %s7297_s10 = smov 0   ;;  %s7299_s11 = smov 0  }
  0x71 LB: > { %s8497_s8 = sld [smem:[#allocation101_spill]]  ;;  %s8498_s3 = sld [smem:[#allocation100_spill]]  ;;  %s6938_s0 = sphi %s7295_s0, %s8653_s0   ;;  %s6934_s7 = sphi %s7293_s7, %s8652_s7   ;;  %s6946_s11 = sphi %s7299_s11, %s8649_s11   ;;  %s6942_s10 = sphi %s7297_s10, %s8651_s10  }
  0x72   : > { %s8499_s14 = sld [smem:[#allocation68_spill]]  ;;  %s8500_s13 = sld [smem:[#allocation62_spill]] }
  0x73   : > { %s8501_s12 = sld [smem:[#allocation72_spill]]  ;;  %s8502_s6 = sld [smem:[#allocation89_spill]] }
  0x74   : > { %s8503_s5 = sld [smem:[#allocation85_spill]]  ;;  %s8504_s4 = sld [smem:[#allocation79_spill]] }
  0x75   : > { %s8505_s29 = sld [smem:[#allocation65_spill]]  ;;  %s8506_s17 = sld [smem:[#allocation63_spill]] }
  0x76   : > { %8507 = sst [smem:[#allocation102_spill]] %s6934_s7  ;;  %s7314_s15 = sadd.s32 4294967295, %s6946_s11  }
  0x77   : > { %8508 = sst [smem:[#allocation103_spill]] %s6942_s10  ;;  %s4926_s16 = sadd.s32 4294967294, %s6946_s11  }
  0x78   : > { %s7318_s18 = sadd.s32 1, %s6946_s11   ;;  %s1167_s22 = sadd.s32 1, %s6942_s10 }
  0x79   : > { %8509 = sst [smem:[#allocation104_spill]] %s7318_s18  ;;  %s1164_s23 = ssub.s32 %s6946_s11, %s7318_s18 }
  0x7a   : > { %p1177_p0 = scmp.ne.s32.totalorder %s6942_s10, %s6938_s0  ;;  %p1165_p1 = scmp.eq.s32.totalorder %s1164_s23, 0 }
  0x7b   : > { %p1178_p2 = scmp.eq.s32.totalorder %s7314_s15, 1  ;;  %p1183_p3 = scmp.ne.s32.totalorder %s6938_s0, %s6934_s7 }
  0x7c   : > { %p1184_p4 = scmp.eq.s32.totalorder %s4926_s16, 1  ;;  %p4927_p7 = scmp.ge.s32.totalorder %s6946_s11, 1 }
  0x7d   : > { %s7329_s26 = scalar_select %p1165_p1, %s6942_s10, %s1167_s22  }
  0x7e   : > { %p7331_p5 = por %p1178_p2, %p1177_p0  ;;  %p7335_p6 = por %p1184_p4, %p1183_p3 }
  0x7f   : > { %8510 = sst [smem:[#allocation105_spill]] %s7329_s26  ;;  %p1191_p8 = scmp.lt.s32.totalorder %s6946_s11, 3 }
  0x80   : > { %s8511_s28 = scalar_select %p7331_p5, 1, 0 }
  0x81   : > { %s8512_s1 = scalar_select %p7335_p6, 1, 0 }
  0x82   : > { %p8425_p9 = scmp.eq.s32.totalorder %s7314_s15, 0  ;;  %p7342_p10 = pnand %p4927_p7, %p1191_p8 }
  0x83   : > { %8513 = sst [smem:[#allocation106_spill]] %s8512_s1  ;;  %s6997_s16 = smov [#allocation5]  }
  0x84   : > { %s8514_s2 = scalar_select %p7342_p10, 1, 0 }
  0x85   : > { %s1218_s22 = sshll.u32 %s6997_s16, 4  ;;  %p5514_p11 = pneg %p7342_p10  ;;  %s1219_s22 = int_to_ptr.vmem [resolvable:$true] %s1218_s22 }
  0x86   : > { %s6998_s23 = smov [#allocation8]   ;;  %s6999_s18 = smov [#allocation11]  }
  0x87   : > { %s1243_s26 = sshll.u32 %s6998_s23, 4  ;;  %p7350_p12 = pnand %p8425_p9, %p5514_p11  ;;  %s7354_s26 = int_to_ptr.vmem [resolvable:$true] %s1243_s26 }
  0x88   : > { %s1268_s1 = sshll.u32 %s6999_s18, 4  ;;  %s6072_s7 = scalar_lea.hbm %s8506_s17, 16  ;;  %s7356_s1 = int_to_ptr.vmem [resolvable:$true] %s1268_s1 }
  0x89   : > { %p6073_p13 = scmp.ne.s32.totalorder %s8506_s17, %s6072_s7  ;;  %p7362_p0 = pneg %p7350_p12 }
  0x8a   : > { %p6079_p3 = scmp.lt.u32.totalorder %s6072_s7, %s8506_s17 }
  0x8b   : > { %p6075_p1 = pnand %p7362_p0, %p6073_p13 }
  0x8d   : > { %p6076_p2 = pneg %p6075_p1 }
  0x8f   : > { %p6081_p4 = pnand %p6079_p3, %p6076_p2 }
  0x91   : > { %6084 = shalt.err (!%p6081_p4)
}
  0x92   : > { %s6085_s23 = scalar_lea.vmem %s1219_s22, 16  ;;  %s6092_s18 = scalar_lea.vmem %s1219_s22, 32 }
  0x93   : > { %p6086_p7 = scmp.ne.s32.totalorder %s1219_s22, %s6085_s23  ;;  %p6093_p9 = scmp.lt.s32.totalorder %s1219_s22, %s1219_s22 }
  0x94   : > { %p6094_p6 = scmp.lt.s32.totalorder %s6092_s18, %s6085_s23 }
  0x95   : > { %p6088_p8 = pnand %p6086_p7, %p7362_p0 }
  0x96   : > { %p6095_p5 = por %p6094_p6, %p6093_p9 }
  0x97   : > { %p6089_p11 = pneg %p6088_p8 }
  0x99   : > { %p6096_p10 = pnand %p6095_p5, %p6089_p11 }
  0x9b   : > { %6099 = shalt.err (!%p6096_p10)
}
  0x9c   : > { %5520 = dma.hbm_to_vmem [thread:$0]  (!%p7350_p12), %s8506_s17, 16, %s1219_s22, [#allocation6]  }
  0x9d   : > { %s6100_s7 = scalar_lea.hbm %s8505_s29, 16 }
  0x9e   : > { %p6101_p13 = scmp.ne.s32.totalorder %s8505_s29, %s6100_s7  ;;  %p6107_p3 = scmp.lt.u32.totalorder %s6100_s7, %s8505_s29 }
  0xa0   : > { %p6103_p1 = pnand %p6101_p13, %p7362_p0 }
  0xa2   : > { %p6104_p2 = pneg %p6103_p1 }
  0xa4   : > { %p6109_p4 = pnand %p6107_p3, %p6104_p2 }
  0xa6   : > { %6112 = shalt.err (!%p6109_p4)
}
  0xa7   : > { %s6113_s23 = scalar_lea.vmem %s7354_s26, 16  ;;  %s6120_s18 = scalar_lea.vmem %s7354_s26, 32 }
  0xa8   : > { %p6114_p5 = scmp.ne.s32.totalorder %s7354_s26, %s6113_s23  ;;  %p6121_p10 = scmp.lt.s32.totalorder %s7354_s26, %s7354_s26 }
  0xa9   : > { %p6122_p7 = scmp.lt.s32.totalorder %s6120_s18, %s6113_s23 }
  0xaa   : > { %p6116_p6 = pnand %p6114_p5, %p7362_p0 }
  0xab   : > { %p6123_p8 = por %p6122_p7, %p6121_p10 }
  0xac   : > { %p6117_p9 = pneg %p6116_p6 }
  0xae   : > { %p6124_p11 = pnand %p6123_p8, %p6117_p9 }
  0xb0   : > { %6127 = shalt.err (!%p6124_p11)
}
  0xb1   : > { %5526 = dma.hbm_to_vmem [thread:$0]  (!%p7350_p12), %s8505_s29, 16, %s7354_s26, [#allocation9]  }
  0xb2   : > { %s6128_s22 = scalar_lea.hbm %s8499_s14, 16 }
  0xb3   : > { %p6129_p13 = scmp.ne.s32.totalorder %s8499_s14, %s6128_s22  ;;  %p6135_p3 = scmp.lt.u32.totalorder %s6128_s22, %s8499_s14 }
  0xb5   : > { %p6131_p1 = pnand %p6129_p13, %p7362_p0 }
  0xb7   : > { %p6132_p2 = pneg %p6131_p1 }
  0xb9   : > { %p6137_p4 = pnand %p6135_p3, %p6132_p2 }
  0xbb   : > { %6140 = shalt.err (!%p6137_p4)
}
  0xbc   : > { %s6141_s7 = scalar_lea.vmem %s7356_s1, 16  ;;  %s6148_s23 = scalar_lea.vmem %s7356_s1, 32 }
  0xbd   : > { %p6142_p5 = scmp.ne.s32.totalorder %s7356_s1, %s6141_s7  ;;  %p6149_p10 = scmp.lt.s32.totalorder %s7356_s1, %s7356_s1 }
  0xbe   : > { %p6150_p7 = scmp.lt.s32.totalorder %s6148_s23, %s6141_s7 }
  0xbf   : > { %p6144_p6 = pnand %p6142_p5, %p7362_p0 }
  0xc0   : > { %p6151_p8 = por %p6150_p7, %p6149_p10 }
  0xc1   : > { %p6145_p9 = pneg %p6144_p6 }
  0xc3   : > { %p6152_p11 = pnand %p6151_p8, %p6145_p9 }
  0xc5   : > { %6155 = shalt.err (!%p6152_p11)
}
  0xc6   : > { %5532 = dma.hbm_to_vmem [thread:$0]  (!%p7350_p12), %s8499_s14, 16, %s7356_s1, [#allocation12]  }
  0xc7   : > { %s7000_s26 = smov [#allocation14]   ;;  %s7001_s22 = smov [#allocation17]  }
  0xc8   : > { %s1293_s18 = sshll.u32 %s7000_s26, 4  ;;  %s1317_s17 = sshll.u32 %s7001_s22, 4  ;;  %s1294_s18 = int_to_ptr.vmem [resolvable:$true] %s1293_s18  ;;  %s1318_s17 = int_to_ptr.vmem [resolvable:$true] %s1317_s17 }
  0xc9   : > { %s6156_s29 = scalar_lea.hbm %s7106_s30, 16 }
  0xca   : > { %p6157_p13 = scmp.ne.s32.totalorder %s7106_s30, %s6156_s29  ;;  %p6163_p3 = scmp.lt.u32.totalorder %s6156_s29, %s7106_s30 }
  0xcc   : > { %p6159_p1 = pnand %p6157_p13, %p7362_p0 }
  0xce   : > { %p6160_p2 = pneg %p6159_p1 }
  0xd0   : > { %p6165_p4 = pnand %p6163_p3, %p6160_p2 }
  0xd2   : > { %6168 = shalt.err (!%p6165_p4)
}
  0xd3   : > { %s6169_s7 = scalar_lea.vmem %s1294_s18, 16  ;;  %s6176_s1 = scalar_lea.vmem %s1294_s18, 32 }
  0xd4   : > { %p6170_p5 = scmp.ne.s32.totalorder %s1294_s18, %s6169_s7  ;;  %p6177_p10 = scmp.lt.s32.totalorder %s1294_s18, %s1294_s18 }
  0xd5   : > { %p6178_p7 = scmp.lt.s32.totalorder %s6176_s1, %s6169_s7 }
  0xd6   : > { %p6172_p6 = pnand %p6170_p5, %p7362_p0 }
  0xd7   : > { %p6179_p8 = por %p6178_p7, %p6177_p10 }
  0xd8   : > { %p6173_p9 = pneg %p6172_p6 }
  0xda   : > { %p6180_p11 = pnand %p6179_p8, %p6173_p9 }
  0xdc   : > { %6183 = shalt.err (!%p6180_p11)
}
  0xdd   : > { %5538 = dma.hbm_to_vmem [thread:$0]  (!%p7350_p12), %s7106_s30, 16, %s1294_s18, [#allocation15]  }
  0xde   : > { %s6184_s29 = scalar_lea.hbm %s8501_s12, 16 }
  0xdf   : > { %p6185_p13 = scmp.ne.s32.totalorder %s8501_s12, %s6184_s29  ;;  %p6191_p3 = scmp.lt.u32.totalorder %s6184_s29, %s8501_s12 }
  0xe1   : > { %p6187_p1 = pnand %p6185_p13, %p7362_p0 }
  0xe3   : > { %p6188_p2 = pneg %p6187_p1 }
  0xe5   : > { %p6193_p4 = pnand %p6191_p3, %p6188_p2 }
  0xe7   : > { %6196 = shalt.err (!%p6193_p4)
}
  0xe8   : > { %s6197_s23 = scalar_lea.vmem %s1318_s17, 16  ;;  %s6204_s26 = scalar_lea.vmem %s1318_s17, 32 }
  0xe9   : > { %p6198_p5 = scmp.ne.s32.totalorder %s1318_s17, %s6197_s23  ;;  %p6205_p10 = scmp.lt.s32.totalorder %s1318_s17, %s1318_s17 }
  0xea   : > { %p6206_p7 = scmp.lt.s32.totalorder %s6204_s26, %s6197_s23 }
  0xeb   : > { %p6200_p6 = pnand %p6198_p5, %p7362_p0 }
  0xec   : > { %p6207_p8 = por %p6206_p7, %p6205_p10 }
  0xed   : > { %p6201_p9 = pneg %p6200_p6 }
  0xef   : > { %p6208_p11 = pnand %p6207_p8, %p6201_p9 }
  0xf1   : > { %6211 = shalt.err (!%p6208_p11)
}
  0xf2   : > { %5544 = dma.hbm_to_vmem [thread:$0]  (!%p7350_p12), %s8501_s12, 16, %s1318_s17, [#allocation18]  }
  0xf3   : > { %s7002_s18 = smov [#allocation20]   ;;  %s7003_s7 = smov [#allocation23]  }
  0xf4   : > { %s1341_s22 = sshll.u32 %s7002_s18, 4  ;;  %s1365_s1 = sshll.u32 %s7003_s7, 4  ;;  %s1342_s22 = int_to_ptr.vmem [resolvable:$true] %s1341_s22  ;;  %s1366_s1 = int_to_ptr.vmem [resolvable:$true] %s1365_s1 }
  0xf5   : > { %s6212_s29 = scalar_lea.hbm %s7126_s27, 16 }
  0xf6   : > { %p6213_p13 = scmp.ne.s32.totalorder %s7126_s27, %s6212_s29  ;;  %p6219_p3 = scmp.lt.u32.totalorder %s6212_s29, %s7126_s27 }
  0xf8   : > { %p6215_p1 = pnand %p6213_p13, %p7362_p0 }
  0xfa   : > { %p6216_p2 = pneg %p6215_p1 }
  0xfc   : > { %p6221_p4 = pnand %p6219_p3, %p6216_p2 }
  0xfe   : > { %6224 = shalt.err (!%p6221_p4)
}
  0xff   : > { %s6225_s23 = scalar_lea.vmem %s1342_s22, 16  ;;  %s6232_s17 = scalar_lea.vmem %s1342_s22, 32 }
 0x100   : > { %p6226_p5 = scmp.ne.s32.totalorder %s1342_s22, %s6225_s23  ;;  %p6233_p10 = scmp.lt.s32.totalorder %s1342_s22, %s1342_s22 }
 0x101   : > { %p6234_p7 = scmp.lt.s32.totalorder %s6232_s17, %s6225_s23 }
 0x102   : > { %p6228_p6 = pnand %p6226_p5, %p7362_p0 }
 0x103   : > { %p6235_p8 = por %p6234_p7, %p6233_p10 }
 0x104   : > { %p6229_p9 = pneg %p6228_p6 }
 0x106   : > { %p6236_p11 = pnand %p6235_p8, %p6229_p9 }
 0x108   : > { %6239 = shalt.err (!%p6236_p11)
}
 0x109   : > { %5550 = dma.hbm_to_vmem [thread:$0]  (!%p7350_p12), %s7126_s27, 16, %s1342_s22, [#allocation21]  }
 0x10a   : > { %s6240_s26 = scalar_lea.hbm %s7136_s19, 16 }
 0x10b   : > { %p6241_p13 = scmp.ne.s32.totalorder %s7136_s19, %s6240_s26  ;;  %p6247_p3 = scmp.lt.u32.totalorder %s6240_s26, %s7136_s19 }
 0x10d   : > { %p6243_p1 = pnand %p6241_p13, %p7362_p0 }
 0x10f   : > { %p6244_p2 = pneg %p6243_p1 }
 0x111   : > { %p6249_p4 = pnand %p6247_p3, %p6244_p2 }
 0x113   : > { %6252 = shalt.err (!%p6249_p4)
}
 0x114   : > { %s6253_s18 = scalar_lea.vmem %s1366_s1, 16  ;;  %s6260_s7 = scalar_lea.vmem %s1366_s1, 32 }
 0x115   : > { %p6254_p5 = scmp.ne.s32.totalorder %s1366_s1, %s6253_s18  ;;  %p6261_p10 = scmp.lt.s32.totalorder %s1366_s1, %s1366_s1 }
 0x116   : > { %p6262_p7 = scmp.lt.s32.totalorder %s6260_s7, %s6253_s18 }
 0x117   : > { %p6256_p6 = pnand %p6254_p5, %p7362_p0 }
 0x118   : > { %p6263_p8 = por %p6262_p7, %p6261_p10 }
 0x119   : > { %p6257_p9 = pneg %p6256_p6 }
 0x11b   : > { %p6264_p11 = pnand %p6263_p8, %p6257_p9 }
 0x11d   : > { %6267 = shalt.err (!%p6264_p11)
}
 0x11e   : > { %5556 = dma.hbm_to_vmem [thread:$0]  (!%p7350_p12), %s7136_s19, 16, %s1366_s1, [#allocation24]  }
 0x11f   : > { %s7004_s22 = smov [#allocation26]   ;;  %s7005_s23 = smov [#allocation29]  }
 0x120   : > { %s1389_s29 = sshll.u32 %s7004_s22, 4  ;;  %s1419_s17 = sshll.u32 %s7005_s23, 4  ;;  %s1390_s29 = int_to_ptr.vmem [resolvable:$true] %s1389_s29  ;;  %s1420_s17 = int_to_ptr.vmem [resolvable:$true] %s1419_s17 }
 0x121   : > { %s6268_s26 = scalar_lea.hbm %s7146_s21, 16 }
 0x122   : > { %p6269_p13 = scmp.ne.s32.totalorder %s7146_s21, %s6268_s26  ;;  %p6275_p3 = scmp.lt.u32.totalorder %s6268_s26, %s7146_s21 }
 0x124   : > { %p6271_p1 = pnand %p6269_p13, %p7362_p0 }
 0x126   : > { %p6272_p2 = pneg %p6271_p1 }
 0x128   : > { %p6277_p4 = pnand %p6275_p3, %p6272_p2 }
 0x12a   : > { %6280 = shalt.err (!%p6277_p4)
}
 0x12b   : > { %s6281_s18 = scalar_lea.vmem %s1390_s29, 16  ;;  %s6288_s1 = scalar_lea.vmem %s1390_s29, 32 }
 0x12c   : > { %p6282_p5 = scmp.ne.s32.totalorder %s1390_s29, %s6281_s18  ;;  %p6289_p10 = scmp.lt.s32.totalorder %s1390_s29, %s1390_s29 }
 0x12d   : > { %p6290_p7 = scmp.lt.s32.totalorder %s6288_s1, %s6281_s18 }
 0x12e   : > { %p6284_p6 = pnand %p6282_p5, %p7362_p0 }
 0x12f   : > { %p6291_p8 = por %p6290_p7, %p6289_p10 }
 0x130   : > { %p6285_p9 = pneg %p6284_p6 }
 0x132   : > { %p6292_p11 = pnand %p6291_p8, %p6285_p9 }
 0x134   : > { %6295 = shalt.err (!%p6292_p11)
}
 0x135   : > { %5562 = dma.hbm_to_vmem [thread:$0]  (!%p7350_p12), %s7146_s21, 16, %s1390_s29, [#allocation27]  }
 0x136   : > { %s6296_s7 = scalar_lea.hbm %s8504_s4, 16 }
 0x137   : > { %p6297_p13 = scmp.ne.s32.totalorder %s8504_s4, %s6296_s7  ;;  %p6303_p3 = scmp.lt.u32.totalorder %s6296_s7, %s8504_s4 }
 0x139   : > { %p6299_p1 = pnand %p6297_p13, %p7362_p0 }
 0x13b   : > { %p6300_p2 = pneg %p6299_p1 }
 0x13d   : > { %p6305_p4 = pnand %p6303_p3, %p6300_p2 }
 0x13f   : > { %6308 = shalt.err (!%p6305_p4)
}
 0x140   : > { %s6309_s22 = scalar_lea.vmem %s1420_s17, 16  ;;  %s6316_s23 = scalar_lea.vmem %s1420_s17, 32 }
 0x141   : > { %p6310_p5 = scmp.ne.s32.totalorder %s1420_s17, %s6309_s22  ;;  %p6317_p10 = scmp.lt.s32.totalorder %s1420_s17, %s1420_s17 }
 0x142   : > { %p6318_p7 = scmp.lt.s32.totalorder %s6316_s23, %s6309_s22 }
 0x143   : > { %p6312_p6 = pnand %p6310_p5, %p7362_p0 }
 0x144   : > { %p6319_p8 = por %p6318_p7, %p6317_p10 }
 0x145   : > { %p6313_p9 = pneg %p6312_p6 }
 0x147   : > { %p6320_p11 = pnand %p6319_p8, %p6313_p9 }
 0x149   : > { %6323 = shalt.err (!%p6320_p11)
}
 0x14a   : > { %5568 = dma.hbm_to_vmem [thread:$0]  (!%p7350_p12), %s8504_s4, 16, %s1420_s17, [#allocation30]  }
 0x14b   : > { %s7006_s29 = smov [#allocation32]   ;;  %s7007_s18 = smov [#allocation35]  }
 0x14c   : > { %s1453_s26 = sshll.u32 %s7006_s29, 4  ;;  %s1481_s1 = sshll.u32 %s7007_s18, 4  ;;  %s1454_s26 = int_to_ptr.vmem [resolvable:$true] %s1453_s26  ;;  %s1482_s1 = int_to_ptr.vmem [resolvable:$true] %s1481_s1 }
 0x14d   : > { %s6324_s7 = scalar_lea.hbm %s8503_s5, 16 }
 0x14e   : > { %p6325_p13 = scmp.ne.s32.totalorder %s8503_s5, %s6324_s7  ;;  %p6331_p3 = scmp.lt.u32.totalorder %s6324_s7, %s8503_s5 }
 0x150   : > { %p6327_p1 = pnand %p6325_p13, %p7362_p0 }
 0x152   : > { %p6328_p2 = pneg %p6327_p1 }
 0x154   : > { %p6333_p4 = pnand %p6331_p3, %p6328_p2 }
 0x156   : > { %6336 = shalt.err (!%p6333_p4)
}
 0x157   : > { %s6337_s22 = scalar_lea.vmem %s1454_s26, 16  ;;  %s6344_s17 = scalar_lea.vmem %s1454_s26, 32 }
 0x158   : > { %p6338_p5 = scmp.ne.s32.totalorder %s1454_s26, %s6337_s22  ;;  %p6345_p10 = scmp.lt.s32.totalorder %s1454_s26, %s1454_s26 }
 0x159   : > { %p6346_p7 = scmp.lt.s32.totalorder %s6344_s17, %s6337_s22 }
 0x15a   : > { %p6340_p6 = pnand %p6338_p5, %p7362_p0 }
 0x15b   : > { %p6347_p8 = por %p6346_p7, %p6345_p10 }
 0x15c   : > { %p6341_p9 = pneg %p6340_p6 }
 0x15e   : > { %p6348_p11 = pnand %p6347_p8, %p6341_p9 }
 0x160   : > { %6351 = shalt.err (!%p6348_p11)
}
 0x161   : > { %5574 = dma.hbm_to_vmem [thread:$0]  (!%p7350_p12), %s8503_s5, 16, %s1454_s26, [#allocation33]  }
 0x162   : > { %s6352_s23 = scalar_lea.hbm %s8502_s6, 16 }
 0x163   : > { %p6353_p13 = scmp.ne.s32.totalorder %s8502_s6, %s6352_s23  ;;  %p6359_p3 = scmp.lt.u32.totalorder %s6352_s23, %s8502_s6 }
 0x165   : > { %p6355_p1 = pnand %p6353_p13, %p7362_p0 }
 0x167   : > { %p6356_p2 = pneg %p6355_p1 }
 0x169   : > { %p6361_p4 = pnand %p6359_p3, %p6356_p2 }
 0x16b   : > { %6364 = shalt.err (!%p6361_p4)
}
 0x16c   : > { %s6365_s29 = scalar_lea.vmem %s1482_s1, 16  ;;  %s6372_s18 = scalar_lea.vmem %s1482_s1, 32 }
 0x16d   : > { %p6366_p5 = scmp.ne.s32.totalorder %s1482_s1, %s6365_s29  ;;  %p6373_p10 = scmp.lt.s32.totalorder %s1482_s1, %s1482_s1 }
 0x16e   : > { %p6374_p7 = scmp.lt.s32.totalorder %s6372_s18, %s6365_s29 }
 0x16f   : > { %p6368_p6 = pnand %p6366_p5, %p7362_p0 }
 0x170   : > { %p6375_p8 = por %p6374_p7, %p6373_p10 }
 0x171   : > { %p6369_p9 = pneg %p6368_p6 }
 0x173   : > { %p6376_p11 = pnand %p6375_p8, %p6369_p9 }
 0x175   : > { %6379 = shalt.err (!%p6376_p11)
}
 0x176   : > { %5580 = dma.hbm_to_vmem [thread:$0]  (!%p7350_p12), %s8502_s6, 16, %s1482_s1, [#allocation36]  }
 0x177   : > { %s7008_s26 = smov [#allocation38]   ;;  %s7009_s22 = smov [#allocation41]  }
 0x178   : > { %s1515_s7 = sshll.u32 %s7008_s26, 4  ;;  %s1549_s17 = sshll.u32 %s7009_s22, 4  ;;  %s1516_s7 = int_to_ptr.vmem [resolvable:$true] %s1515_s7  ;;  %s1550_s17 = int_to_ptr.vmem [resolvable:$true] %s1549_s17 }
 0x179   : > { %s6380_s23 = scalar_lea.hbm %s7246_s20, 16 }
 0x17a   : > { %p6381_p13 = scmp.ne.s32.totalorder %s7246_s20, %s6380_s23  ;;  %p6387_p3 = scmp.lt.u32.totalorder %s6380_s23, %s7246_s20 }
 0x17c   : > { %p6383_p1 = pnand %p6381_p13, %p7362_p0 }
 0x17e   : > { %p6384_p2 = pneg %p6383_p1 }
 0x180   : > { %p6389_p4 = pnand %p6387_p3, %p6384_p2 }
 0x182   : > { %6392 = shalt.err (!%p6389_p4)
}
 0x183   : > { %s6393_s29 = scalar_lea.vmem %s1516_s7, 16  ;;  %s6400_s1 = scalar_lea.vmem %s1516_s7, 32 }
 0x184   : > { %p6394_p5 = scmp.ne.s32.totalorder %s1516_s7, %s6393_s29  ;;  %p6401_p10 = scmp.lt.s32.totalorder %s1516_s7, %s1516_s7 }
 0x185   : > { %p6402_p7 = scmp.lt.s32.totalorder %s6400_s1, %s6393_s29 }
 0x186   : > { %p6396_p6 = pnand %p6394_p5, %p7362_p0 }
 0x187   : > { %p6403_p8 = por %p6402_p7, %p6401_p10 }
 0x188   : > { %p6397_p9 = pneg %p6396_p6 }
 0x18a   : > { %p6404_p11 = pnand %p6403_p8, %p6397_p9 }
 0x18c   : > { %6407 = shalt.err (!%p6404_p11)
}
 0x18d   : > { %5586 = dma.hbm_to_vmem [thread:$0]  (!%p7350_p12), %s7246_s20, 16, %s1516_s7, [#allocation39]  }
 0x18e   : > { %s6408_s18 = scalar_lea.hbm %s7276_s24, 16 }
 0x18f   : > { %p6409_p13 = scmp.ne.s32.totalorder %s7276_s24, %s6408_s18  ;;  %p6415_p3 = scmp.lt.u32.totalorder %s6408_s18, %s7276_s24 }
 0x191   : > { %p6411_p1 = pnand %p6409_p13, %p7362_p0 }
 0x193   : > { %p6412_p2 = pneg %p6411_p1 }
 0x195   : > { %p6417_p4 = pnand %p6415_p3, %p6412_p2 }
 0x197   : > { %6420 = shalt.err (!%p6417_p4)
}
 0x198   : > { %s6421_s26 = scalar_lea.vmem %s1550_s17, 16  ;;  %s6428_s22 = scalar_lea.vmem %s1550_s17, 32 }
 0x199   : > { %p6422_p5 = scmp.ne.s32.totalorder %s1550_s17, %s6421_s26  ;;  %p6429_p10 = scmp.lt.s32.totalorder %s1550_s17, %s1550_s17 }
 0x19a   : > { %p6430_p7 = scmp.lt.s32.totalorder %s6428_s22, %s6421_s26 }
 0x19b   : > { %p6424_p6 = pnand %p6422_p5, %p7362_p0 }
 0x19c   : > { %p6431_p8 = por %p6430_p7, %p6429_p10 }
 0x19d   : > { %p6425_p9 = pneg %p6424_p6 }
 0x19f   : > { %p6432_p11 = pnand %p6431_p8, %p6425_p9 }
 0x1a1   : > { %6435 = shalt.err (!%p6432_p11)
}
 0x1a2   : > { %5592 = dma.hbm_to_vmem [thread:$0]  (!%p7350_p12), %s7276_s24, 16, %s1550_s17, [#allocation42]  }
 0x1a3   : > { %s7010_s7 = smov [#allocation2]   ;;  %s7011_s29 = smov [#allocation7]  }
 0x1a4   : > { %s1207_s23 = sshll.u32 %s7010_s7, 4  ;;  %s1232_s1 = sshll.u32 %s7011_s29, 4  ;;  %s1208_s23 = int_to_ptr.vmem [resolvable:$true] %s1207_s23  ;;  %s1233_s1 = int_to_ptr.vmem [resolvable:$true] %s1232_s1 }
 0x1a5   : > { %s6436_s18 = scalar_lea.hbm %s8500_s13, 16 }
 0x1a6   : > { %p6437_p13 = scmp.ne.s32.totalorder %s8500_s13, %s6436_s18  ;;  %p6443_p3 = scmp.lt.u32.totalorder %s6436_s18, %s8500_s13 }
 0x1a8   : > { %p6439_p1 = pnand %p6437_p13, %p7362_p0 }
 0x1aa   : > { %p6440_p2 = pneg %p6439_p1 }
 0x1ac   : > { %p6445_p4 = pnand %p6443_p3, %p6440_p2 }
 0x1ae   : > { %6448 = shalt.err (!%p6445_p4)
}
 0x1af   : > { %s6449_s26 = scalar_lea.vmem %s1208_s23, 16  ;;  %s6456_s17 = scalar_lea.vmem %s1208_s23, 32 }
 0x1b0   : > { %p6450_p5 = scmp.ne.s32.totalorder %s1208_s23, %s6449_s26  ;;  %p6457_p10 = scmp.lt.s32.totalorder %s1208_s23, %s1208_s23 }
 0x1b1   : > { %p6458_p7 = scmp.lt.s32.totalorder %s6456_s17, %s6449_s26 }
 0x1b2   : > { %p6452_p6 = pnand %p6450_p5, %p7362_p0 }
 0x1b3   : > { %p6459_p8 = por %p6458_p7, %p6457_p10 }
 0x1b4   : > { %p6453_p9 = pneg %p6452_p6 }
 0x1b6   : > { %p6460_p11 = pnand %p6459_p8, %p6453_p9 }
 0x1b8   : > { %6463 = shalt.err (!%p6460_p11)
}
 0x1b9   : > { %5517 = dma.hbm_to_vmem [thread:$0]  (!%p7350_p12), %s8500_s13, 16, %s1208_s23, [#allocation3]  }
 0x1ba   : > { %s6464_s22 = scalar_lea.hbm %s7071_s25, 16 }
 0x1bb   : > { %p6465_p13 = scmp.ne.s32.totalorder %s7071_s25, %s6464_s22  ;;  %p6471_p3 = scmp.lt.u32.totalorder %s6464_s22, %s7071_s25 }
 0x1bd   : > { %p6467_p1 = pnand %p6465_p13, %p7362_p0 }
 0x1bf   : > { %p6468_p2 = pneg %p6467_p1 }
 0x1c1   : > { %p6473_p4 = pnand %p6471_p3, %p6468_p2 }
 0x1c3   : > { %6476 = shalt.err (!%p6473_p4)
}
 0x1c4   : > { %s6477_s7 = scalar_lea.vmem %s1233_s1, 16  ;;  %s6484_s29 = scalar_lea.vmem %s1233_s1, 32 }
 0x1c5   : > { %p6478_p5 = scmp.ne.s32.totalorder %s1233_s1, %s6477_s7  ;;  %p6485_p10 = scmp.lt.s32.totalorder %s1233_s1, %s1233_s1 }
 0x1c6   : > { %p6486_p7 = scmp.lt.s32.totalorder %s6484_s29, %s6477_s7 }
 0x1c7   : > { %p6480_p6 = pnand %p6478_p5, %p7362_p0 }
 0x1c8   : > { %p6487_p8 = por %p6486_p7, %p6485_p10 }
 0x1c9   : > { %p6481_p9 = pneg %p6480_p6 }
 0x1cb   : > { %p6488_p11 = pnand %p6487_p8, %p6481_p9 }
 0x1cd   : > { %6491 = shalt.err (!%p6488_p11)
}
 0x1ce   : > { %s8517_s23 = sld [smem:[#allocation67_spill]]  ;;  %s7012_s18 = smov [#allocation10]  }
 0x1cf   : > { %5523 = dma.hbm_to_vmem [thread:$0]  (!%p7350_p12), %s7071_s25, 16, %s1233_s1, [#allocation6]  }
 0x1d0   : > { %s1257_s26 = sshll.u32 %s7012_s18, 4  ;;  %s7013_s17 = smov [#allocation13]   ;;  %s1258_s26 = int_to_ptr.vmem [resolvable:$true] %s1257_s26 }
 0x1d1   : > { %s1282_s22 = sshll.u32 %s7013_s17, 4  ;;  %s1283_s22 = int_to_ptr.vmem [resolvable:$true] %s1282_s22 }
 0x1d4   : > { %s6492_s4 = scalar_lea.hbm %s8517_s23, 16 }
 0x1d5   : > { %p6493_p13 = scmp.ne.s32.totalorder %s8517_s23, %s6492_s4  ;;  %p6499_p3 = scmp.lt.u32.totalorder %s6492_s4, %s8517_s23 }
 0x1d7   : > { %p6495_p1 = pnand %p6493_p13, %p7362_p0 }
 0x1d9   : > { %p6496_p2 = pneg %p6495_p1 }
 0x1db   : > { %p6501_p4 = pnand %p6499_p3, %p6496_p2 }
 0x1dd   : > { %6504 = shalt.err (!%p6501_p4)
}
 0x1de   : > { %s6505_s7 = scalar_lea.vmem %s1258_s26, 16  ;;  %s6512_s1 = scalar_lea.vmem %s1258_s26, 32 }
 0x1df   : > { %p6506_p5 = scmp.ne.s32.totalorder %s1258_s26, %s6505_s7  ;;  %p6513_p10 = scmp.lt.s32.totalorder %s1258_s26, %s1258_s26 }
 0x1e0   : > { %p6514_p7 = scmp.lt.s32.totalorder %s6512_s1, %s6505_s7 }
 0x1e1   : > { %p6508_p6 = pnand %p6506_p5, %p7362_p0 }
 0x1e2   : > { %p6515_p8 = por %p6514_p7, %p6513_p10 }
 0x1e3   : > { %p6509_p9 = pneg %p6508_p6 }
 0x1e5   : > { %p6516_p11 = pnand %p6515_p8, %p6509_p9 }
 0x1e7   : > { %6519 = shalt.err (!%p6516_p11)
}
 0x1e8   : > { %s8518_s29 = sld [smem:[#allocation70_spill]] }
 0x1e9   : > { %5529 = dma.hbm_to_vmem [thread:$0]  (!%p7350_p12), %s8517_s23, 16, %s1258_s26, [#allocation9]  }
 0x1ee   : > { %s6520_s4 = scalar_lea.hbm %s8518_s29, 16 }
 0x1ef   : > { %p6521_p13 = scmp.ne.s32.totalorder %s8518_s29, %s6520_s4  ;;  %p6527_p3 = scmp.lt.u32.totalorder %s6520_s4, %s8518_s29 }
 0x1f1   : > { %p6523_p1 = pnand %p6521_p13, %p7362_p0 }
 0x1f3   : > { %p6524_p2 = pneg %p6523_p1 }
 0x1f5   : > { %p6529_p4 = pnand %p6527_p3, %p6524_p2 }
 0x1f7   : > { %6532 = shalt.err (!%p6529_p4)
}
 0x1f8   : > { %s6533_s18 = scalar_lea.vmem %s1283_s22, 16  ;;  %s6540_s17 = scalar_lea.vmem %s1283_s22, 32 }
 0x1f9   : > { %p6534_p5 = scmp.ne.s32.totalorder %s1283_s22, %s6533_s18  ;;  %p6541_p10 = scmp.lt.s32.totalorder %s1283_s22, %s1283_s22 }
 0x1fa   : > { %p6542_p7 = scmp.lt.s32.totalorder %s6540_s17, %s6533_s18 }
 0x1fb   : > { %p6536_p6 = pnand %p6534_p5, %p7362_p0 }
 0x1fc   : > { %p6543_p8 = por %p6542_p7, %p6541_p10 }
 0x1fd   : > { %p6537_p9 = pneg %p6536_p6 }
 0x1ff   : > { %p6544_p11 = pnand %p6543_p8, %p6537_p9 }
 0x201   : > { %6547 = shalt.err (!%p6544_p11)
}
 0x202   : > { %s8519_s26 = sld [smem:[#allocation71_spill]]  ;;  %s7014_s7 = smov [#allocation16]  }
 0x203   : > { %5535 = dma.hbm_to_vmem [thread:$0]  (!%p7350_p12), %s8518_s29, 16, %s1283_s22, [#allocation12]  }
 0x204   : > { %s1303_s1 = sshll.u32 %s7014_s7, 4  ;;  %s1304_s1 = int_to_ptr.vmem [resolvable:$true] %s1303_s1 }
 0x208   : > { %s6548_s4 = scalar_lea.hbm %s8519_s26, 256 }
 0x209   : > { %p6549_p13 = scmp.ne.s32.totalorder %s8519_s26, %s6548_s4  ;;  %p6555_p3 = scmp.lt.u32.totalorder %s6548_s4, %s8519_s26 }
 0x20b   : > { %p6551_p1 = pnand %p6549_p13, %p7362_p0 }
 0x20d   : > { %p6552_p2 = pneg %p6551_p1 }
 0x20f   : > { %p6557_p4 = pnand %p6555_p3, %p6552_p2 }
 0x211   : > { %6560 = shalt.err (!%p6557_p4)
}
 0x212   : > { %s6561_s18 = scalar_lea.vmem %s1304_s1, 256  ;;  %p6569_p10 = scmp.lt.s32.totalorder %s1304_s1, %s1304_s1 }
 0x213   : > { %p6562_p5 = scmp.ne.s32.totalorder %s1304_s1, %s6561_s18  ;;  %p6570_p7 = scmp.lt.s32.totalorder %s6561_s18, %s6561_s18 }
 0x215   : > { %p6564_p6 = pnand %p6562_p5, %p7362_p0  ;;  %p6571_p8 = por %p6570_p7, %p6569_p10 }
 0x217   : > { %p6565_p9 = pneg %p6564_p6 }
 0x219   : > { %p6572_p11 = pnand %p6571_p8, %p6565_p9 }
 0x21b   : > { %6575 = shalt.err (!%p6572_p11)
}
 0x21c   : > { %s7015_s22 = smov 64   ;;  %s8520_s17 = sld [smem:[#allocation73_spill]] }
 0x21d   : > { %s7016_s7 = smov 4   ;;  %s7017_s4 = smov [#allocation19]  }
 0x21e   : > { %5541 = dma.hbm_to_vmem [thread:$0]  (!%p7350_p12), %s8519_s26, 256, %s1304_s1, [#allocation15], %s7015_s22, %s7015_s22, %s7016_s7  }
 0x21f   : > { %s1327_s5 = sshll.u32 %s7017_s4, 4  ;;  %s7018_s6 = smov [#allocation22]   ;;  %s1328_s5 = int_to_ptr.vmem [resolvable:$true] %s1327_s5 }
 0x220   : > { %s1351_s18 = sshll.u32 %s7018_s6, 4  ;;  %s7559_s18 = int_to_ptr.vmem [resolvable:$true] %s1351_s18 }
 0x222   : > { %s6576_s12 = scalar_lea.hbm %s8520_s17, 256 }
 0x223   : > { %p6577_p13 = scmp.ne.s32.totalorder %s8520_s17, %s6576_s12  ;;  %p6583_p3 = scmp.lt.u32.totalorder %s6576_s12, %s8520_s17 }
 0x225   : > { %p6579_p1 = pnand %p6577_p13, %p7362_p0 }
 0x227   : > { %p6580_p2 = pneg %p6579_p1 }
 0x229   : > { %p6585_p4 = pnand %p6583_p3, %p6580_p2 }
 0x22b   : > { %6588 = shalt.err (!%p6585_p4)
}
 0x22c   : > { %s6589_s13 = scalar_lea.vmem %s1328_s5, 256  ;;  %p6597_p10 = scmp.lt.s32.totalorder %s1328_s5, %s1328_s5 }
 0x22d   : > { %p6590_p5 = scmp.ne.s32.totalorder %s1328_s5, %s6589_s13  ;;  %p6598_p7 = scmp.lt.s32.totalorder %s6589_s13, %s6589_s13 }
 0x22f   : > { %p6592_p6 = pnand %p6590_p5, %p7362_p0  ;;  %p6599_p8 = por %p6598_p7, %p6597_p10 }
 0x231   : > { %p6593_p9 = pneg %p6592_p6 }
 0x233   : > { %p6600_p11 = pnand %p6599_p8, %p6593_p9 }
 0x235   : > { %6603 = shalt.err (!%p6600_p11)
}
 0x236   : > { %s8521_s6 = sld [smem:[#allocation74_spill]] }
 0x237   : > { %5547 = dma.hbm_to_vmem [thread:$0]  (!%p7350_p12), %s8520_s17, 256, %s1328_s5, [#allocation18], %s7015_s22, %s7015_s22, %s7016_s7  }
 0x23c   : > { %s6604_s12 = scalar_lea.hbm %s8521_s6, 256 }
 0x23d   : > { %p6605_p13 = scmp.ne.s32.totalorder %s8521_s6, %s6604_s12  ;;  %p6611_p3 = scmp.lt.u32.totalorder %s6604_s12, %s8521_s6 }
 0x23f   : > { %p6607_p1 = pnand %p6605_p13, %p7362_p0 }
 0x241   : > { %p6608_p2 = pneg %p6607_p1 }
 0x243   : > { %p6613_p4 = pnand %p6611_p3, %p6608_p2 }
 0x245   : > { %6616 = shalt.err (!%p6613_p4)
}
 0x246   : > { %s6617_s13 = scalar_lea.vmem %s7559_s18, 256  ;;  %p6625_p10 = scmp.lt.s32.totalorder %s7559_s18, %s7559_s18 }
 0x247   : > { %p6618_p5 = scmp.ne.s32.totalorder %s7559_s18, %s6617_s13  ;;  %p6626_p7 = scmp.lt.s32.totalorder %s6617_s13, %s6617_s13 }
 0x249   : > { %p6620_p6 = pnand %p6618_p5, %p7362_p0  ;;  %p6627_p8 = por %p6626_p7, %p6625_p10 }
 0x24b   : > { %p6621_p9 = pneg %p6620_p6 }
 0x24d   : > { %p6628_p11 = pnand %p6627_p8, %p6621_p9 }
 0x24f   : > { %6631 = shalt.err (!%p6628_p11)
}
 0x250   : > { %s8522_s5 = sld [smem:[#allocation75_spill]]  ;;  %s7019_s1 = smov [#allocation25]  }
 0x251   : > { %5553 = dma.hbm_to_vmem [thread:$0]  (!%p7350_p12), %s8521_s6, 256, %s7559_s18, [#allocation21], %s7015_s22, %s7015_s22, %s7016_s7  }
 0x252   : > { %s1375_s4 = sshll.u32 %s7019_s1, 4  ;;  %s7020_s12 = smov [#allocation28]   ;;  %s1376_s4 = int_to_ptr.vmem [resolvable:$true] %s1375_s4 }
 0x253   : > { %s1405_s14 = sshll.u32 %s7020_s12, 4  ;;  %s7592_s14 = int_to_ptr.vmem [resolvable:$true] %s1405_s14 }
 0x256   : > { %s6632_s13 = scalar_lea.hbm %s8522_s5, 256 }
 0x257   : > { %p6633_p13 = scmp.ne.s32.totalorder %s8522_s5, %s6632_s13  ;;  %p6639_p3 = scmp.lt.u32.totalorder %s6632_s13, %s8522_s5 }
 0x259   : > { %p6635_p1 = pnand %p6633_p13, %p7362_p0 }
 0x25b   : > { %p6636_p2 = pneg %p6635_p1 }
 0x25d   : > { %p6641_p4 = pnand %p6639_p3, %p6636_p2 }
 0x25f   : > { %6644 = shalt.err (!%p6641_p4)
}
 0x260   : > { %s6645_s17 = scalar_lea.vmem %s1376_s4, 256  ;;  %p6653_p10 = scmp.lt.s32.totalorder %s1376_s4, %s1376_s4 }
 0x261   : > { %p6646_p5 = scmp.ne.s32.totalorder %s1376_s4, %s6645_s17  ;;  %p6654_p7 = scmp.lt.s32.totalorder %s6645_s17, %s6645_s17 }
 0x263   : > { %p6648_p6 = pnand %p6646_p5, %p7362_p0  ;;  %p6655_p8 = por %p6654_p7, %p6653_p10 }
 0x265   : > { %p6649_p9 = pneg %p6648_p6 }
 0x267   : > { %p6656_p11 = pnand %p6655_p8, %p6649_p9 }
 0x269   : > { %6659 = shalt.err (!%p6656_p11)
}
 0x26a   : > { %s8523_s18 = sld [smem:[#allocation78_spill]] }
 0x26b   : > { %5559 = dma.hbm_to_vmem [thread:$0]  (!%p7350_p12), %s8522_s5, 256, %s1376_s4, [#allocation24], %s7015_s22, %s7015_s22, %s7016_s7  }
 0x270   : > { %s6660_s1 = scalar_lea.hbm %s8523_s18, 256 }
 0x271   : > { %p6661_p13 = scmp.ne.s32.totalorder %s8523_s18, %s6660_s1  ;;  %p6667_p3 = scmp.lt.u32.totalorder %s6660_s1, %s8523_s18 }
 0x273   : > { %p6663_p1 = pnand %p6661_p13, %p7362_p0 }
 0x275   : > { %p6664_p2 = pneg %p6663_p1 }
 0x277   : > { %p6669_p4 = pnand %p6667_p3, %p6664_p2 }
 0x279   : > { %6672 = shalt.err (!%p6669_p4)
}
 0x27a   : > { %s6673_s17 = scalar_lea.vmem %s7592_s14, 256  ;;  %p6681_p10 = scmp.lt.s32.totalorder %s7592_s14, %s7592_s14 }
 0x27b   : > { %p6674_p5 = scmp.ne.s32.totalorder %s7592_s14, %s6673_s17  ;;  %p6682_p7 = scmp.lt.s32.totalorder %s6673_s17, %s6673_s17 }
 0x27d   : > { %p6676_p6 = pnand %p6674_p5, %p7362_p0  ;;  %p6683_p8 = por %p6682_p7, %p6681_p10 }
 0x27f   : > { %p6677_p9 = pneg %p6676_p6 }
 0x281   : > { %p6684_p11 = pnand %p6683_p8, %p6677_p9 }
 0x283   : > { %6687 = shalt.err (!%p6684_p11)
}
 0x284   : > { %s8524_s4 = sld [smem:[#allocation81_spill]]  ;;  %s7021_s12 = smov [#allocation31]  }
 0x285   : > { %5565 = dma.hbm_to_vmem [thread:$0]  (!%p7350_p12), %s8523_s18, 256, %s7592_s14, [#allocation27], %s7015_s22, %s7015_s22, %s7016_s7  }
 0x286   : > { %s1433_s13 = sshll.u32 %s7021_s12, 4  ;;  %s7022_s1 = smov [#allocation34]   ;;  %s1434_s13 = int_to_ptr.vmem [resolvable:$true] %s1433_s13 }
 0x287   : > { %s1467_s5 = sshll.u32 %s7022_s1, 4  ;;  %s7625_s5 = int_to_ptr.vmem [resolvable:$true] %s1467_s5 }
 0x28a   : > { %s6688_s17 = scalar_lea.hbm %s8524_s4, 16 }
 0x28b   : > { %p6689_p13 = scmp.ne.s32.totalorder %s8524_s4, %s6688_s17  ;;  %p6695_p3 = scmp.lt.u32.totalorder %s6688_s17, %s8524_s4 }
 0x28d   : > { %p6691_p1 = pnand %p6689_p13, %p7362_p0 }
 0x28f   : > { %p6692_p2 = pneg %p6691_p1 }
 0x291   : > { %p6697_p4 = pnand %p6695_p3, %p6692_p2 }
 0x293   : > { %6700 = shalt.err (!%p6697_p4)
}
 0x294   : > { %s6701_s6 = scalar_lea.vmem %s1434_s13, 16  ;;  %s6708_s14 = scalar_lea.vmem %s1434_s13, 32 }
 0x295   : > { %p6702_p5 = scmp.ne.s32.totalorder %s1434_s13, %s6701_s6  ;;  %p6709_p10 = scmp.lt.s32.totalorder %s1434_s13, %s1434_s13 }
 0x296   : > { %p6710_p7 = scmp.lt.s32.totalorder %s6708_s14, %s6701_s6 }
 0x297   : > { %p6704_p6 = pnand %p6702_p5, %p7362_p0 }
 0x298   : > { %p6711_p8 = por %p6710_p7, %p6709_p10 }
 0x299   : > { %p6705_p9 = pneg %p6704_p6 }
 0x29b   : > { %p6712_p11 = pnand %p6711_p8, %p6705_p9 }
 0x29d   : > { %6715 = shalt.err (!%p6712_p11)
}
 0x29e   : > { %s8525_s22 = sld [smem:[#allocation87_spill]] }
 0x29f   : > { %5571 = dma.hbm_to_vmem [thread:$0]  (!%p7350_p12), %s8524_s4, 16, %s1434_s13, [#allocation30]  }
 0x2a4   : > { %s6716_s7 = scalar_lea.hbm %s8525_s22, 16 }
 0x2a5   : > { %p6717_p13 = scmp.ne.s32.totalorder %s8525_s22, %s6716_s7  ;;  %p6723_p3 = scmp.lt.u32.totalorder %s6716_s7, %s8525_s22 }
 0x2a7   : > { %p6719_p1 = pnand %p6717_p13, %p7362_p0 }
 0x2a9   : > { %p6720_p2 = pneg %p6719_p1 }
 0x2ab   : > { %p6725_p4 = pnand %p6723_p3, %p6720_p2 }
 0x2ad   : > { %6728 = shalt.err (!%p6725_p4)
}
 0x2ae   : > { %s6729_s6 = scalar_lea.vmem %s7625_s5, 16  ;;  %s6736_s12 = scalar_lea.vmem %s7625_s5, 32 }
 0x2af   : > { %p6730_p5 = scmp.ne.s32.totalorder %s7625_s5, %s6729_s6  ;;  %p6737_p10 = scmp.lt.s32.totalorder %s7625_s5, %s7625_s5 }
 0x2b0   : > { %p6738_p7 = scmp.lt.s32.totalorder %s6736_s12, %s6729_s6 }
 0x2b1   : > { %p6732_p6 = pnand %p6730_p5, %p7362_p0 }
 0x2b2   : > { %p6739_p8 = por %p6738_p7, %p6737_p10 }
 0x2b3   : > { %p6733_p9 = pneg %p6732_p6 }
 0x2b5   : > { %p6740_p11 = pnand %p6739_p8, %p6733_p9 }
 0x2b7   : > { %6743 = shalt.err (!%p6740_p11)
}
 0x2b8   : > { %s8526_s13 = sld [smem:[#allocation91_spill]]  ;;  %s7023_s1 = smov [#allocation37]  }
 0x2b9   : > { %5577 = dma.hbm_to_vmem [thread:$0]  (!%p7350_p12), %s8525_s22, 16, %s7625_s5, [#allocation33]  }
 0x2ba   : > { %s1495_s17 = sshll.u32 %s7023_s1, 4  ;;  %s7024_s14 = smov [#allocation40]   ;;  %s1496_s17 = int_to_ptr.vmem [resolvable:$true] %s1495_s17 }
 0x2bb   : > { %s1529_s7 = sshll.u32 %s7024_s14, 4  ;;  %s7653_s7 = int_to_ptr.vmem [resolvable:$true] %s1529_s7 }
 0x2be   : > { %s6744_s6 = scalar_lea.hbm %s8526_s13, 16 }
 0x2bf   : > { %p6745_p13 = scmp.ne.s32.totalorder %s8526_s13, %s6744_s6  ;;  %p6751_p3 = scmp.lt.u32.totalorder %s6744_s6, %s8526_s13 }
 0x2c1   : > { %p6747_p1 = pnand %p6745_p13, %p7362_p0 }
 0x2c3   : > { %p6748_p2 = pneg %p6747_p1 }
 0x2c5   : > { %p6753_p4 = pnand %p6751_p3, %p6748_p2 }
 0x2c7   : > { %6756 = shalt.err (!%p6753_p4)
}
 0x2c8   : > { %s6757_s12 = scalar_lea.vmem %s1496_s17, 16  ;;  %s6764_s5 = scalar_lea.vmem %s1496_s17, 32 }
 0x2c9   : > { %p6758_p5 = scmp.ne.s32.totalorder %s1496_s17, %s6757_s12  ;;  %p6765_p10 = scmp.lt.s32.totalorder %s1496_s17, %s1496_s17 }
 0x2ca   : > { %p6766_p7 = scmp.lt.s32.totalorder %s6764_s5, %s6757_s12 }
 0x2cb   : > { %p6760_p6 = pnand %p6758_p5, %p7362_p0 }
 0x2cc   : > { %p6767_p8 = por %p6766_p7, %p6765_p10 }
 0x2cd   : > { %p6761_p9 = pneg %p6760_p6 }
 0x2cf   : > { %p6768_p11 = pnand %p6767_p8, %p6761_p9 }
 0x2d1   : > { %6771 = shalt.err (!%p6768_p11)
}
 0x2d2   : > { %s8527_s1 = sld [smem:[#allocation96_spill]] }
 0x2d3   : > { %5583 = dma.hbm_to_vmem [thread:$0]  (!%p7350_p12), %s8526_s13, 16, %s1496_s17, [#allocation36]  }
 0x2d8   : > { %s6772_s14 = scalar_lea.hbm %s8527_s1, 16 }
 0x2d9   : > { %p6773_p13 = scmp.ne.s32.totalorder %s8527_s1, %s6772_s14  ;;  %p6779_p3 = scmp.lt.u32.totalorder %s6772_s14, %s8527_s1 }
 0x2db   : > { %p6775_p1 = pnand %p6773_p13, %p7362_p0 }
 0x2dd   : > { %p6776_p2 = pneg %p6775_p1 }
 0x2df   : > { %p6781_p4 = pnand %p6779_p3, %p6776_p2 }
 0x2e1   : > { %6784 = shalt.err (!%p6781_p4)
}
 0x2e2   : > { %s6785_s6 = scalar_lea.vmem %s7653_s7, 16  ;;  %s6792_s12 = scalar_lea.vmem %s7653_s7, 32 }
 0x2e3   : > { %p6786_p5 = scmp.ne.s32.totalorder %s7653_s7, %s6785_s6  ;;  %p6793_p10 = scmp.lt.s32.totalorder %s7653_s7, %s7653_s7 }
 0x2e4   : > { %p6794_p7 = scmp.lt.s32.totalorder %s6792_s12, %s6785_s6 }
 0x2e5   : > { %p6788_p6 = pnand %p6786_p5, %p7362_p0 }
 0x2e6   : > { %p6795_p8 = por %p6794_p7, %p6793_p10 }
 0x2e7   : > { %p6789_p9 = pneg %p6788_p6 }
 0x2e9   : > { %p6796_p11 = pnand %p6795_p8, %p6789_p9 }
 0x2eb   : > { %6799 = shalt.err (!%p6796_p11)
}
 0x2ec   : > { %5589 = dma.hbm_to_vmem [thread:$0]  (!%p7350_p12), %s8527_s1, 16, %s7653_s7, [#allocation39]  }
 0x2ed   : > { %s7025_s17 = smov [#allocation43]   ;;  %s6800_s14 = scalar_lea.hbm %s8497_s8, 16 }
 0x2ee   : > { %s1563_s5 = sshll.u32 %s7025_s17, 4  ;;  %p6801_p13 = scmp.ne.s32.totalorder %s8497_s8, %s6800_s14  ;;  %s1564_s5 = int_to_ptr.vmem [resolvable:$true] %s1563_s5 }
 0x2ef   : > { %p6807_p3 = scmp.lt.u32.totalorder %s6800_s14, %s8497_s8 }
 0x2f0   : > { %p6803_p1 = pnand %p6801_p13, %p7362_p0 }
 0x2f2   : > { %p6804_p2 = pneg %p6803_p1 }
 0x2f4   : > { %p6809_p4 = pnand %p6807_p3, %p6804_p2 }
 0x2f6   : > { %6812 = shalt.err (!%p6809_p4)
}
 0x2f7   : > { %s6813_s6 = scalar_lea.vmem %s1564_s5, 16  ;;  %s6820_s12 = scalar_lea.vmem %s1564_s5, 32 }
 0x2f8   : > { %p6814_p5 = scmp.ne.s32.totalorder %s1564_s5, %s6813_s6  ;;  %p6821_p10 = scmp.lt.s32.totalorder %s1564_s5, %s1564_s5 }
 0x2f9   : > { %p6822_p7 = scmp.lt.s32.totalorder %s6820_s12, %s6813_s6 }
 0x2fa   : > { %p6816_p6 = pnand %p6814_p5, %p7362_p0 }
 0x2fb   : > { %p6823_p8 = por %p6822_p7, %p6821_p10 }
 0x2fc   : > { %p6817_p9 = pneg %p6816_p6 }
 0x2fe   : > { %p6824_p11 = pnand %p6823_p8, %p6817_p9 }
 0x300   : > { %6827 = shalt.err (!%p6824_p11)
}
 0x301   : > { %5595 = dma.hbm_to_vmem [thread:$0]  (!%p7350_p12), %s8497_s8, 16, %s1564_s5, [#allocation42]  }
 0x302   : > { %p8528_p13 = scmp.ne.s32.totalorder %s8514_s2, 0 }
 0x303   : > { %p8529_p1 = scmp.eq.s32.totalorder (!%p8528_p13), %s7314_s15, 0 }
 0x304   : > { %1584 = sbr.rel (%p8528_p13) target bundleno = 7817 (0x1e89), region = 216 }
 0x30b   : > { %6873 = dma.done.wait (%p8529_p1), [#allocation3], 16   ;;  %p8530_p2 = pmov %p8529_p1 }
 0x30c   : > { %p8531_p0 = pmov %p8529_p1 }
 0x30d   : > { %6875 = vsyncadd (%p8530_p2), [#allocation3], 4294967280 }
 0x30e   : > { %6877 = dma.done.wait (%p8531_p0), [#allocation6], 32   ;;  %p8532_p3 = pmov %p8531_p0 }
 0x30f   : > { %p8533_p4 = pmov %p8531_p0 }
 0x310   : > { %6879 = vsyncadd (%p8532_p3), [#allocation6], 4294967264 }
 0x311   : > { %6881 = dma.done.wait (%p8533_p4), [#allocation9], 32   ;;  %p8534_p12 = pmov %p8531_p0 }
 0x312   : > { %p8535_p5 = pmov %p8531_p0 }
 0x313   : > { %6883 = vsyncadd (%p8534_p12), [#allocation9], 4294967264 }
 0x314   : > { %6885 = dma.done.wait (%p8535_p5), [#allocation12], 32   ;;  %p8536_p6 = pmov %p8531_p0 }
 0x315   : > { %p8537_p9 = pmov %p8531_p0 }
 0x316   : > { %6887 = vsyncadd (%p8536_p6), [#allocation12], 4294967264 }
 0x317   : > { %6889 = dma.done.wait (%p8537_p9), [#allocation15], 272   ;;  %p8538_p10 = pmov %p8531_p0 }
 0x318   : > { %p8539_p7 = pmov %p8531_p0 }
 0x319   : > { %6891 = vsyncadd (%p8538_p10), [#allocation15], 4294967024 }
 0x31a   : > { %6893 = dma.done.wait (%p8539_p7), [#allocation18], 272   ;;  %p8540_p8 = pmov %p8531_p0 }
 0x31b   : > { %p8541_p11 = pmov %p8531_p0 }
 0x31c   : > { %6895 = vsyncadd (%p8540_p8), [#allocation18], 4294967024 }
 0x31d   : > { %6897 = dma.done.wait (%p8541_p11), [#allocation21], 272   ;;  %p8542_p13 = pmov %p8531_p0 }
 0x31e   : > { %p8543_p1 = pmov %p8531_p0 }
 0x31f   : > { %6899 = vsyncadd (%p8542_p13), [#allocation21], 4294967024 }
 0x320   : > { %6901 = dma.done.wait (%p8543_p1), [#allocation24], 272   ;;  %p8544_p2 = pmov %p8531_p0 }
 0x322   : > { %6903 = vsyncadd (%p8544_p2), [#allocation24], 4294967024 }
 0x323   : > { %6905 = dma.done.wait (%p8531_p0), [#allocation27], 272   ;;  %p8545_p3 = pmov %p8531_p0 }
 0x324   : > { %p8546_p4 = pmov %p8531_p0 }
 0x325   : > { %6907 = vsyncadd (%p8545_p3), [#allocation27], 4294967024 }
 0x326   : > { %6909 = dma.done.wait (%p8546_p4), [#allocation30], 32   ;;  %p8547_p12 = pmov %p8531_p0 }
 0x327   : > { %p8548_p5 = pmov %p8531_p0 }
 0x328   : > { %6911 = vsyncadd (%p8547_p12), [#allocation30], 4294967264 }
 0x329   : > { %6913 = dma.done.wait (%p8548_p5), [#allocation33], 32   ;;  %p8549_p6 = pmov %p8531_p0 }
 0x32a   : > { %p8550_p9 = pmov %p8531_p0 }
 0x32b   : > { %6915 = vsyncadd (%p8549_p6), [#allocation33], 4294967264 }
 0x32c   : > { %6917 = dma.done.wait (%p8550_p9), [#allocation36], 32   ;;  %p8551_p10 = pmov %p8531_p0 }
 0x32d   : > { %p8552_p7 = pmov %p8531_p0 }
 0x32e   : > { %6919 = vsyncadd (%p8551_p10), [#allocation36], 4294967264 }
 0x32f   : > { %6921 = dma.done.wait (%p8552_p7), [#allocation39], 32   ;;  %p8553_p8 = pmov %p8531_p0 }
 0x330   : > { %p8554_p11 = pmov %p8531_p0 }
 0x331   : > { %6923 = vsyncadd (%p8553_p8), [#allocation39], 4294967264 }
 0x332   : > { %6925 = dma.done.wait (%p8554_p11), [#allocation42], 32   ;;  %p8555_p13 = pmov %p8531_p0 }
 0x333   : > { %s8556_s10 = sld [smem:[#allocation60_spill]]  ;;  %p1803_p1 = scmp.lt.s32.totalorder %s7314_s15, 1  ;;  %vm1825_vm0 = vcmask 1041408   ;;  %vm1896_vm1 = vcmask 1045504   ;;  %vm1854_vm2 = vcmask 1046528   ;;  %vm8442_vm3 = vcmask 1044480  }
 0x334   : > { %6927 = vsyncadd (%p8555_p13), [#allocation42], 4294967264  ;;  %s8557_s17 = sld [smem:[#allocation61_spill]]  ;;  %vm8441_vm4 = vcmask 1043456   ;;  %s7026_s5 = smov 16   ;;  %vm2022_vm5 = vcmask 64512  }
 0x335   : > { %s1804_s2 = scalar_select %p1803_p1, %s7314_s15, 1  ;;  %vm8440_vm6 = vcmask 130048   ;;  %vm2040_vm7 = vcmask 195584   ;;  %vm8439_vm8 = vcmask 261120   ;;  %vm2082_vm9 = vcmask 326656  }
 0x336   : > { %s7027_s14 = smov 8   ;;  %s7028_s6 = smov 24  }
 0x337   : > { %s5118_s16 = sshll.u32 %s1804_s2, 6  ;;  %s7029_s12 = smov 32  }
 0x338   : > { %s8620_s1 = sld [smem:[#allocation83_spill]]  ;;  %s8635_s4 = sld [smem:[#allocation95_spill]] }
 0x339   : > { %s7752_s7 = scalar_lea.vmem %s8556_s10, %s5118_s16  ;;  %s8558_s10 = sld [smem:[#allocation64_spill]] }
 0x33a   : > { %v1809_v0 = vld [vmem:[%s7752_s7] sm:$0xff]  ;;  %v1810_v1 = vld [vmem:[%s7752_s7 + $0x8] sm:$0xff]  ;;  %v1811_v2 = vld [vmem:[%s7752_s7 + $0x10] sm:$0xff]  ;;  %s7031_s16 = smov 48   ;;  %p8645_p0 = scmp.ne.s32.totalorder %s8511_s28, 0 }
 0x33b   : > { %v1826_v3 = vrot.slane %v1809_v0, 6  ;;  %v1827_v4 = vrot.slane %v1810_v1, 6  ;;  %v1829_v5 = vrot.slane %v1811_v2, 6  ;;  %v1812_v6 = vld [vmem:[%s7752_s7 + $0x18] sm:$0xff]  ;;  %v7759_v7 = vld [vmem:[%s7752_s7 + $0x20] sm:$0xff]  ;;  %v7762_v8 = vld [vmem:[%s7752_s7 + $0x28] sm:$0xff] }
 0x33c   : > { %v1831_v9 = vrot.slane %v1812_v6, 6  ;;  %v1833_v10 = vrot.slane %v7759_v7, 6  ;;  %v7766_v11 = vld [vmem:[%s7752_s7 + $0x30] sm:$0xff]  ;;  %v1835_v12 = vrot.slane %v7762_v8, 6  ;;  %v5951_v13 = vld [vmem:[%s8557_s17] sm:$0xff]   ;;  %v5952_v26 = vld [vmem:[%s8557_s17 + $0x8] sm:$0xff]  }
 0x33d   : > { %v7771_v14 = vsel %vm1825_vm0, %v1826_v3, %v1827_v4  ;;  %v7774_v15 = vsel %vm1825_vm0, %v1827_v4, %v1829_v5  ;;  %v7777_v16 = vsel %vm1825_vm0, 0.0, %v1826_v3  ;;  %v1837_v17 = vrot.slane %v7766_v11, 6  ;;  %5201 = vmatprep.subr.bf16.mxu0 %v5951_v13  ;;  %v7812_v43 = vld [vmem:[%s8557_s17 + $0x10] ss:$0 sps:$4 sm:$0xff]   ;;  %v1816_v48 = vld [vmem:[%s7752_s7 + $0x38] sm:$0xff]  ;;  %s7032_s7 = smov 64  }
 0x33e   : > { %v1897_v18 = vrot.slane %v7777_v16, 2  ;;  %v1898_v19 = vrot.slane %v7771_v14, 2  ;;  %v1900_v20 = vrot.slane %v7774_v15, 2  ;;  %v1855_v21 = vrot.slane %v7777_v16, 1  ;;  %5202 = vmatpush3.bf16.msra.mxu0 %v5951_v13 }
 0x33f   : > { %v1856_v22 = vrot.slane %v7771_v14, 1  ;;  %v1858_v23 = vrot.slane %v7774_v15, 1  ;;  %v7787_v24 = vsel %vm1825_vm0, %v1829_v5, %v1831_v9  ;;  %v7792_v25 = vsel %vm1825_vm0, %v1831_v9, %v1833_v10  ;;  %5203 = vmatprep.subr.bf16.mxu0 %v5952_v26  ;;  %s8559_s2 = smov %s8558_s10 }
 0x340   : > { %v1899_v27 = vsel %vm1896_vm1, %v1897_v18, %v1898_v19  ;;  %v1901_v28 = vsel %vm1896_vm1, %v1898_v19, %v1900_v20  ;;  %v1902_v29 = vrot.slane %v7787_v24, 2  ;;  %v1904_v30 = vrot.slane %v7792_v25, 2 }
 0x341   : > { %v5786_v31 = vpack.i.bf16 %v1901_v28, %v1899_v27  ;;  %v1857_v32 = vsel %vm1854_vm2, %v1855_v21, %v1856_v22  ;;  %v1859_v33 = vsel %vm1854_vm2, %v1856_v22, %v1858_v23  ;;  %v1860_v34 = vrot.slane %v7787_v24, 1 }
 0x342   : > { %v5776_v35 = vpack.i.bf16 %v1859_v33, %v1857_v32  ;;  %v1903_v36 = vsel %vm1896_vm1, %v1900_v20, %v1902_v29  ;;  %v1905_v37 = vsel %vm1896_vm1, %v1902_v29, %v1904_v30  ;;  %v1862_v38 = vrot.slane %v7792_v25, 1  ;;  %5204 = vmatpush3.bf16.msra.mxu0 %v5952_v26 }
 0x343   : > { %5787 = vrot.lane.b32.xlu1 %v5786_v31, %s7026_s5  ;;  %v5791_v39 = vpack.i.bf16 %v1905_v37, %v1903_v36  ;;  %v1861_v40 = vsel %vm1854_vm2, %v1858_v23, %v1860_v34  ;;  %v1942_v41 = vrot.slane %v7774_v15, 3  ;;  %v1944_v42 = vrot.slane %v7787_v24, 3  ;;  %5403 = vmatprep.subr.msk.bf16.mxu0 %vm8441_vm4, %v7812_v43 }
 0x344   : > { %5777 = vrot.lane.b32.xlu0 %v5776_v35, %s7027_s14  ;;  %v1863_v44 = vsel %vm1854_vm2, %v1860_v34, %v1862_v38  ;;  %v1946_v45 = vrot.slane %v7792_v25, 3  ;;  %v1939_v46 = vrot.slane %v7777_v16, 3  ;;  %v1940_v47 = vrot.slane %v7771_v14, 3 }
 0x345   : > { %v5781_v49 = vpack.i.bf16 %v1863_v44, %v1861_v40  ;;  %v1945_v50 = vsel %vm8442_vm3, %v1942_v41, %v1944_v42  ;;  %v1984_v51 = vrot.slane %v7774_v15, 4  ;;  %v1986_v52 = vrot.slane %v7787_v24, 4 }
 0x346   : > { %v1947_v53 = vsel %vm8442_vm3, %v1944_v42, %v1946_v45  ;;  %v1941_v54 = vsel %vm8442_vm3, %v1939_v46, %v1940_v47  ;;  %v1943_v55 = vsel %vm8442_vm3, %v1940_v47, %v1942_v41  ;;  %v1988_v56 = vrot.slane %v7792_v25, 4 }
 0x347   : > { %5792 = vrot.lane.b32.xlu1 %v5791_v39, %s7026_s5  ;;  %v5801_v57 = vpack.i.bf16 %v1947_v53, %v1945_v50  ;;  %v5796_v58 = vpack.i.bf16 %v1943_v55, %v1941_v54  ;;  %v1987_v59 = vsel %vm8441_vm4, %v1984_v51, %v1986_v52  ;;  %v1981_v60 = vrot.slane %v7777_v16, 4 }
 0x348   : > { %5782 = vrot.lane.b32.xlu0 %v5781_v49, %s7027_s14  ;;  %v1989_v61 = vsel %vm8441_vm4, %v1986_v52, %v1988_v56  ;;  %v1982_v62 = vrot.slane %v7771_v14, 4  ;;  %v7844_v63 = vsel %vm1825_vm0, %v1835_v12, %v1837_v17  ;;  %v1839_v0 = vrot.slane %v1816_v48, 6 }
 0x349   : > { %v5811_v1 = vpack.i.bf16 %v1989_v61, %v1987_v59  ;;  %v1866_v2 = vrot.slane %v7844_v63, 1  ;;  %v7852_v3 = vsel %vm1825_vm0, %v1833_v10, %v1835_v12  ;;  %v1908_v4 = vrot.slane %v7844_v63, 2 }
 0x34a   : > { %v1983_v5 = vsel %vm8441_vm4, %v1981_v60, %v1982_v62  ;;  %v1985_v6 = vsel %vm8441_vm4, %v1982_v62, %v1984_v51  ;;  %v7860_v9 = vsel %vm1825_vm0, %v1837_v17, %v1839_v0  ;;  %v1851_v13 = vsel %vm1825_vm0, %v1839_v0, 0.0 }
 0x34b   : > { %5802 = vrot.lane.b32.xlu1 %v5801_v57, %s7028_s6  ;;  %v5806_v7 = vpack.i.bf16 %v1985_v6, %v1983_v5  ;;  %v1868_v8 = vrot.slane %v7860_v9, 1  ;;  %v1870_v10 = vrot.slane %v1851_v13, 1  ;;  %v1864_v12 = vrot.slane %v7852_v3, 1 }
 0x34c   : > { %5797 = vrot.lane.b32.xlu0 %v5796_v58, %s7028_s6  ;;  %v1910_v18 = vrot.slane %v7860_v9, 2  ;;  %v1912_v19 = vrot.slane %v1851_v13, 2  ;;  %v1906_v11 = vrot.slane %v7852_v3, 2  ;;  %v1950_v17 = vrot.slane %v7844_v63, 3 }
 0x34d   : > { %v1869_v20 = vsel %vm1854_vm2, %v1866_v2, %v1868_v8  ;;  %v1871_v21 = vsel %vm1854_vm2, %v1868_v8, %v1870_v10  ;;  %v1865_v22 = vsel %vm1854_vm2, %v1862_v38, %v1864_v12  ;;  %v1867_v23 = vsel %vm1854_vm2, %v1864_v12, %v1866_v2 }
 0x34e   : > { %v5821_v26 = vpack.i.bf16 %v1871_v21, %v1869_v20  ;;  %v5816_v27 = vpack.i.bf16 %v1867_v23, %v1865_v22  ;;  %v1911_v28 = vsel %vm1896_vm1, %v1908_v4, %v1910_v18  ;;  %v1913_v29 = vsel %vm1896_vm1, %v1910_v18, %v1912_v19 }
 0x34f   : > { %5812 = vrot.lane.b32.xlu1 %v5811_v1, %s7029_s12  ;;  %v1907_v31 = vsel %vm1896_vm1, %v1904_v30, %v1906_v11  ;;  %v1909_v32 = vsel %vm1896_vm1, %v1906_v11, %v1908_v4  ;;  %v1952_v33 = vrot.slane %v7860_v9, 3  ;;  %v1954_v34 = vrot.slane %v1851_v13, 3 }
 0x350   : > { %5807 = vrot.lane.b32.xlu0 %v5806_v7, %s7029_s12  ;;  %v1948_v35 = vrot.slane %v7852_v3, 3  ;;  %v1992_v36 = vrot.slane %v7844_v63, 4  ;;  %v5831_v37 = vpack.i.bf16 %v1913_v29, %v1911_v28  ;;  %v5826_v38 = vpack.i.bf16 %v1909_v32, %v1907_v31 }
 0x351   : > { %v1953_v39 = vsel %vm8442_vm3, %v1950_v17, %v1952_v33  ;;  %v1955_v40 = vsel %vm8442_vm3, %v1952_v33, %v1954_v34  ;;  %v1994_v30 = vrot.slane %v7860_v9, 4  ;;  %v1996_v41 = vrot.slane %v1851_v13, 4 }
 0x352   : > { %v1949_v42 = vsel %vm8442_vm3, %v1946_v45, %v1948_v35  ;;  %v1951_v44 = vsel %vm8442_vm3, %v1948_v35, %v1950_v17  ;;  %v1990_v46 = vrot.slane %v7852_v3, 4  ;;  %v2096_v47 = vsel %vm8441_vm4, %v7812_v43, 0 }
 0x353   : > { %5822 = vrot.lane.b32.xlu1 %v5821_v26, %s7027_s14  ;;  %5206 = vmatpush3.bf16.msra.mxu0 %v2096_v47  ;;  %v5841_v48 = vpack.i.bf16 %v1955_v40, %v1953_v39  ;;  %v5836_v49 = vpack.i.bf16 %v1951_v44, %v1949_v42  ;;  %v1995_v50 = vsel %vm8441_vm4, %v1992_v36, %v1994_v30 }
 0x354   : > { %5817 = vrot.lane.b32.xlu0 %v5816_v27, %s7027_s14  ;;  %v1997_v51 = vsel %vm8441_vm4, %v1994_v30, %v1996_v41  ;;  %v1991_v45 = vsel %vm8441_vm4, %v1988_v56, %v1990_v46  ;;  %v1993_v52 = vsel %vm8441_vm4, %v1990_v46, %v1992_v36  ;;  %s8576_s14 = sld [smem:[#allocation66_spill]] }
 0x355   : > { %v5851_v43 = vpack.i.bf16 %v1997_v51, %v1995_v50  ;;  %v5846_v53 = vpack.i.bf16 %v1993_v52, %v1991_v45 }
 0x357   : > { %5832 = vrot.lane.b32.xlu1 %v5831_v37, %s7026_s5 }
 0x358   : > { %5827 = vrot.lane.b32.xlu0 %v5826_v38, %s7026_s5 }
 0x35b   : > { %5842 = vrot.lane.b32.xlu1 %v5841_v48, %s7028_s6 }
 0x35c   : > { %5837 = vrot.lane.b32.xlu0 %v5836_v49, %s7028_s6  ;;  %s7036_s6 = smov 96  }
 0x35f   : > { %5852 = vrot.lane.b32.xlu1 %v5851_v43, %s7029_s12 }
 0x360   : > { %5847 = vrot.lane.b32.xlu0 %v5846_v53, %s7029_s12 }
 0x3b5   : > { %v5788_v54 = vpop.permute.xlu1 %5787 }
 0x3b6   : > { %v5778_v55 = vpop.permute.xlu0 %5777  ;;  %v5790_v62 = vunpack.i.h.bf16 %v5788_v54  ;;  %v5789_v0 = vunpack.i.l.bf16 %v5788_v54 }
 0x3b7   : > { %v5780_v58 = vunpack.i.h.bf16 %v5778_v55  ;;  %v5779_v59 = vunpack.i.l.bf16 %v5778_v55 }
 0x3b9   : > { %v5793_v57 = vpop.permute.xlu1 %5792  ;;  %v2024_v2 = vsel %vm2022_vm5, %v7771_v14, %v5780_v58  ;;  %v2023_v4 = vsel %vm2022_vm5, %v7777_v16, %v5779_v59 }
 0x3ba   : > { %v5783_v60 = vpop.permute.xlu0 %5782  ;;  %v5795_v5 = vunpack.i.h.bf16 %v5793_v57  ;;  %v5794_v6 = vunpack.i.l.bf16 %v5793_v57  ;;  %v2032_v14 = vsel %vm8440_vm6, %v2023_v4, %v5789_v0  ;;  %v2033_v16 = vsel %vm8440_vm6, %v2024_v2, %v5790_v62 }
 0x3bb   : > { %v5785_v56 = vunpack.i.h.bf16 %v5783_v60  ;;  %v5784_v61 = vunpack.i.l.bf16 %v5783_v60 }
 0x3bd   : > { %v5803_v1 = vpop.permute.xlu1 %5802  ;;  %v2026_v7 = vsel %vm2022_vm5, %v7787_v24, %v5785_v56  ;;  %v2025_v8 = vsel %vm2022_vm5, %v7774_v15, %v5784_v61 }
 0x3be   : > { %v5798_v13 = vpop.permute.xlu0 %5797  ;;  %v5805_v10 = vunpack.i.h.bf16 %v5803_v1  ;;  %v5804_v12 = vunpack.i.l.bf16 %v5803_v1  ;;  %v2034_v17 = vsel %vm8440_vm6, %v2025_v8, %v5794_v6  ;;  %v2035_v20 = vsel %vm8440_vm6, %v2026_v7, %v5795_v5 }
 0x3bf   : > { %v5800_v18 = vunpack.i.h.bf16 %v5798_v13  ;;  %v5799_v19 = vunpack.i.l.bf16 %v5798_v13 }
 0x3c0   : > { %v2043_v15 = vsel %vm2040_vm7, %v2034_v17, %v5804_v12  ;;  %v2044_v23 = vsel %vm2040_vm7, %v2035_v20, %v5805_v10 }
 0x3c1   : > { %v5813_v11 = vpop.permute.xlu1 %5812  ;;  %v2041_v31 = vsel %vm2040_vm7, %v2032_v14, %v5799_v19  ;;  %v2042_v32 = vsel %vm2040_vm7, %v2033_v16, %v5800_v18  ;;  %v2249_v18 = vlaneseq }
 0x3c2   : > { %v5815_v21 = vunpack.i.h.bf16 %v5813_v11  ;;  %v5814_v24 = vunpack.i.l.bf16 %v5813_v11  ;;  %v5808_v22 = vpop.permute.xlu0 %5807 }
 0x3c3   : > { %v5810_v26 = vunpack.i.h.bf16 %v5808_v22  ;;  %v5809_v27 = vunpack.i.l.bf16 %v5808_v22  ;;  %v2250_v19 = vshrl.u32 %v2249_v18, 7  ;;  %v2255_v17 = vand.u32 127, %v2249_v18 }
 0x3c4   : > { %v2052_v28 = vsel %vm8439_vm8, %v2043_v15, %v5814_v24  ;;  %v2053_v29 = vsel %vm8439_vm8, %v2044_v23, %v5815_v21 }
 0x3c5   : > { %v2059_v33 = vpack.c.bf16 %v2053_v29, %v2052_v28  ;;  %v5823_v34 = vpop.permute.xlu1 %5822  ;;  %v2050_v35 = vsel %vm8439_vm8, %v2041_v31, %v5809_v27  ;;  %v2051_v36 = vsel %vm8439_vm8, %v2042_v32, %v5810_v26  ;;  %v2251_v11 = vadd.s32 8, %v2250_v19 }
 0x3c6   : > { %v5818_v37 = vpop.permute.xlu0 %5817  ;;  %v2058_v38 = vpack.c.bf16 %v2051_v36, %v2050_v35  ;;  %v5825_v30 = vunpack.i.h.bf16 %v5823_v34  ;;  %v5824_v41 = vunpack.i.l.bf16 %v5823_v34  ;;  %v2252_v14 = vadd.s32 16, %v2250_v19  ;;  %v4993_v36 = vld [vmem:[#allocation2] ss:$0 sm:$0xff] }
 0x3c7   : > { %v5820_v42 = vunpack.i.h.bf16 %v5818_v37  ;;  %v5819_v44 = vunpack.i.l.bf16 %v5818_v37  ;;  %v2253_v16 = vadd.s32 24, %v2250_v19  ;;  %v2256_v20 = vmul.u32 2, %v2250_v19 }
 0x3c8   : > { %5207 = vmatprep.mubr.msk.bf16.mxu0 %vm2082_vm9, %v2058_v38  ;;  %v2030_v43 = vsel %vm2022_vm5, %v7860_v9, %v5825_v30  ;;  %v2029_v53 = vsel %vm2022_vm5, %v7844_v63, %v5824_v41  ;;  %v2257_v21 = vmul.u32 2, %v2251_v11  ;;  %v2258_v24 = vmul.u32 2, %v2252_v14  ;;  %v4994_v38 = vld [vmem:[#allocation5] ss:$0 sm:$0xff] }
 0x3c9   : > { %5208 = vmatmul.mubr.msk.bf16.vlgmr.msra.gmra.mrb[0].mxu0 %vm2082_vm9, %v2059_v33  ;;  %v5833_v39 = vpop.permute.xlu1 %5832  ;;  %v2028_v57 = vsel %vm2022_vm5, %v7852_v3, %v5820_v42  ;;  %v2027_v58 = vsel %vm2022_vm5, %v7792_v25, %v5819_v44  ;;  %v2259_v22 = vmul.u32 2, %v2253_v16  ;;  %v2260_v15 = vsub.s32 %v2255_v17, %v2256_v20 }
 0x3ca   : > { %v5828_v40 = vpop.permute.xlu0 %5827  ;;  %v5835_v46 = vunpack.i.h.bf16 %v5833_v39  ;;  %v5834_v47 = vunpack.i.l.bf16 %v5833_v39  ;;  %v2261_v23 = vsub.s32 %v2255_v17, %v2257_v21  ;;  %v2262_v26 = vsub.s32 %v2255_v17, %v2258_v24 }
 0x3cb   : > { %v5830_v49 = vunpack.i.h.bf16 %v5828_v40  ;;  %v5829_v50 = vunpack.i.l.bf16 %v5828_v40  ;;  %v2263_v27 = vsub.s32 %v2255_v17, %v2259_v22  ;;  %vm2264_vm10 = vcmp.ge.s32.totalorder %v2260_v15, 0 }
 0x3cc   : > { %v2038_v59 = vsel %vm8440_vm6, %v2029_v53, %v5834_v47  ;;  %v2039_v60 = vsel %vm8440_vm6, %v2030_v43, %v5835_v46  ;;  %vm2265_vm11 = vcmp.ge.s32.totalorder %v2261_v23, 0  ;;  %vm2268_vm12 = vcmp.lt.s32.totalorder %v2260_v15, 4 }
 0x3cd   : > { %v5843_v48 = vpop.permute.xlu1 %5842  ;;  %v2036_v61 = vsel %vm8440_vm6, %v2027_v58, %v5829_v50  ;;  %v2037_v9 = vsel %vm8440_vm6, %v2028_v57, %v5830_v49  ;;  %vm2269_vm13 = vcmp.lt.s32.totalorder %v2261_v23, 4  ;;  %vm2272_vm14 = vmand %vm2264_vm10, %vm2268_vm12  ;;  %vm2266_vm15 = vcmp.ge.s32.totalorder %v2262_v26, 0 }
 0x3ce   : > { %v5838_v51 = vpop.permute.xlu0 %5837  ;;  %v5845_v45 = vunpack.i.h.bf16 %v5843_v48  ;;  %v5844_v52 = vunpack.i.l.bf16 %v5843_v48  ;;  %vm2267_vm5 = vcmp.ge.s32.totalorder %v2263_v27, 0  ;;  %v7030_v28 = vmov 0.0  }
 0x3cf   : > { %v5840_v54 = vunpack.i.h.bf16 %v5838_v51  ;;  %v5839_v55 = vunpack.i.l.bf16 %v5838_v51  ;;  %v2276_v29 = vsel %vm2272_vm14, 0.25, %v7030_v28  ;;  %vm2286_vm6 = vcmask 523264  }
 0x3d0   : > { %v2047_v1 = vsel %vm2040_vm7, %v2038_v59, %v5844_v52  ;;  %v2048_v2 = vsel %vm2040_vm7, %v2039_v60, %v5845_v45 }
 0x3d1   : > { %v5853_v56 = vpop.permute.xlu1 %5852  ;;  %v2045_v25 = vsel %vm2040_vm7, %v2036_v61, %v5839_v55  ;;  %v2046_v5 = vsel %vm2040_vm7, %v2037_v9, %v5840_v54  ;;  %vm2273_vm7 = vmand %vm2265_vm11, %vm2269_vm13 }
 0x3d2   : > { %v5855_v62 = vunpack.i.h.bf16 %v5853_v56  ;;  %v5854_v0 = vunpack.i.l.bf16 %v5853_v56  ;;  %v5848_v63 = vpop.permute.xlu0 %5847  ;;  %v2277_v31 = vsel %vm2273_vm7, 0.25, %v7030_v28 }
 0x3d3   : > { %v5850_v3 = vunpack.i.h.bf16 %v5848_v63  ;;  %v5849_v4 = vunpack.i.l.bf16 %v5848_v63  ;;  %v7955_v32 = vpack.c.bf16 %v2277_v31, %v2276_v29 }
 0x3d4   : > { %v2056_v6 = vsel %vm8439_vm8, %v2047_v1, %v5854_v0  ;;  %v2057_v13 = vsel %vm8439_vm8, %v2048_v2, %v5855_v62 }
 0x3d5   : > { %v2061_v7 = vpack.c.bf16 %v2057_v13, %v2056_v6  ;;  %v2054_v8 = vsel %vm8439_vm8, %v2045_v25, %v5849_v4  ;;  %v2055_v10 = vsel %vm8439_vm8, %v2046_v5, %v5850_v3  ;;  %vm2271_vm8 = vcmp.lt.s32.totalorder %v2263_v27, 4  ;;  %5223 = vmatprep.mubr.msk.bf16.mxu1 %vm2286_vm6, %v7955_v32 }
 0x3d6   : > { %v2060_v12 = vpack.c.bf16 %v2055_v10, %v2054_v8  ;;  %vm2275_vm3 = vmand %vm2267_vm5, %vm2271_vm8  ;;  %vm8560_vm5 = vcmask 1044480  }
 0x3d7   : > { %v7961_v34 = vsel %vm2275_vm3, 0.25, %v7030_v28  ;;  %vm8561_vm7 = vmmov %vm8560_vm5 }
 0x3d8   : > { %5211 = vmatprep.mubr.msk.bf16.mxu0 %vm2082_vm9, %v2060_v12 }
 0x3d9   : > { %5212 = vmatmul.mubr.msk.bf16.gmra.mrb[4].mxu0 %vm2082_vm9, %v2061_v7  ;;  %vm2270_vm9 = vcmp.lt.s32.totalorder %v2262_v26, 4 }
 0x3da   : > { %vm2274_vm4 = vmand %vm2266_vm15, %vm2270_vm9  ;;  %vm2359_vm15 = vcmask 1040384  }
 0x3db   : > { %v7958_v33 = vsel %vm2274_vm4, 0.25, %v7030_v28  ;;  %vm8562_vm9 = vmmov %vm8560_vm5 }
 0x3dc   : > { %v2281_v35 = vpack.c.bf16 %v7961_v34, %v7958_v33 }
 0x49c   : > { %v5209_v37 = vpop.f32.mrb[0].mxu0 }
 0x49d   : > { %v2172_v39 = vmul.f32 %v5209_v37, %v4993_v36  ;;  %v2132_v40 = vpop.f32.mrb[1].mxu0 }
 0x49e   : > { %v2170_v30 = vmul.f32 %v4993_v36, %v2132_v40  ;;  %v5210_v41 = vpop.f32.mrb[2].mxu0 }
 0x49f   : > { %v7967_v42 = vadd.f32 %v4994_v38, %v2172_v39  ;;  %v2173_v44 = vmul.f32 %v5210_v41, %v4993_v36  ;;  %v2135_v46 = vpop.f32.mrb[3].mxu0 }
 0x4a0   : > { %v2185_v47 = vadd.f32 %v4994_v38, %v2170_v30  ;;  %v2171_v48 = vmul.f32 %v4993_v36, %v2135_v46 }
 0x4a1   : > { %v2203_v49 = vmin.f32 %v7967_v42, 0.0  ;;  %v2188_v50 = vadd.f32 %v4994_v38, %v2173_v44  ;;  %vm2195_vm3 = vcmp.gt.f32.partialorder %v7967_v42, 0.0 }
 0x4a2   : > { %v2201_v51 = vmin.f32 %v2185_v47, 0.0  ;;  %v2186_v45 = vadd.f32 %v4994_v38, %v2171_v48  ;;  %vm2193_vm4 = vcmp.gt.f32.partialorder %v2185_v47, 0.0 }
 0x4a3   : > { %v2213_v52 = vmul.f32 1.442695, %v2203_v49  ;;  %v2204_v43 = vmin.f32 %v2188_v50, 0.0  ;;  %vm2196_vm10 = vcmp.gt.f32.partialorder %v2188_v50, 0.0 }
 0x4a4   : > { %v2209_v53 = vmul.f32 1.442695, %v2201_v51  ;;  %v2202_v54 = vmin.f32 %v2186_v45, 0.0  ;;  %vm2194_vm8 = vcmp.gt.f32.partialorder %v2186_v45, 0.0 }
 0x4a5   : > { %6004 = vpow2.f32 %v2213_v52  ;;  %v2215_v55 = vmul.f32 1.442695, %v2204_v43 }
 0x4a6   : > { %6006 = vpow2.f32 %v2209_v53  ;;  %v2211_v57 = vmul.f32 1.442695, %v2202_v54  ;;  %v5954_v54 = vld [vmem:[%s8558_s10] sm:$0xff]   ;;  %s8610_s10 = sld [smem:[#allocation77_spill]] }
 0x4a7   : > { %6008 = vpow2.f32 %v2215_v55  ;;  %5227 = vmatprep.subr.bf16.mxu0 %v5954_v54 }
 0x4a8   : > { %6010 = vpow2.f32 %v2211_v57  ;;  %5228 = vmatpush3.bf16.msra.mxu0 %v5954_v54 }
 0x4ac   : > { %v5213_v58 = vpop.f32.mrb[4].mxu0 }
 0x4ad   : > { %v2176_v59 = vmul.f32 %v5213_v58, %v4993_v36  ;;  %v2148_v60 = vpop.f32.mrb[5].mxu0 }
 0x4ae   : > { %v2174_v56 = vmul.f32 %v4993_v36, %v2148_v60  ;;  %v5214_v61 = vpop.f32.mrb[6].mxu0  ;;  %v5955_v60 = vld [vmem:[%s8559_s2 + $0x8] sm:$0xff]  }
 0x4af   : > { %v6005_v9 = vpop.eup %6004  ;;  %v2191_v62 = vadd.f32 %v4994_v38, %v2176_v59  ;;  %v2177_v0 = vmul.f32 %v5214_v61, %v4993_v36  ;;  %v2151_v63 = vpop.f32.mrb[7].mxu0  ;;  %5229 = vmatprep.subr.bf16.mxu0 %v5955_v60 }
 0x4b0   : > { %v6007_v1 = vpop.eup %6006  ;;  %v2189_v2 = vadd.f32 %v4994_v38, %v2174_v56  ;;  %v2175_v3 = vmul.f32 %v4993_v36, %v2151_v63  ;;  %v4997_v13 = vadd.f32 -1.0, %v6005_v9  ;;  %5230 = vmatpush3.bf16.msra.mxu0 %v5955_v60 }
 0x4b1   : > { %v6009_v4 = vpop.eup %6008  ;;  %v2207_v25 = vmin.f32 %v2191_v62, 0.0  ;;  %v2192_v5 = vadd.f32 %v4994_v38, %v2177_v0  ;;  %v4995_v6 = vadd.f32 -1.0, %v6007_v1  ;;  %vm2199_vm11 = vcmp.gt.f32.partialorder %v2191_v62, 0.0 }
 0x4b2   : > { %v6011_v7 = vpop.eup %6010  ;;  %v2205_v8 = vmin.f32 %v2189_v2, 0.0  ;;  %v2190_v10 = vadd.f32 %v4994_v38, %v2175_v3  ;;  %v4998_v12 = vadd.f32 -1.0, %v6009_v4  ;;  %v2235_v24 = vmul.f32 0.1, %v4997_v13 }
 0x4b3   : > { %v2221_v18 = vmul.f32 1.442695, %v2207_v25  ;;  %v2208_v19 = vmin.f32 %v2192_v5, 0.0  ;;  %v4996_v11 = vadd.f32 -1.0, %v6011_v7  ;;  %v2233_v17 = vmul.f32 0.1, %v4995_v6 }
 0x4b4   : > { %v2217_v14 = vmul.f32 1.442695, %v2205_v8  ;;  %v2206_v16 = vmin.f32 %v2190_v10, 0.0  ;;  %v2236_v15 = vmul.f32 0.1, %v4998_v12  ;;  %v2243_v29 = vsel %vm2195_vm3, %v7967_v42, %v2235_v24  ;;  %vm8563_vm3 = vmmov %vm8560_vm5 }
 0x4b5   : > { %6012 = vpow2.f32 %v2221_v18  ;;  %v2223_v20 = vmul.f32 1.442695, %v2208_v19  ;;  %v2234_v21 = vmul.f32 0.1, %v4996_v11  ;;  %v2241_v23 = vsel %vm2193_vm4, %v2185_v47, %v2233_v17 }
 0x4b6   : > { %6014 = vpow2.f32 %v2217_v14  ;;  %v2219_v22 = vmul.f32 1.442695, %v2206_v16  ;;  %v2244_v31 = vsel %vm2196_vm10, %v2188_v50, %v2236_v15  ;;  %vm2200_vm12 = vcmp.gt.f32.partialorder %v2192_v5, 0.0  ;;  %v5957_v16 = vld [vmem:[%s8559_s2 + $0x18] sm:$0xff]  }
 0x4b7   : > { %6016 = vpow2.f32 %v2223_v20  ;;  %v2242_v26 = vsel %vm2194_vm8, %v2186_v45, %v2234_v21  ;;  %v2283_v36 = vpack.c.bf16 %v2244_v31, %v2243_v29  ;;  %vm2197_vm13 = vcmp.gt.f32.partialorder %v2189_v2, 0.0 }
 0x4b8   : > { %6018 = vpow2.f32 %v2219_v22  ;;  %v2282_v27 = vpack.c.bf16 %v2242_v26, %v2241_v23  ;;  %vm2198_vm14 = vcmp.gt.f32.partialorder %v2190_v10, 0.0  ;;  %vm8564_vm4 = vcmask 1043456  }
 0x4b9   : > { %vm8565_vm8 = vmmov %vm8564_vm4 }
 0x4ba   : > { %5215 = vmatprep.subr.bf16.mxu1 %v2282_v27  ;;  %vm8566_vm10 = vmmov %vm8564_vm4 }
 0x4bb   : > { %5216 = vmatpush3.bf16.msra.mxu1 %v2282_v27 }
 0x4bc   : > { %5217 = vmatprep.subr.bf16.mxu1 %v2283_v36 }
 0x4bf   : > { %v6013_v37 = vpop.eup %6012  ;;  %5218 = vmatpush3.bf16.msra.mxu1 %v2283_v36 }
 0x4c0   : > { %v6015_v38 = vpop.eup %6014  ;;  %v5001_v39 = vadd.f32 -1.0, %v6013_v37 }
 0x4c1   : > { %v6017_v40 = vpop.eup %6016  ;;  %v4999_v30 = vadd.f32 -1.0, %v6015_v38 }
 0x4c2   : > { %v6019_v41 = vpop.eup %6018  ;;  %v5002_v44 = vadd.f32 -1.0, %v6017_v40  ;;  %v2239_v46 = vmul.f32 0.1, %v5001_v39  ;;  %v5958_v39 = vld [vmem:[%s8559_s2 + $0x20] sm:$0xff]  }
 0x4c3   : > { %v5000_v47 = vadd.f32 -1.0, %v6019_v41  ;;  %v2237_v48 = vmul.f32 0.1, %v4999_v30 }
 0x4c4   : > { %v2240_v49 = vmul.f32 0.1, %v5002_v44  ;;  %v2247_v50 = vsel %vm2199_vm11, %v2191_v62, %v2239_v46  ;;  %vm8567_vm11 = vmmov %vm8564_vm4 }
 0x4c5   : > { %v2238_v42 = vmul.f32 0.1, %v5000_v47  ;;  %v2245_v45 = vsel %vm2197_vm13, %v2189_v2, %v2237_v48  ;;  %v5956_v2 = vld [vmem:[%s8559_s2 + $0x10] sm:$0xff]   ;;  %vm2504_vm13 = vcmask 654336  }
 0x4c6   : > { %v2248_v51 = vsel %vm2200_vm12, %v2192_v5, %v2240_v49  ;;  %5231 = vmatprep.subr.bf16.mxu0 %v5956_v2  ;;  %vm2453_vm12 = vcmask 392192  }
 0x4c7   : > { %v2246_v52 = vsel %vm2198_vm14, %v2190_v10, %v2238_v42  ;;  %v2285_v43 = vpack.c.bf16 %v2248_v51, %v2247_v50  ;;  %5232 = vmatpush3.bf16.msra.mxu0 %v5956_v2  ;;  %vm8568_vm14 = vcmask 130048  }
 0x4c8   : > { %v2284_v53 = vpack.c.bf16 %v2246_v52, %v2245_v45  ;;  %5233 = vmatprep.subr.bf16.mxu0 %v5957_v16 }
 0x4ca   : > { %5219 = vmatprep.subr.bf16.mxu1 %v2284_v53 }
 0x4cb   : > { %5220 = vmatpush3.bf16.msra.mxu1 %v2284_v53  ;;  %5234 = vmatpush3.bf16.msra.mxu0 %v5957_v16 }
 0x4cc   : > { %5221 = vmatprep.subr.bf16.mxu1 %v2285_v43  ;;  %5235 = vmatprep.subr.bf16.mxu0 %v5958_v39 }
 0x4cf   : > { %5222 = vmatpush3.bf16.msra.mxu1 %v2285_v43  ;;  %5236 = vmatpush3.bf16.msra.mxu0 %v5958_v39 }
 0x4d0   : > { %5255 = vmatprep.subr.bf16.mxu0 %v7030_v28 }
 0x4d2   : > { %5224 = vmatmul.mubr.msk.bf16.vlgmr.msra.gmra.mrb[0].mxu1 %vm2286_vm6, %v2281_v35 }
 0x5a5   : > { %v7979_v55 = vpop.f32.mrb[0].mxu1 }
 0x5a6   : > { %v7981_v57 = vpop.f32.mrb[1].mxu1  ;;  %v2349_v56 = vrot.slane %v7979_v55, 6 }
 0x5a7   : > { %v2346_v58 = vrot.slane %v7981_v57, 6  ;;  %v7984_v59 = vpop.f32.mrb[2].mxu1 }
 0x5a8   : > { %v2351_v33 = vrot.slane %v7984_v59, 6  ;;  %v7989_v34 = vpop.f32.mrb[3].mxu1 }
 0x5a9   : > { %v7992_v35 = vsel %vm1825_vm0, 0.0, %v2346_v58  ;;  %v2347_v61 = vrot.slane %v7989_v34, 6 }
 0x5aa   : > { %v7996_v9 = vsel %vm1825_vm0, %v2349_v56, %v2351_v33  ;;  %v2360_v62 = vsel %vm2359_vm15, %v2351_v33, 0.0  ;;  %v2362_v1 = vrot.slane %v7992_v35, 1  ;;  %v2382_v12 = vrot.slane %v7992_v35, 2 }
 0x5ab   : > { %v2389_v0 = vrot.slane %v2360_v62, 2  ;;  %v8000_v63 = vsel %vm1825_vm0, %v2346_v58, %v2347_v61  ;;  %v8005_v3 = vsel %vm1825_vm0, %v2347_v61, %v2349_v56  ;;  %v2367_v4 = vrot.slane %v7996_v9, 1 }
 0x5ac   : > { %v2363_v25 = vrot.slane %v8000_v63, 1  ;;  %v2387_v5 = vrot.slane %v7996_v9, 2  ;;  %v2365_v6 = vrot.slane %v8005_v3, 1  ;;  %v2385_v13 = vrot.slane %v8005_v3, 2 }
 0x5ad   : > { %v2383_v7 = vrot.slane %v8000_v63, 2  ;;  %v2410_v8 = vrot.slane %v2360_v62, 3  ;;  %v2406_v14 = vrot.slane %v8005_v3, 3  ;;  %v2408_v24 = vrot.slane %v7996_v9, 3 }
 0x5ae   : > { %v2364_v10 = vsel %vm1854_vm2, %v2362_v1, %v2363_v25  ;;  %v2368_v18 = vsel %vm1854_vm2, %v2365_v6, %v2367_v4  ;;  %v2366_v19 = vsel %vm1854_vm2, %v2363_v25, %v2365_v6  ;;  %v2390_v11 = vsel %vm1896_vm1, %v2387_v5, %v2389_v0 }
 0x5af   : > { %v5861_v17 = vpack.i.bf16 %v2367_v4, %v2368_v18  ;;  %v5856_v20 = vpack.i.bf16 %v2366_v19, %v2364_v10  ;;  %v2388_v21 = vsel %vm1896_vm1, %v2385_v13, %v2387_v5  ;;  %v2384_v22 = vsel %vm1896_vm1, %v2382_v12, %v2383_v7 }
 0x5b0   : > { %v2386_v15 = vsel %vm1896_vm1, %v2383_v7, %v2385_v13  ;;  %v2404_v23 = vrot.slane %v8000_v63, 3  ;;  %v2431_v26 = vrot.slane %v2360_v62, 4  ;;  %v5871_v27 = vpack.i.bf16 %v2390_v11, %v2388_v21 }
 0x5b1   : > { %5862 = vrot.lane.b32.xlu1 %v5861_v17, %s7026_s5  ;;  %5857 = vrot.lane.b32.xlu0 %v5856_v20, %s7026_s5  ;;  %v2403_v29 = vrot.slane %v7992_v35, 3  ;;  %v5866_v31 = vpack.i.bf16 %v2386_v15, %v2384_v22  ;;  %v2409_v36 = vsel %vm8560_vm5, %v2406_v14, %v2408_v24  ;;  %v2411_v37 = vsel %vm8561_vm7, %v2408_v24, %v2410_v8  ;;  %vm8569_vm5 = vmmov %vm8568_vm14 }
 0x5b2   : > { %v2427_v38 = vrot.slane %v8005_v3, 4  ;;  %v2407_v30 = vsel %vm8563_vm3, %v2404_v23, %v2406_v14  ;;  %v2429_v41 = vrot.slane %v7996_v9, 4  ;;  %v2425_v44 = vrot.slane %v8000_v63, 4  ;;  %vm8570_vm7 = vmmov %vm8569_vm5 }
 0x5b3   : > { %v2405_v40 = vsel %vm8562_vm9, %v2403_v29, %v2404_v23  ;;  %v2424_v46 = vrot.slane %v7992_v35, 4  ;;  %v5881_v47 = vpack.i.bf16 %v2411_v37, %v2409_v36  ;;  %vm8571_vm9 = vmmov %vm8569_vm5  ;;  %vm8572_vm3 = vcmask 261120   ;;  %v5959_v37 = vld [vmem:[%s8576_s14] sm:$0xff]  }
 0x5b4   : > { %v5876_v48 = vpack.i.bf16 %v2407_v30, %v2405_v40  ;;  %v2430_v49 = vsel %vm8564_vm4, %v2427_v38, %v2429_v41  ;;  %v2432_v42 = vsel %vm8565_vm8, %v2429_v41, %v2431_v26  ;;  %v2428_v51 = vsel %vm8567_vm11, %v2425_v44, %v2427_v38  ;;  %vm8573_vm4 = vmmov %vm8572_vm3  ;;  %5241 = vmatprep.subr.bf16.mxu1 %v5959_v37  ;;  %v5012_v38 = vld [vmem:[#allocation7] ss:$0 sm:$0xff]  ;;  %v5013_v40 = vld [vmem:[#allocation8] ss:$0 sm:$0xff] }
 0x5b5   : > { %5872 = vrot.lane.b32.xlu1 %v5871_v27, %s7029_s12  ;;  %5867 = vrot.lane.b32.xlu0 %v5866_v31, %s7029_s12  ;;  %v2426_v50 = vsel %vm8566_vm10, %v2424_v46, %v2425_v44  ;;  %v5891_v45 = vpack.i.bf16 %v2432_v42, %v2430_v49  ;;  %vm8574_vm8 = vmmov %vm8572_vm3 }
 0x5b6   : > { %v5886_v52 = vpack.i.bf16 %v2428_v51, %v2426_v50  ;;  %vm8575_vm10 = vmmov %vm8572_vm3  ;;  %5242 = vmatpush3.bf16.msra.mxu1 %v5959_v37 }
 0x5b9   : > { %5882 = vrot.lane.b32.xlu1 %v5881_v47, %s7031_s16  ;;  %5877 = vrot.lane.b32.xlu0 %v5876_v48, %s7031_s16 }
 0x5bd   : > { %5892 = vrot.lane.b32.xlu1 %v5891_v45, %s7032_s7  ;;  %5887 = vrot.lane.b32.xlu0 %v5886_v52, %s7032_s7 }
 0x623   : > { %v5863_v43 = vpop.permute.xlu1 %5862  ;;  %v5858_v53 = vpop.permute.xlu0 %5857 }
 0x624   : > { %v5865_v60 = vunpack.i.h.bf16 %v5863_v43  ;;  %v5864_v56 = vunpack.i.l.bf16 %v5863_v43  ;;  %v5860_v33 = vunpack.i.h.bf16 %v5858_v53  ;;  %v5859_v61 = vunpack.i.l.bf16 %v5858_v53 }
 0x626   : > { %v2448_v8 = vsel %vm8568_vm14, %v7996_v9, %v5865_v60  ;;  %v2447_v10 = vsel %vm8569_vm5, %v8005_v3, %v5864_v56  ;;  %v2446_v12 = vsel %vm8570_vm7, %v8000_v63, %v5860_v33  ;;  %v2445_v18 = vsel %vm8571_vm9, %v7992_v35, %v5859_v61 }
 0x627   : > { %v5873_v54 = vpop.permute.xlu1 %5872  ;;  %v5868_v58 = vpop.permute.xlu0 %5867 }
 0x628   : > { %v5875_v62 = vunpack.i.h.bf16 %v5873_v54  ;;  %v5874_v0 = vunpack.i.l.bf16 %v5873_v54  ;;  %v5870_v1 = vunpack.i.h.bf16 %v5868_v58  ;;  %v5869_v2 = vunpack.i.l.bf16 %v5868_v58 }
 0x62a   : > { %v2451_v19 = vsel %vm8572_vm3, %v2447_v10, %v5874_v0  ;;  %v2452_v11 = vsel %vm8573_vm4, %v2448_v8, %v5875_v62  ;;  %v2449_v14 = vsel %vm8574_vm8, %v2445_v18, %v5869_v2  ;;  %v2450_v16 = vsel %vm8575_vm10, %v2446_v12, %v5870_v1 }
 0x62b   : > { %v5883_v4 = vpop.permute.xlu1 %5882  ;;  %v5878_v25 = vpop.permute.xlu0 %5877  ;;  %vm8581_vm8 = vcmask 1043456  }
 0x62c   : > { %v5885_v5 = vunpack.i.h.bf16 %v5883_v4  ;;  %v5884_v6 = vunpack.i.l.bf16 %v5883_v4  ;;  %v5880_v13 = vunpack.i.h.bf16 %v5878_v25  ;;  %v5879_v7 = vunpack.i.l.bf16 %v5878_v25  ;;  %vm8582_vm10 = vmmov %vm8581_vm8 }
 0x62e   : > { %v2456_v63 = vsel %vm2453_vm12, %v2451_v19, %v5884_v6  ;;  %v2457_v22 = vsel %vm2453_vm12, %v2452_v11, %v5885_v5  ;;  %v2454_v35 = vsel %vm2453_vm12, %v2449_v14, %v5879_v7  ;;  %v2455_v15 = vsel %vm2453_vm12, %v2450_v16, %v5880_v13 }
 0x62f   : > { %v5893_v17 = vpop.permute.xlu1 %5892  ;;  %v5888_v20 = vpop.permute.xlu0 %5887 }
 0x630   : > { %v5895_v9 = vunpack.i.h.bf16 %v5893_v17  ;;  %v5894_v21 = vunpack.i.l.bf16 %v5893_v17  ;;  %v5890_v3 = vunpack.i.h.bf16 %v5888_v20  ;;  %v5889_v24 = vunpack.i.l.bf16 %v5888_v20  ;;  %v5960_v17 = vld [vmem:[%s8576_s14 + $0x8] sm:$0xff]  }
 0x631   : > { %5243 = vmatprep.subr.bf16.mxu1 %v5960_v17 }
 0x632   : > { %v2460_v23 = vsel %vm2286_vm6, %v2456_v63, %v5894_v21  ;;  %v2461_v26 = vsel %vm2286_vm6, %v2457_v22, %v5895_v9  ;;  %v2458_v27 = vsel %vm2286_vm6, %v2454_v35, %v5889_v24  ;;  %v2459_v29 = vsel %vm2286_vm6, %v2455_v15, %v5890_v3  ;;  %5244 = vmatpush3.bf16.msra.mxu1 %v5960_v17  ;;  %v5961_v22 = vld [vmem:[%s8576_s14 + $0x10] sm:$0xff]  }
 0x633   : > { %v2463_v31 = vpack.c.bf16 %v2461_v26, %v2460_v23  ;;  %v2462_v36 = vpack.c.bf16 %v2459_v29, %v2458_v27  ;;  %5245 = vmatprep.subr.bf16.mxu1 %v5961_v22 }
 0x635   : > { %5237 = vmatprep.mubr.msk.bf16.mxu0 %vm2504_vm13, %v2462_v36 }
 0x636   : > { %5238 = vmatmul.mubr.msk.bf16.vlgmr.msra.gmra.mrb[8].mxu0 %vm2504_vm13, %v2463_v31  ;;  %5246 = vmatpush3.bf16.msra.mxu1 %v5961_v22 }
 0x709   : > { %v5239_v39 = vpop.f32.mrb[8].mxu0 }
 0x70a   : > { %v2569_v30 = vmul.f32 %v5239_v39, %v5012_v38  ;;  %v2545_v41 = vpop.f32.mrb[9].mxu0 }
 0x70b   : > { %v2567_v44 = vmul.f32 %v5012_v38, %v2545_v41  ;;  %v5240_v46 = vpop.f32.mrb[10].mxu0 }
 0x70c   : > { %v2580_v47 = vadd.f32 %v5013_v40, %v2569_v30  ;;  %v2570_v48 = vmul.f32 %v5240_v46, %v5012_v38  ;;  %v2548_v49 = vpop.f32.mrb[11].mxu0  ;;  %v5962_v46 = vld [vmem:[%s8576_s14 + $0x18] sm:$0xff]  }
 0x70d   : > { %v2578_v42 = vadd.f32 %v5013_v40, %v2567_v44  ;;  %v2568_v50 = vmul.f32 %v5012_v38, %v2548_v49  ;;  %5247 = vmatprep.subr.bf16.mxu1 %v5962_v46 }
 0x70e   : > { %v2588_v51 = vmin.f32 %v2580_v47, 0.0  ;;  %v2581_v45 = vadd.f32 %v5013_v40, %v2570_v48  ;;  %vm2584_vm11 = vcmp.gt.f32.partialorder %v2580_v47, 0.0  ;;  %5248 = vmatpush3.bf16.msra.mxu1 %v5962_v46 }
 0x70f   : > { %v2586_v52 = vmin.f32 %v2578_v42, 0.0  ;;  %v2579_v43 = vadd.f32 %v5013_v40, %v2568_v50  ;;  %vm2582_vm14 = vcmp.gt.f32.partialorder %v2578_v42, 0.0 }
 0x710   : > { %v2594_v53 = vmul.f32 1.442695, %v2588_v51  ;;  %v2589_v54 = vmin.f32 %v2581_v45, 0.0  ;;  %vm2585_vm5 = vcmp.gt.f32.partialorder %v2581_v45, 0.0 }
 0x711   : > { %v2590_v58 = vmul.f32 1.442695, %v2586_v52  ;;  %v2587_v60 = vmin.f32 %v2579_v43, 0.0  ;;  %vm2583_vm7 = vcmp.gt.f32.partialorder %v2579_v43, 0.0 }
 0x712   : > { %6020 = vpow2.f32 %v2594_v53  ;;  %v2596_v56 = vmul.f32 1.442695, %v2589_v54 }
 0x713   : > { %6022 = vpow2.f32 %v2590_v58  ;;  %v2592_v33 = vmul.f32 1.442695, %v2587_v60 }
 0x714   : > { %6024 = vpow2.f32 %v2596_v56 }
 0x715   : > { %6026 = vpow2.f32 %v2592_v33  ;;  %v5963_v33 = vld [vmem:[%s8576_s14 + $0x20] sm:$0xff]  }
 0x716   : > { %5249 = vmatprep.subr.bf16.mxu1 %v5963_v33 }
 0x717   : > { %5250 = vmatpush3.bf16.msra.mxu1 %v5963_v33 }
 0x71c   : > { %v6021_v61 = vpop.eup %6020 }
 0x71d   : > { %v6023_v62 = vpop.eup %6022  ;;  %v5016_v0 = vadd.f32 -1.0, %v6021_v61 }
 0x71e   : > { %v6025_v1 = vpop.eup %6024  ;;  %v5014_v2 = vadd.f32 -1.0, %v6023_v62 }
 0x71f   : > { %v6027_v4 = vpop.eup %6026  ;;  %v2604_v25 = vmul.f32 0.1, %v5016_v0  ;;  %v5017_v5 = vadd.f32 -1.0, %v6025_v1 }
 0x720   : > { %v2602_v6 = vmul.f32 0.1, %v5014_v2  ;;  %v5015_v13 = vadd.f32 -1.0, %v6027_v4 }
 0x721   : > { %v2608_v7 = vsel %vm2584_vm11, %v2580_v47, %v2604_v25  ;;  %v2605_v8 = vmul.f32 0.1, %v5017_v5  ;;  %vm8583_vm11 = vmmov %vm8581_vm8 }
 0x722   : > { %v2612_v10 = vadd.f32 %v7979_v55, %v2608_v7  ;;  %v2606_v12 = vsel %vm2582_vm14, %v2578_v42, %v2602_v6  ;;  %v2603_v18 = vmul.f32 0.1, %v5015_v13  ;;  %vm8584_vm14 = vmmov %vm8581_vm8 }
 0x723   : > { %v2610_v19 = vadd.f32 %v2606_v12, %v7981_v57  ;;  %v2609_v11 = vsel %vm2585_vm5, %v2581_v45, %v2605_v8  ;;  %vm8585_vm5 = vcmask 130048  }
 0x724   : > { %v2613_v14 = vadd.f32 %v7984_v59, %v2609_v11  ;;  %v2607_v16 = vsel %vm2583_vm7, %v2579_v43, %v2603_v18  ;;  %v2621_v21 = vrot.slane %v2612_v10, 6  ;;  %vm8586_vm7 = vmmov %vm8585_vm5 }
 0x725   : > { %v2618_v20 = vrot.slane %v2610_v19, 6  ;;  %v2611_v9 = vadd.f32 %v2607_v16, %v7989_v34 }
 0x726   : > { %v2623_v3 = vrot.slane %v2613_v14, 6 }
 0x727   : > { %v8077_v55 = vsel %vm1825_vm0, 0.0, %v2618_v20  ;;  %v2619_v24 = vrot.slane %v2611_v9, 6 }
 0x728   : > { %v2631_v57 = vsel %vm2359_vm15, %v2623_v3, 0.0  ;;  %v8081_v63 = vsel %vm1825_vm0, %v2621_v21, %v2623_v3  ;;  %v2633_v59 = vrot.slane %v8077_v55, 1  ;;  %v2653_v36 = vrot.slane %v8077_v55, 2 }
 0x729   : > { %v8086_v35 = vsel %vm1825_vm0, %v2618_v20, %v2619_v24  ;;  %v8089_v34 = vsel %vm1825_vm0, %v2619_v24, %v2621_v21  ;;  %v2638_v15 = vrot.slane %v8081_v63, 1  ;;  %v2658_v23 = vrot.slane %v8081_v63, 2 }
 0x72a   : > { %v2636_v26 = vrot.slane %v8089_v34, 1  ;;  %v2634_v27 = vrot.slane %v8086_v35, 1  ;;  %v2656_v29 = vrot.slane %v8089_v34, 2  ;;  %v2660_v31 = vrot.slane %v2631_v57, 2 }
 0x72b   : > { %v2654_v37 = vrot.slane %v8086_v35, 2  ;;  %v2677_v38 = vrot.slane %v8089_v34, 3  ;;  %v2679_v39 = vrot.slane %v8081_v63, 3  ;;  %v2681_v44 = vrot.slane %v2631_v57, 3 }
 0x72c   : > { %v2639_v40 = vsel %vm1854_vm2, %v2636_v26, %v2638_v15  ;;  %v2635_v30 = vsel %vm1854_vm2, %v2633_v59, %v2634_v27  ;;  %v2637_v41 = vsel %vm1854_vm2, %v2634_v27, %v2636_v26  ;;  %v2659_v49 = vsel %vm1896_vm1, %v2656_v29, %v2658_v23 }
 0x72d   : > { %v5901_v47 = vpack.i.bf16 %v2638_v15, %v2639_v40  ;;  %v5896_v48 = vpack.i.bf16 %v2637_v41, %v2635_v30  ;;  %v2661_v42 = vsel %vm1896_vm1, %v2658_v23, %v2660_v31  ;;  %v2655_v50 = vsel %vm1896_vm1, %v2653_v36, %v2654_v37 }
 0x72e   : > { %v2657_v51 = vsel %vm1896_vm1, %v2654_v37, %v2656_v29  ;;  %v2675_v45 = vrot.slane %v8086_v35, 3  ;;  %v5911_v52 = vpack.i.bf16 %v2661_v42, %v2659_v49  ;;  %vm8577_vm15 = vcmask 1044480  }
 0x72f   : > { %5902 = vrot.lane.b32.xlu1 %v5901_v47, %s7026_s5  ;;  %5897 = vrot.lane.b32.xlu0 %v5896_v48, %s7026_s5  ;;  %v2680_v43 = vsel %vm8577_vm15, %v2677_v38, %v2679_v39  ;;  %v2674_v53 = vrot.slane %v8077_v55, 3  ;;  %v5906_v54 = vpack.i.bf16 %v2657_v51, %v2655_v50  ;;  %vm8578_vm9 = vmmov %vm8577_vm15  ;;  %v2698_v60 = vrot.slane %v8089_v34, 4  ;;  %s8593_s5 = sld [smem:[#allocation69_spill]] }
 0x730   : > { %v2682_v58 = vsel %vm8578_vm9, %v2679_v39, %v2681_v44  ;;  %v2700_v56 = vrot.slane %v8081_v63, 4  ;;  %vm8579_vm3 = vmmov %vm8578_vm9  ;;  %v2702_v0 = vrot.slane %v2631_v57, 4  ;;  %v2696_v1 = vrot.slane %v8086_v35, 4 }
 0x731   : > { %v2676_v61 = vsel %vm8579_vm3, %v2674_v53, %v2675_v45  ;;  %vm8580_vm4 = vmmov %vm8579_vm3  ;;  %v2695_v2 = vrot.slane %v8077_v55, 4  ;;  %v5921_v4 = vpack.i.bf16 %v2682_v58, %v2680_v43  ;;  %vm8589_vm3 = vcmask 261120   ;;  %v5025_v43 = vld [vmem:[#allocation10] ss:$0 sm:$0xff] }
 0x732   : > { %v2678_v62 = vsel %vm8580_vm4, %v2675_v45, %v2677_v38  ;;  %v2701_v5 = vsel %vm8581_vm8, %v2698_v60, %v2700_v56  ;;  %v2703_v6 = vsel %vm8582_vm10, %v2700_v56, %v2702_v0  ;;  %v2699_v7 = vsel %vm8584_vm14, %v2696_v1, %v2698_v60  ;;  %vm8587_vm15 = vmmov %vm8585_vm5 }
 0x733   : > { %5912 = vrot.lane.b32.xlu1 %v5911_v52, %s7029_s12  ;;  %5907 = vrot.lane.b32.xlu0 %v5906_v54, %s7029_s12  ;;  %v5916_v25 = vpack.i.bf16 %v2678_v62, %v2676_v61  ;;  %v2697_v13 = vsel %vm8583_vm11, %v2695_v2, %v2696_v1  ;;  %v5931_v8 = vpack.i.bf16 %v2703_v6, %v2701_v5  ;;  %vm8588_vm9 = vmmov %vm8585_vm5  ;;  %vm7033_vm11 = vmmov 0   ;;  %v5026_v54 = vld [vmem:[#allocation11] ss:$0 sm:$0xff] }
 0x734   : > { %v5926_v10 = vpack.i.bf16 %v2699_v7, %v2697_v13  ;;  %vm8590_vm4 = vmmov %vm8589_vm3  ;;  %5259 = vmatprep.mubr.msk.bf16.mxu0 %vm7033_vm11, %v7030_v28 }
 0x735   : > { %vm8591_vm8 = vmmov %vm8589_vm3 }
 0x736   : > { %vm8592_vm10 = vmmov %vm8589_vm3 }
 0x737   : > { %5922 = vrot.lane.b32.xlu1 %v5921_v4, %s7031_s16  ;;  %5917 = vrot.lane.b32.xlu0 %v5916_v25, %s7031_s16  ;;  %s8611_s16 = sld [smem:[#allocation80_spill]] }
 0x73b   : > { %5932 = vrot.lane.b32.xlu1 %v5931_v8, %s7032_s7  ;;  %5927 = vrot.lane.b32.xlu0 %v5926_v10, %s7032_s7 }
 0x7a1   : > { %v5903_v12 = vpop.permute.xlu1 %5902  ;;  %v5898_v18 = vpop.permute.xlu0 %5897 }
 0x7a2   : > { %v5905_v14 = vunpack.i.h.bf16 %v5903_v12  ;;  %v5904_v16 = vunpack.i.l.bf16 %v5903_v12  ;;  %v5900_v17 = vunpack.i.h.bf16 %v5898_v18  ;;  %v5899_v20 = vunpack.i.l.bf16 %v5898_v18 }
 0x7a4   : > { %v2719_v27 = vsel %vm8585_vm5, %v8081_v63, %v5905_v14  ;;  %v2718_v29 = vsel %vm8586_vm7, %v8089_v34, %v5904_v16  ;;  %v2717_v31 = vsel %vm8587_vm15, %v8086_v35, %v5900_v17  ;;  %v2716_v36 = vsel %vm8588_vm9, %v8077_v55, %v5899_v20 }
 0x7a5   : > { %v5913_v19 = vpop.permute.xlu1 %5912  ;;  %v5908_v11 = vpop.permute.xlu0 %5907  ;;  %vm2881_vm15 = vcmask 252928   ;;  %vm8594_vm9 = vcmask 1043456  }
 0x7a6   : > { %v5915_v9 = vunpack.i.h.bf16 %v5913_v19  ;;  %v5914_v21 = vunpack.i.l.bf16 %v5913_v19  ;;  %v5910_v3 = vunpack.i.h.bf16 %v5908_v11  ;;  %v5909_v24 = vunpack.i.l.bf16 %v5908_v11 }
 0x7a8   : > { %v2722_v37 = vsel %vm8589_vm3, %v2718_v29, %v5914_v21  ;;  %v2723_v38 = vsel %vm8590_vm4, %v2719_v27, %v5915_v9  ;;  %v2720_v39 = vsel %vm8591_vm8, %v2716_v36, %v5909_v24  ;;  %v2721_v40 = vsel %vm8592_vm10, %v2717_v31, %v5910_v3  ;;  %vm8595_vm3 = vmmov %vm8594_vm9 }
 0x7a9   : > { %v5923_v57 = vpop.permute.xlu1 %5922  ;;  %v5918_v59 = vpop.permute.xlu0 %5917 }
 0x7aa   : > { %v5925_v22 = vunpack.i.h.bf16 %v5923_v57  ;;  %v5924_v15 = vunpack.i.l.bf16 %v5923_v57  ;;  %v5920_v23 = vunpack.i.h.bf16 %v5918_v59  ;;  %v5919_v26 = vunpack.i.l.bf16 %v5918_v59 }
 0x7ac   : > { %v2726_v47 = vsel %vm2453_vm12, %v2722_v37, %v5924_v15  ;;  %v2727_v35 = vsel %vm2453_vm12, %v2723_v38, %v5925_v22  ;;  %v2724_v55 = vsel %vm2453_vm12, %v2720_v39, %v5919_v26  ;;  %v2725_v48 = vsel %vm2453_vm12, %v2721_v40, %v5920_v23  ;;  %v5964_v39 = vld [vmem:[%s8593_s5] sm:$0xff]  }
 0x7ad   : > { %v5933_v30 = vpop.permute.xlu1 %5932  ;;  %v5928_v41 = vpop.permute.xlu0 %5927  ;;  %vm2884_vm12 = vcmask 1047552   ;;  %v7034_v22 = vmov 65535   ;;  %v7035_v40 = vmov 0  }
 0x7ae   : > { %v5935_v63 = vunpack.i.h.bf16 %v5933_v30  ;;  %v5934_v44 = vunpack.i.l.bf16 %v5933_v30  ;;  %v5930_v46 = vunpack.i.h.bf16 %v5928_v41  ;;  %v5929_v34 = vunpack.i.l.bf16 %v5928_v41  ;;  %3069 = vmatprep.subr.bf16.mxu1 %v7035_v40  ;;  %v5965_v30 = vld [vmem:[%s8593_s5 + $0x8] sm:$0xff]   ;;  %v5966_v41 = vld [vmem:[%s8593_s5 + $0x10] sm:$0xff]  }
 0x7af   : > { %v2885_v15 = vsel %vm1854_vm2, 4294967295, %v7034_v22 }
 0x7b0   : > { %v2730_v49 = vsel %vm2286_vm6, %v2726_v47, %v5934_v44  ;;  %v2731_v42 = vsel %vm2286_vm6, %v2727_v35, %v5935_v63  ;;  %v2728_v50 = vsel %vm2286_vm6, %v2724_v55, %v5929_v34  ;;  %v2729_v51 = vsel %vm2286_vm6, %v2725_v48, %v5930_v46  ;;  %v5967_v63 = vld [vmem:[%s8593_s5 + $0x18] sm:$0xff]   ;;  %v5969_v44 = vld [vmem:[%s8593_s5 + $0x28] sm:$0xff]   ;;  %v5970_v46 = vld [vmem:[%s8593_s5 + $0x30] sm:$0xff]  }
 0x7b1   : > { %v2733_v45 = vpack.c.bf16 %v2731_v42, %v2730_v49  ;;  %v2732_v52 = vpack.c.bf16 %v2729_v51, %v2728_v50  ;;  %v2886_v37 = vsel %vm2884_vm12, %v2885_v15, 0  ;;  %v5971_v34 = vld [vmem:[%s8593_s5 + $0x38] sm:$0xff]   ;;  %v5972_v48 = vld [vmem:[%s8593_s5 + $0x40] sm:$0xff]   ;;  %vm2981_vm12 = vcmask 785408  }
 0x7b3   : > { %5251 = vmatprep.mubr.msk.bf16.mxu1 %vm2504_vm13, %v2732_v52 }
 0x7b4   : > { %5252 = vmatmul.mubr.msk.bf16.vlgmr.msra.gmra.mrb[4].mxu1 %vm2504_vm13, %v2733_v45  ;;  %v2973_v45 = vrot.slane %v7030_v28, 4 }
 0x7b5   : > { %3070 = vmatpush1.bf16.msra.mxu1 %v5964_v39 }
 0x7b6   : > { %3071 = vmatprep.subr.bf16.mxu1 %v7035_v40 }
 0x7b9   : > { %3072 = vmatpush1.bf16.msra.mxu1 %v5965_v30 }
 0x7ba   : > { %3073 = vmatprep.subr.bf16.mxu1 %v7035_v40 }
 0x7bd   : > { %3074 = vmatpush1.bf16.msra.mxu1 %v5966_v41 }
 0x7be   : > { %3075 = vmatprep.subr.bf16.mxu1 %v7035_v40 }
 0x7c1   : > { %3076 = vmatpush1.bf16.msra.mxu1 %v5967_v63 }
 0x7c2   : > { %3077 = vmatprep.subr.bf16.mxu1 %v7035_v40 }
 0x887   : > { %v5253_v53 = vpop.f32.mrb[4].mxu1 }
 0x888   : > { %v2838_v58 = vmul.f32 %v5253_v53, %v5025_v43  ;;  %v2814_v60 = vpop.f32.mrb[5].mxu1 }
 0x889   : > { %v2836_v56 = vmul.f32 %v5025_v43, %v2814_v60  ;;  %v5254_v33 = vpop.f32.mrb[6].mxu1 }
 0x88a   : > { %v2849_v61 = vadd.f32 %v5026_v54, %v2838_v58  ;;  %v2839_v62 = vmul.f32 %v5254_v33, %v5025_v43  ;;  %v2817_v0 = vpop.f32.mrb[7].mxu1  ;;  %v5973_v33 = vld [vmem:[%s8593_s5 + $0x48] sm:$0xff]  }
 0x88b   : > { %v2847_v1 = vadd.f32 %v5026_v54, %v2836_v56  ;;  %v2837_v2 = vmul.f32 %v5025_v43, %v2817_v0 }
 0x88c   : > { %v2857_v4 = vmin.f32 %v2849_v61, 0.0  ;;  %v2850_v25 = vadd.f32 %v5026_v54, %v2839_v62  ;;  %vm2853_vm13 = vcmp.gt.f32.partialorder %v2849_v61, 0.0  ;;  %v2962_v62 = vrot.slane %v7030_v28, 3 }
 0x88d   : > { %v2855_v5 = vmin.f32 %v2847_v1, 0.0  ;;  %v2848_v6 = vadd.f32 %v5026_v54, %v2837_v2  ;;  %vm2851_vm5 = vcmp.gt.f32.partialorder %v2847_v1, 0.0 }
 0x88e   : > { %v2863_v13 = vmul.f32 1.442695, %v2857_v4  ;;  %v2858_v7 = vmin.f32 %v2850_v25, 0.0  ;;  %vm2854_vm14 = vcmp.gt.f32.partialorder %v2850_v25, 0.0 }
 0x88f   : > { %v2859_v8 = vmul.f32 1.442695, %v2855_v5  ;;  %v2856_v10 = vmin.f32 %v2848_v6, 0.0  ;;  %vm2852_vm7 = vcmp.gt.f32.partialorder %v2848_v6, 0.0 }
 0x890   : > { %6028 = vpow2.f32 %v2863_v13  ;;  %v2865_v12 = vmul.f32 1.442695, %v2858_v7 }
 0x891   : > { %6030 = vpow2.f32 %v2859_v8  ;;  %v2861_v18 = vmul.f32 1.442695, %v2856_v10 }
 0x892   : > { %6032 = vpow2.f32 %v2865_v12 }
 0x893   : > { %6034 = vpow2.f32 %v2861_v18 }
 0x89a   : > { %v6029_v19 = vpop.eup %6028 }
 0x89b   : > { %v6031_v11 = vpop.eup %6030  ;;  %v5029_v14 = vadd.f32 -1.0, %v6029_v19 }
 0x89c   : > { %v6033_v16 = vpop.eup %6032  ;;  %v5027_v17 = vadd.f32 -1.0, %v6031_v11 }
 0x89d   : > { %v6035_v20 = vpop.eup %6034  ;;  %v2873_v9 = vmul.f32 0.1, %v5029_v14  ;;  %v5030_v21 = vadd.f32 -1.0, %v6033_v16 }
 0x89e   : > { %v2871_v3 = vmul.f32 0.1, %v5027_v17  ;;  %v5028_v24 = vadd.f32 -1.0, %v6035_v20 }
 0x89f   : > { %v2874_v57 = vmul.f32 0.1, %v5030_v21  ;;  %v2877_v23 = vsel %vm2853_vm13, %v2849_v61, %v2873_v9 }
 0x8a0   : > { %v2872_v59 = vmul.f32 0.1, %v5028_v24  ;;  %v2875_v27 = vsel %vm2851_vm5, %v2847_v1, %v2871_v3 }
 0x8a1   : > { %v2878_v26 = vsel %vm2854_vm14, %v2850_v25, %v2874_v57 }
 0x8a2   : > { %v2880_v29 = vpack.c.bf16 %v2878_v26, %v2877_v23  ;;  %v2876_v31 = vsel %vm2852_vm7, %v2848_v6, %v2872_v59  ;;  %v5974_v23 = vld [vmem:[#allocation16] sm:$0xff]   ;;  %v5975_v26 = vld [vmem:[#allocation16 + $0x8] sm:$0xff]  }
 0x8a3   : > { %v2879_v36 = vpack.c.bf16 %v2876_v31, %v2875_v27  ;;  %v5043_v27 = vld [vmem:[#allocation13] ss:$0 sm:$0xff]  ;;  %v5044_v31 = vld [vmem:[#allocation14] ss:$0 sm:$0xff] }
 0x8a4   : > { %v2888_v38 = vand.u32 %v2886_v37, %v2880_v29 }
 0x8a5   : > { %5256 = vmatpush3.bf16.msra.mxu0 %v2879_v36 }
 0x8a6   : > { %5257 = vmatprep.subr.bf16.mxu0 %v7030_v28 }
 0x8a9   : > { %5258 = vmatpush3.bf16.msra.mxu0 %v2888_v38 }
 0x8aa   : > { %5263 = vmatprep.subr.bf16.mxu0 %v7030_v28 }
 0x8ac   : > { %5260 = vmatmul.mubr.msk.bf16.vlgmr.msra.gmra.mrb[12].mxu0 %vm2881_vm15, %v7955_v32  ;;  %v5968_v32 = vld [vmem:[%s8593_s5 + $0x20] sm:$0xff]  }
 0x8ad   : > { %5267 = vmatprep.mubr.msk.bf16.mxu0 %vm7033_vm11, %v7030_v28  ;;  %3078 = vmatpush1.bf16.msra.mxu1 %v5968_v32 }
 0x8ae   : > { %3079 = vmatprep.subr.bf16.mxu1 %v7035_v40  ;;  %5264 = vmatpush3.bf16.msra.mxu0 %v5974_v23 }
 0x8af   : > { %5265 = vmatprep.subr.bf16.mxu0 %v7030_v28 }
 0x8b1   : > { %3080 = vmatpush1.bf16.msra.mxu1 %v5969_v44 }
 0x8b2   : > { %3081 = vmatprep.subr.bf16.mxu1 %v7035_v40  ;;  %5266 = vmatpush3.bf16.msra.mxu0 %v5975_v26 }
 0x8b3   : > { %5271 = vmatprep.subr.bf16.mxu0 %v7030_v28 }
 0x8b5   : > { %3082 = vmatpush1.bf16.msra.mxu1 %v5970_v46 }
 0x8b6   : > { %3083 = vmatprep.subr.bf16.mxu1 %v7035_v40 }
 0x8b9   : > { %3084 = vmatpush1.bf16.msra.mxu1 %v5971_v34 }
 0x8ba   : > { %3085 = vmatprep.subr.bf16.mxu1 %v7035_v40 }
 0x8bd   : > { %3086 = vmatpush1.bf16.msra.mxu1 %v5972_v48 }
 0x8be   : > { %3087 = vmatprep.subr.bf16.mxu1 %v7035_v40 }
 0x8c1   : > { %3088 = vmatpush1.bf16.msra.mxu1 %v5973_v33 }
 0x8c2   : > { %5315 = vmatprep.subr.bf16.mxu1 %v7030_v28 }
 0x97f   : > { %v8169_v47 = vpop.f32.mrb[12].mxu0 }
 0x980   : > { %v2933_v35 = vrot.slane %v8169_v47, 6  ;;  %v5261_v55 = vpop.f32.mrb[13].mxu0 }
 0x981   : > { %v8173_v49 = vpop.f32.mrb[14].mxu0 }
 0x982   : > { %v2938_v42 = vsel %vm1825_vm0, 0.0, %v2933_v35  ;;  %v2934_v50 = vrot.slane %v8173_v49, 6  ;;  %v5262_v51 = vpop.f32.mrb[15].mxu0 }
 0x983   : > { %v2970_v52 = vrot.slane %v2938_v42, 4  ;;  %v2949_v53 = vrot.slane %v2938_v42, 2  ;;  %v2940_v60 = vrot.slane %v2938_v42, 1  ;;  %v2959_v13 = vrot.slane %v2938_v42, 3 }
 0x984   : > { %v2935_v43 = vsel %vm1825_vm0, %v2933_v35, %v2934_v50  ;;  %vm8596_vm0 = vmmov %vm8590_vm4  ;;  %vm8597_vm4 = vcmask 1044480  }
 0x985   : > { %v2971_v54 = vrot.slane %v2935_v43, 4  ;;  %v2950_v58 = vrot.slane %v2935_v43, 2  ;;  %v2941_v56 = vrot.slane %v2935_v43, 1  ;;  %v2960_v61 = vrot.slane %v2935_v43, 3  ;;  %vm8598_vm8 = vmmov %vm8597_vm4 }
 0x986   : > { %vm8600_vm10 = vmmov %vm8596_vm0 }
 0x987   : > { %v2972_v0 = vsel %vm8594_vm9, %v2970_v52, %v2971_v54  ;;  %v2974_v1 = vsel %vm8595_vm3, %v2971_v54, %v2973_v45  ;;  %v2951_v2 = vsel %vm1896_vm1, %v2949_v53, %v2950_v58  ;;  %v2942_v4 = vsel %vm1854_vm2, %v2940_v60, %v2941_v56  ;;  %vm8599_vm1 = vmmov %vm8596_vm0  ;;  %v5976_v53 = vld [vmem:[#allocation19] sm:$0xff]   ;;  %v5047_v60 = vld [vmem:[#allocation17] ss:$0 sm:$0xff] }
 0x988   : > { %v2985_v25 = vpack.c.bf16 %v2974_v1, %v2972_v0  ;;  %v5941_v5 = vpack.i.bf16 %v2950_v58, %v2951_v2  ;;  %v5936_v6 = vpack.i.bf16 %v2941_v56, %v2942_v4  ;;  %v2961_v7 = vsel %vm8597_vm4, %v2959_v13, %v2960_v61  ;;  %vm8601_vm5 = vmmov %vm8596_vm0  ;;  %v5977_v58 = vld [vmem:[#allocation19 + $0x8] sm:$0xff]   ;;  %v5051_v4 = vld [vmem:[#allocation20] ss:$0 sm:$0xff] }
 0x989   : > { %v2963_v8 = vsel %vm8598_vm8, %v2960_v61, %v2962_v62  ;;  %vm8602_vm7 = vmmov %vm8596_vm0  ;;  %vm3395_vm4 = vcmask 111616  }
 0x98a   : > { %5042 = vmatprep.mubr.msk.bf16.mxu1 %vm8596_vm0, %v2985_v25  ;;  %5942 = vrot.lane.b32.xlu1 %v5941_v5, %s7032_s7  ;;  %v5946_v10 = vpack.i.bf16 %v2963_v8, %v2961_v7  ;;  %vm8603_vm15 = vmmov %vm8596_vm0  ;;  %s8615_s7 = sld [smem:[#allocation84_spill]] }
 0x98b   : > { %5937 = vrot.lane.b32.xlu0 %v5936_v6, %s7029_s12  ;;  %vm8604_vm9 = vmmov %vm8596_vm0  ;;  %s8609_s12 = sld [smem:[#allocation76_spill]] }
 0x98c   : > { %vm8605_vm3 = vmmov %vm8596_vm0  ;;  %vm3391_vm0 = vcmask 113664  }
 0x98d   : > { %vm8606_vm8 = vmmov %vm8599_vm1 }
 0x98f   : > { %5947 = vrot.lane.b32.xlu0 %v5946_v10, %s7036_s6 }
 0x990   : > { %s8616_s6 = smov %s8615_s7 }
 0x9fc   : > { %v5943_v12 = vpop.permute.xlu1 %5942 }
 0x9fd   : > { %v5938_v18 = vpop.permute.xlu0 %5937  ;;  %v5945_v14 = vunpack.i.h.bf16 %v5943_v12  ;;  %v5944_v16 = vunpack.i.l.bf16 %v5943_v12 }
 0x9fe   : > { %v5940_v19 = vunpack.i.h.bf16 %v5938_v18  ;;  %v5939_v11 = vunpack.i.l.bf16 %v5938_v18  ;;  %v5055_v18 = vld [vmem:[#allocation23] ss:$0 sm:$0xff] }
 0xa00   : > { %v2978_v17 = vsel %vm8599_vm1, %v2935_v43, %v5940_v19  ;;  %v2977_v20 = vsel %vm8600_vm10, %v2938_v42, %v5939_v11  ;;  %vm3539_vm1 = vcmask 259072   ;;  %vm8607_vm10 = vmmov %vm8605_vm3 }
 0xa01   : > { %v5948_v9 = vpop.permute.xlu0 %5947  ;;  %v2979_v24 = vsel %vm2286_vm6, %v2977_v20, %v5944_v16  ;;  %v2980_v57 = vsel %vm2286_vm6, %v2978_v17, %v5945_v14 }
 0xa02   : > { %v5950_v21 = vunpack.i.h.bf16 %v5948_v9  ;;  %v5949_v3 = vunpack.i.l.bf16 %v5948_v9 }
 0xa04   : > { %v2982_v59 = vsel %vm2981_vm12, %v2979_v24, %v5949_v3  ;;  %v2983_v22 = vsel %vm2981_vm12, %v2980_v57, %v5950_v21  ;;  %vm8608_vm12 = vmmov %vm8605_vm3 }
 0xa05   : > { %v2984_v15 = vpack.c.bf16 %v2983_v22, %v2982_v59 }
 0xa07   : > { %3102 = vmatmul.mubr.bf16.vlgmr.msra.gmra.mrb[8].mxu1 %v2984_v15 }
 0xa08   : > { %5319 = vmatprep.mubr.msk.bf16.mxu1 %vm7033_vm11, %v7030_v28 }
 0xada   : > { %v3103_v29 = vpop.f32.mrb[8].mxu1 }
 0xadb   : > { %v3117_v36 = vmul.f32 %v5043_v27, %v3103_v29  ;;  %v3105_v37 = vpop.f32.mrb[9].mxu1 }
 0xadc   : > { %v3106_v38 = vpop.f32.mrb[10].mxu1 }
 0xadd   : > { %v3126_v39 = vadd.f32 %v5044_v31, %v3117_v36  ;;  %v3118_v40 = vmul.f32 %v5043_v27, %v3106_v38  ;;  %v3108_v30 = vpop.f32.mrb[11].mxu1 }
 0xadf   : > { %v3130_v41 = vmin.f32 %v3126_v39, 0.0  ;;  %v3127_v63 = vadd.f32 %v5044_v31, %v3118_v40  ;;  %vm3128_vm13 = vcmp.gt.f32.partialorder %v3126_v39, 0.0 }
 0xae1   : > { %v3132_v32 = vmul.f32 1.442695, %v3130_v41  ;;  %v3131_v44 = vmin.f32 %v3127_v63, 0.0  ;;  %vm3129_vm14 = vcmp.gt.f32.partialorder %v3127_v63, 0.0 }
 0xae3   : > { %6036 = vpow2.f32 %v3132_v32  ;;  %v3134_v46 = vmul.f32 1.442695, %v3131_v44 }
 0xae5   : > { %6038 = vpow2.f32 %v3134_v46 }
 0xaed   : > { %v6037_v34 = vpop.eup %6036 }
 0xaee   : > { %v5045_v35 = vadd.f32 -1.0, %v6037_v34 }
 0xaef   : > { %v6039_v55 = vpop.eup %6038 }
 0xaf0   : > { %v3138_v48 = vmul.f32 0.1, %v5045_v35  ;;  %v5046_v42 = vadd.f32 -1.0, %v6039_v55  ;;  %v5980_v55 = vld [vmem:[#allocation25] sm:$0xff]  }
 0xaf2   : > { %v3140_v50 = vsel %vm3128_vm13, %v3126_v39, %v3138_v48  ;;  %v3139_v51 = vmul.f32 0.1, %v5046_v42  ;;  %v5981_v42 = vld [vmem:[#allocation25 + $0x8] sm:$0xff]   ;;  %vm8612_vm13 = vmmov %vm8605_vm3 }
 0xaf3   : > { %v8200_v45 = vadd.f32 %v3140_v50, %v8169_v47  ;;  %v5978_v47 = vld [vmem:[#allocation22] sm:$0xff]  }
 0xaf4   : > { %v3141_v52 = vsel %vm3129_vm14, %v3127_v63, %v3139_v51  ;;  %vm8613_vm14 = vmmov %vm8605_vm3 }
 0xaf5   : > { %v8203_v43 = vadd.f32 %v3141_v52, %v8173_v49  ;;  %v5979_v49 = vld [vmem:[#allocation22 + $0x8] sm:$0xff]  }
 0xaf7   : > { %v3144_v54 = vpack.c.bf16 %v8203_v43, %v8200_v45 }
 0xaf9   : > { %5268 = vmatmul.mubr.msk.bf16.vlgmr.msra.gmra.mrb[16].mxu0 %vm8601_vm5, %v3144_v54  ;;  %vm8614_vm5 = vmmov %vm8605_vm3 }
 0xafa   : > { %5272 = vmatpush3.bf16.msra.mxu0 %v5976_v53  ;;  %5275 = vmatprep.mubr.msk.bf16.mxu0 %vm7033_vm11, %v7030_v28 }
 0xafb   : > { %5273 = vmatprep.subr.bf16.mxu0 %v7030_v28 }
 0xafe   : > { %5274 = vmatpush3.bf16.msra.mxu0 %v5977_v58  ;;  %v5061_v58 = vld [vmem:[#allocation26] ss:$0 sm:$0xff] }
 0xaff   : > { %5279 = vmatprep.subr.bf16.mxu0 %v7030_v28 }
 0xb01   : > { %5276 = vmatmul.mubr.msk.bf16.vlgmr.msra.gmra.mrb[20].mxu0 %vm8602_vm7, %v3144_v54  ;;  %vm8618_vm7 = vmmov %vm8605_vm3 }
 0xb02   : > { %5280 = vmatpush3.bf16.msra.mxu0 %v5978_v47  ;;  %5283 = vmatprep.mubr.msk.bf16.mxu0 %vm7033_vm11, %v7030_v28 }
 0xb03   : > { %5281 = vmatprep.subr.bf16.mxu0 %v7030_v28 }
 0xb06   : > { %5282 = vmatpush3.bf16.msra.mxu0 %v5979_v49 }
 0xb07   : > { %5287 = vmatprep.subr.bf16.mxu0 %v7030_v28 }
 0xb09   : > { %5284 = vmatmul.mubr.msk.bf16.vlgmr.msra.gmra.mrb[24].mxu0 %vm8603_vm15, %v3144_v54  ;;  %vm8623_vm15 = vmmov %vm8605_vm3 }
 0xb0a   : > { %5289 = vmatprep.mubr.msk.bf16.mxu0 %vm7033_vm11, %v7030_v28 }
 0xbcc   : > { %v3205_v56 = vpop.f32.mrb[16].mxu0 }
 0xbcd   : > { %v5269_v33 = vpop.f32.mrb[17].mxu0  ;;  %v3206_v62 = vadd.f32 %v5047_v60, %v3205_v56 }
 0xbce   : > { %v3208_v61 = vpop.f32.mrb[18].mxu0 }
 0xbcf   : > { %v3209_v0 = vadd.f32 %v5047_v60, %v3208_v61  ;;  %v5270_v1 = vpop.f32.mrb[19].mxu0 }
 0xbd1   : > { %v3340_v2 = vpack.c.bf16 %v3209_v0, %v3206_v62 }
 0xbd4   : > { %v3269_v25 = vpop.f32.mrb[20].mxu0 }
 0xbd5   : > { %v5277_v5 = vpop.f32.mrb[21].mxu0  ;;  %v3270_v13 = vadd.f32 %v5051_v4, %v3269_v25 }
 0xbd6   : > { %v3272_v6 = vpop.f32.mrb[22].mxu0 }
 0xbd7   : > { %v3273_v7 = vadd.f32 %v5051_v4, %v3272_v6  ;;  %v5278_v8 = vpop.f32.mrb[23].mxu0 }
 0xbd9   : > { %v3341_v10 = vpack.c.bf16 %v3273_v7, %v3270_v13 }
 0xbdb   : > { %v3346_v12 = vsel %vm8604_vm9, %v3341_v10, 0  ;;  %vm8624_vm9 = vmmov %vm8605_vm3 }
 0xbdc   : > { %v3333_v19 = vpop.f32.mrb[24].mxu0  ;;  %5288 = vmatpush3.bf16.xpose.msra.mxu0 %v3346_v12 }
 0xbdd   : > { %v5285_v11 = vpop.f32.mrb[25].mxu0  ;;  %5293 = vmatprep.subr.bf16.mxu0 %v7030_v28  ;;  %v3334_v16 = vadd.f32 %v5055_v18, %v3333_v19 }
 0xbde   : > { %v3336_v14 = vpop.f32.mrb[26].mxu0 }
 0xbdf   : > { %v3337_v17 = vadd.f32 %v5055_v18, %v3336_v14  ;;  %v5286_v20 = vpop.f32.mrb[27].mxu0  ;;  %v5983_v18 = vld [vmem:[#allocation28 + $0x8] sm:$0xff]  }
 0xbe1   : > { %v3416_v9 = vpack.c.bf16 %v3337_v17, %v3334_v16 }
 0xbe3   : > { %5290 = vmatmul.mubr.msk.bf16.vlgmr.msra.gmra.mrb[28].mxu0 %vm8605_vm3, %v3340_v2  ;;  %v3421_v21 = vsel %vm1854_vm2, %v3416_v9, 0 }
 0xbe4   : > { %5294 = vmatpush3.bf16.msra.mxu0 %v3421_v21  ;;  %5295 = vmatprep.mubr.msk.bf16.mxu0 %vm7033_vm11, %v7030_v28  ;;  %v5065_v21 = vld [vmem:[%s8609_s12] ss:$0 sm:$0xff]  ;;  %s8617_s12 = sld [smem:[#allocation86_spill]] }
 0xbe5   : > { %5299 = vmatprep.subr.bf16.mxu0 %v7030_v28 }
 0xcb6   : > { %v3382_v3 = vpop.f32.mrb[28].mxu0 }
 0xcb7   : > { %v3389_v24 = vmul.f32 0.17677669, %v3382_v3  ;;  %v5291_v57 = vpop.f32.mrb[29].mxu0 }
 0xcb8   : > { %v3385_v59 = vpop.f32.mrb[30].mxu0 }
 0xcb9   : > { %v3390_v22 = vmul.f32 0.17677669, %v3385_v59  ;;  %v5292_v15 = vpop.f32.mrb[31].mxu0  ;;  %v3392_v23 = vsel %vm3391_vm0, %v3389_v24, -inf }
 0xcba   : > { %3393 = vmax.xlane.f32.xlu1 %v3392_v23 }
 0xcbb   : > { %v3396_v26 = vsel %vm3395_vm4, %v3390_v22, -inf }
 0xcbc   : > { %3397 = vmax.xlane.f32.xlu0 %v3396_v26 }
 0xd47   : > { %v3394_v27 = vpop.xlane.xlu1 %3393 }
 0xd48   : > { %v3399_v29 = vsub.f32 %v3389_v24, %v3394_v27 }
 0xd49   : > { %v3398_v31 = vpop.xlane.xlu0 %3397 }
 0xd4a   : > { %v3401_v36 = vmul.f32 1.442695, %v3399_v29  ;;  %v3400_v37 = vsub.f32 %v3390_v22, %v3398_v31  ;;  %v5066_v22 = vld [vmem:[%s8610_s10] ss:$0 sm:$0xff]  ;;  %v5985_v31 = vld [vmem:[%s8611_s16 + $0x8] sm:$0xff]   ;;  %s8619_s10 = sld [smem:[#allocation82_spill]] }
 0xd4b   : > { %v5984_v29 = vld [vmem:[%s8611_s16] sm:$0xff]  }
 0xd4c   : > { %6040 = vpow2.f32 %v3401_v36  ;;  %v3403_v38 = vmul.f32 1.442695, %v3400_v37  ;;  %5316 = vmatpush3.bf16.msra.mxu1 %v5984_v29  ;;  %v5067_v36 = vld [vmem:[#allocation29] ss:$0 sm:$0xff] }
 0xd4d   : > { %5317 = vmatprep.subr.bf16.mxu1 %v7030_v28 }
 0xd4e   : > { %6042 = vpow2.f32 %v3403_v38 }
 0xd50   : > { %5318 = vmatpush3.bf16.msra.mxu1 %v5985_v31  ;;  %v5077_v31 = vld [vmem:[#allocation32] ss:$0 sm:$0xff] }
 0xd51   : > { %5331 = vmatprep.subr.bf16.mxu1 %v7030_v28 }
 0xd56   : > { %v6041_v39 = vpop.eup %6040 }
 0xd57   : > { %v3405_v40 = vsel %vm3391_vm0, %v6041_v39, 0.0 }
 0xd58   : > { %v6043_v30 = vpop.eup %6042  ;;  %3406 = vadd.xlane.f32.xlu0 %v3405_v40 }
 0xd59   : > { %v3408_v41 = vsel %vm3395_vm4, %v6043_v30, 0.0 }
 0xd5a   : > { %3409 = vadd.xlane.f32.xlu1 %v3408_v41 }
 0xde5   : > { %v3407_v63 = vpop.xlane.xlu0 %3406 }
 0xde6   : > { %6044 = vrcp.f32 %v3407_v63 }
 0xde7   : > { %v3410_v32 = vpop.xlane.xlu1 %3409 }
 0xde8   : > { %6046 = vrcp.f32 %v3410_v32 }
 0xdf0   : > { %v6045_v44 = vpop.eup %6044 }
 0xdf1   : > { %v3412_v34 = vmul.f32 %v6045_v44, %v6041_v39 }
 0xdf2   : > { %v6047_v46 = vpop.eup %6046 }
 0xdf3   : > { %v3414_v35 = vmul.f32 %v6047_v46, %v6043_v30 }
 0xdf5   : > { %v3415_v48 = vpack.c.bf16 %v3414_v35, %v3412_v34 }
 0xdf7   : > { %5296 = vmatmul.mubr.msk.bf16.vlgmr.msra.gmra.mrb[32].mxu0 %vm3391_vm0, %v3415_v48 }
 0xdf8   : > { %5300 = vmatpush3.bf16.msra.mxu0 %v5980_v55  ;;  %5303 = vmatprep.mubr.msk.bf16.mxu0 %vm7033_vm11, %v7030_v28 }
 0xdf9   : > { %5301 = vmatprep.subr.bf16.mxu0 %v7030_v28 }
 0xdfc   : > { %5302 = vmatpush3.bf16.msra.mxu0 %v5981_v42 }
 0xdfd   : > { %5307 = vmatprep.subr.bf16.mxu0 %v7030_v28 }
 0xeca   : > { %v3457_v50 = vpop.f32.mrb[32].mxu0 }
 0xecb   : > { %v5297_v51 = vpop.f32.mrb[33].mxu0 }
 0xecc   : > { %v3460_v52 = vpop.f32.mrb[34].mxu0 }
 0xecd   : > { %v3464_v53 = vpack.c.bf16 %v3460_v52, %v3457_v50  ;;  %v5298_v54 = vpop.f32.mrb[35].mxu0  ;;  %v5071_v52 = vld [vmem:[#allocation31] ss:$0 sm:$0xff] }
 0xecf   : > { %5304 = vmatmul.mubr.msk.bf16.vlgmr.msra.gmra.mrb[36].mxu0 %vm8606_vm8, %v3464_v53  ;;  %vm8625_vm8 = vmmov %vm8605_vm3 }
 0xed0   : > { %5311 = vmatprep.mubr.msk.bf16.mxu0 %vm7033_vm11, %v7030_v28 }
 0xfa2   : > { %v3525_v47 = vpop.f32.mrb[36].mxu0 }
 0xfa3   : > { %v3526_v49 = vadd.f32 %v5061_v58, %v3525_v47  ;;  %v5305_v60 = vpop.f32.mrb[37].mxu0 }
 0xfa4   : > { %v3528_v56 = vpop.f32.mrb[38].mxu0 }
 0xfa5   : > { %v3529_v33 = vadd.f32 %v5061_v58, %v3528_v56  ;;  %v5306_v61 = vpop.f32.mrb[39].mxu0  ;;  %v3532_v62 = vadd.f32 %v3526_v49, %v8200_v45 }
 0xfa7   : > { %v3536_v0 = vsel %vm8607_vm10, %v3532_v62, 0.0  ;;  %v3533_v1 = vadd.f32 %v3529_v33, %v8203_v43  ;;  %v5982_v43 = vld [vmem:[#allocation28] sm:$0xff]   ;;  %vm8626_vm10 = vmmov %vm8605_vm3 }
 0xfa8   : > { %3537 = vadd.xlane.f32.xlu0 %v3536_v0  ;;  %5308 = vmatpush3.bf16.msra.mxu0 %v5982_v43  ;;  %v5989_v43 = vld [vmem:[%s8617_s12 + $0x8] sm:$0xff]  }
 0xfa9   : > { %v3540_v2 = vsel %vm3539_vm1, %v3533_v1, 0.0  ;;  %5309 = vmatprep.subr.bf16.mxu0 %v7030_v28 }
 0xfaa   : > { %3541 = vadd.xlane.f32.xlu1 %v3540_v2 }
 0xfac   : > { %5310 = vmatpush3.bf16.msra.mxu0 %v5983_v18 }
 0xfad   : > { %5323 = vmatprep.subr.bf16.mxu0 %v7030_v28 }
0x1035   : > { %v3538_v4 = vpop.xlane.xlu0 %3537 }
0x1036   : > { %v3544_v25 = vmul.f32 0.03125, %v3538_v4 }
0x1037   : > { %v3542_v5 = vpop.xlane.xlu1 %3541 }
0x1038   : > { %v3546_v6 = vsub.f32 %v3532_v62, %v3544_v25  ;;  %v3545_v13 = vmul.f32 0.03125, %v3542_v5 }
0x103a   : > { %v3547_v7 = vsub.f32 %v3533_v1, %v3545_v13  ;;  %v3548_v8 = vmul.f32 %v3546_v6, %v3546_v6 }
0x103c   : > { %v3550_v10 = vsel %vm8608_vm12, %v3548_v8, 0.0  ;;  %v3549_v12 = vmul.f32 %v3547_v7, %v3547_v7 }
0x103d   : > { %3551 = vadd.xlane.f32.xlu0 %v3550_v10  ;;  %v5986_v10 = vld [vmem:[%s8615_s7] sm:$0xff]   ;;  %s8621_s7 = sld [smem:[#allocation88_spill]] }
0x103e   : > { %v3553_v45 = vsel %vm3539_vm1, %v3549_v12, 0.0  ;;  %v5987_v12 = vld [vmem:[%s8617_s12] sm:$0xff]  }
0x103f   : > { %3554 = vadd.xlane.f32.xlu1 %v3553_v45  ;;  %v5988_v45 = vld [vmem:[%s8616_s6 + $0x8] sm:$0xff]  }
0x1043   : > { %s8622_s2 = smov %s8621_s7 }
0x1044   : > { %v5991_v29 = vld [vmem:[%s8622_s2 + $0x8] sm:$0xff]   ;;  %s8634_s2 = sld [smem:[#allocation93_spill]] }
0x10ca   : > { %v3552_v19 = vpop.xlane.xlu0 %3551 }
0x10cb   : > { %v3556_v11 = vmul.f32 0.03125, %v3552_v19 }
0x10cc   : > { %v3555_v14 = vpop.xlane.xlu1 %3554 }
0x10cd   : > { %v3558_v16 = vadd.f32 1e-05, %v3556_v11  ;;  %v3557_v17 = vmul.f32 0.03125, %v3555_v14 }
0x10cf   : > { %6048 = vrsqrt.f32 %v3558_v16  ;;  %v3559_v20 = vadd.f32 1e-05, %v3557_v17 }
0x10d1   : > { %6050 = vrsqrt.f32 %v3559_v20 }
0x10d9   : > { %v6049_v9 = vpop.eup %6048 }
0x10da   : > { %v3562_v3 = vmul.f32 %v6049_v9, %v3546_v6  ;;  %v5075_v9 = vld [vmem:[%s8619_s10] ss:$0 sm:$0xff]  ;;  %s8630_s10 = sld [smem:[#allocation94_spill]] }
0x10db   : > { %v6051_v24 = vpop.eup %6050 }
0x10dc   : > { %v3570_v57 = vmul.f32 %v5065_v21, %v3562_v3  ;;  %v3563_v59 = vmul.f32 %v6051_v24, %v3547_v7 }
0x10de   : > { %v3571_v15 = vmul.f32 %v5065_v21, %v3563_v59  ;;  %v3578_v23 = vadd.f32 %v5066_v22, %v3570_v57  ;;  %v5076_v59 = vld [vmem:[%s8620_s1] ss:$0 sm:$0xff]  ;;  %s8627_s1 = sld [smem:[#allocation90_spill]] }
0x10e0   : > { %v3579_v26 = vadd.f32 %v5066_v22, %v3571_v15 }
0x10e2   : > { %v3580_v27 = vpack.c.bf16 %v3579_v26, %v3578_v23 }
0x10e4   : > { %5312 = vmatmul.mubr.msk.bf16.vlgmr.msra.gmra.mrb[40].mxu0 %vm8612_vm13, %v3580_v27 }
0x10e5   : > { %5327 = vmatprep.mubr.msk.bf16.mxu0 %vm7033_vm11, %v7030_v28  ;;  %5324 = vmatpush3.bf16.msra.mxu0 %v5986_v10 }
0x10e6   : > { %5325 = vmatprep.subr.bf16.mxu0 %v7030_v28 }
0x10e9   : > { %5326 = vmatpush3.bf16.msra.mxu0 %v5988_v45 }
0x10ea   : > { %5339 = vmatprep.subr.bf16.mxu0 %v7030_v28 }
0x11b7   : > { %v3641_v37 = vpop.f32.mrb[40].mxu0 }
0x11b8   : > { %v3642_v38 = vadd.f32 %v5067_v36, %v3641_v37  ;;  %v5313_v39 = vpop.f32.mrb[41].mxu0  ;;  %v5081_v37 = vld [vmem:[#allocation34] ss:$0 sm:$0xff] }
0x11b9   : > { %v3644_v40 = vpop.f32.mrb[42].mxu0 }
0x11ba   : > { %v3648_v30 = vadd.f32 3.0, %v3642_v38  ;;  %v3645_v41 = vadd.f32 %v5067_v36, %v3644_v40  ;;  %v5314_v63 = vpop.f32.mrb[43].mxu0 }
0x11bc   : > { %v3650_v32 = vmax.f32 %v3648_v30, 0.0  ;;  %v3649_v44 = vadd.f32 3.0, %v3645_v41 }
0x11be   : > { %v3652_v46 = vmin.f32 %v3650_v32, 6.0  ;;  %v3651_v34 = vmax.f32 %v3649_v44, 0.0 }
0x11c0   : > { %v3654_v35 = vmul.f32 %v3652_v46, %v3642_v38  ;;  %v3653_v55 = vmin.f32 %v3651_v34, 6.0 }
0x11c2   : > { %v3655_v48 = vmul.f32 %v3653_v55, %v3645_v41  ;;  %v3656_v42 = vmul.f32 0.16666667, %v3654_v35 }
0x11c4   : > { %v3657_v50 = vmul.f32 0.16666667, %v3655_v48 }
0x11c6   : > { %v3658_v51 = vpack.c.bf16 %v3657_v50, %v3656_v42  ;;  %v5085_v50 = vld [vmem:[#allocation35] ss:$0 sm:$0xff] }
0x11c8   : > { %5320 = vmatmul.mubr.msk.bf16.vlgmr.msra.gmra.mrb[12].mxu1 %vm8613_vm14, %v3658_v51 }
0x11c9   : > { %5335 = vmatprep.mubr.msk.bf16.mxu1 %vm7033_vm11, %v7030_v28  ;;  %5332 = vmatpush3.bf16.msra.mxu1 %v5987_v12 }
0x11ca   : > { %5333 = vmatprep.subr.bf16.mxu1 %v7030_v28 }
0x11cd   : > { %5334 = vmatpush3.bf16.msra.mxu1 %v5989_v43 }
0x11ce   : > { %5347 = vmatprep.subr.bf16.mxu1 %v7030_v28 }
0x129b   : > { %v3719_v53 = vpop.f32.mrb[12].mxu1 }
0x129c   : > { %v3720_v54 = vadd.f32 %v5071_v52, %v3719_v53  ;;  %v5321_v58 = vpop.f32.mrb[13].mxu1 }
0x129d   : > { %v3722_v47 = vpop.f32.mrb[14].mxu1 }
0x129e   : > { %v3723_v49 = vadd.f32 %v5071_v52, %v3722_v47  ;;  %v5322_v60 = vpop.f32.mrb[15].mxu1  ;;  %v3726_v56 = vadd.f32 %v3720_v54, %v3578_v23 }
0x12a0   : > { %v3730_v33 = vsel %vm8614_vm5, %v3726_v56, 0.0  ;;  %v3727_v61 = vadd.f32 %v3723_v49, %v3579_v26  ;;  %v5990_v26 = vld [vmem:[%s8621_s7] sm:$0xff]   ;;  %s8633_s7 = sld [smem:[#allocation92_spill]] }
0x12a1   : > { %3731 = vadd.xlane.f32.xlu0 %v3730_v33 }
0x12a2   : > { %v3733_v62 = vsel %vm3539_vm1, %v3727_v61, 0.0 }
0x12a3   : > { %3734 = vadd.xlane.f32.xlu1 %v3733_v62 }
0x132e   : > { %v3732_v0 = vpop.xlane.xlu0 %3731 }
0x132f   : > { %v3736_v1 = vmul.f32 0.03125, %v3732_v0 }
0x1330   : > { %v3735_v2 = vpop.xlane.xlu1 %3734 }
0x1331   : > { %v3738_v4 = vsub.f32 %v3726_v56, %v3736_v1  ;;  %v3737_v25 = vmul.f32 0.03125, %v3735_v2 }
0x1333   : > { %v3739_v5 = vsub.f32 %v3727_v61, %v3737_v25  ;;  %v3740_v6 = vmul.f32 %v3738_v4, %v3738_v4 }
0x1335   : > { %v3742_v13 = vsel %vm8618_vm7, %v3740_v6, 0.0  ;;  %v3741_v7 = vmul.f32 %v3739_v5, %v3739_v5 }
0x1336   : > { %3743 = vadd.xlane.f32.xlu0 %v3742_v13 }
0x1337   : > { %v3745_v8 = vsel %vm3539_vm1, %v3741_v7, 0.0 }
0x1338   : > { %3746 = vadd.xlane.f32.xlu1 %v3745_v8 }
0x13c3   : > { %v3744_v18 = vpop.xlane.xlu0 %3743 }
0x13c4   : > { %v3748_v19 = vmul.f32 0.03125, %v3744_v18  ;;  %v5992_v18 = vld [vmem:[%s8627_s1] sm:$0xff]  }
0x13c5   : > { %v3747_v11 = vpop.xlane.xlu1 %3746 }
0x13c6   : > { %v3750_v14 = vadd.f32 1e-05, %v3748_v19  ;;  %v3749_v16 = vmul.f32 0.03125, %v3747_v11 }
0x13c8   : > { %6052 = vrsqrt.f32 %v3750_v14  ;;  %v3751_v17 = vadd.f32 1e-05, %v3749_v16 }
0x13ca   : > { %6054 = vrsqrt.f32 %v3751_v17 }
0x13d2   : > { %v6053_v20 = vpop.eup %6052 }
0x13d3   : > { %v3754_v21 = vmul.f32 %v6053_v20, %v3738_v4 }
0x13d4   : > { %v6055_v3 = vpop.eup %6054 }
0x13d5   : > { %v3762_v24 = vmul.f32 %v5075_v9, %v3754_v21  ;;  %v3755_v57 = vmul.f32 %v6055_v3, %v3739_v5  ;;  %v5993_v21 = vld [vmem:[%s8627_s1 + $0x8] sm:$0xff]   ;;  %s8631_s1 = smov %s8630_s10 }
0x13d7   : > { %v3763_v22 = vmul.f32 %v5075_v9, %v3755_v57  ;;  %v8273_v15 = vadd.f32 %v5076_v59, %v3762_v24 }
0x13d9   : > { %v8275_v23 = vadd.f32 %v5076_v59, %v3763_v22 }
0x13db   : > { %v3772_v27 = vpack.c.bf16 %v8275_v23, %v8273_v15 }
0x13dd   : > { %5328 = vmatmul.mubr.msk.bf16.vlgmr.msra.gmra.mrb[44].mxu0 %vm8623_vm15, %v3772_v27  ;;  %5336 = vmatmul.mubr.msk.bf16.vlgmr.msra.gmra.mrb[16].mxu1 %vm8624_vm9, %v3772_v27  ;;  %vm4548_vm15 = vcmask 24576  }
0x13de   : > { %5340 = vmatpush3.bf16.msra.mxu0 %v5990_v26  ;;  %5343 = vmatprep.mubr.msk.bf16.mxu0 %vm7033_vm11, %v7030_v28  ;;  %v5091_v26 = vld [vmem:[#allocation37] ss:$0 sm:$0xff] }
0x13df   : > { %5341 = vmatprep.subr.bf16.mxu0 %v7030_v28  ;;  %5349 = vmatprep.mubr.msk.bf16.mxu1 %vm7033_vm11, %v7030_v28 }
0x13e2   : > { %5342 = vmatpush3.bf16.msra.mxu0 %v5991_v29 }
0x13e3   : > { %5353 = vmatprep.subr.bf16.mxu0 %v7030_v28 }
0x13e5   : > { %5344 = vmatmul.mubr.msk.bf16.vlgmr.msra.gmra.mrb[48].mxu0 %vm8605_vm3, %v3772_v27 }
0x13e6   : > { %5355 = vmatprep.mubr.msk.bf16.mxu0 %vm7033_vm11, %v7030_v28 }
0x14b0   : > { %v3833_v36 = vpop.f32.mrb[44].mxu0  ;;  %v3897_v38 = vpop.f32.mrb[16].mxu1 }
0x14b1   : > { %v5329_v39 = vpop.f32.mrb[45].mxu0  ;;  %v5337_v40 = vpop.f32.mrb[17].mxu1  ;;  %v3834_v63 = vadd.f32 %v5077_v31, %v3833_v36  ;;  %v3898_v32 = vadd.f32 %v5081_v37, %v3897_v38 }
0x14b2   : > { %v3836_v30 = vpop.f32.mrb[46].mxu0  ;;  %v3900_v41 = vpop.f32.mrb[18].mxu1 }
0x14b3   : > { %v3837_v44 = vadd.f32 %v5077_v31, %v3836_v30  ;;  %v3901_v46 = vadd.f32 %v5081_v37, %v3900_v41  ;;  %v5330_v34 = vpop.f32.mrb[47].mxu0  ;;  %v5338_v35 = vpop.f32.mrb[19].mxu1 }
0x14b5   : > { %v3968_v55 = vpack.c.bf16 %v3837_v44, %v3834_v63  ;;  %v3969_v48 = vpack.c.bf16 %v3901_v46, %v3898_v32 }
0x14b7   : > { %v3974_v42 = vsel %vm8625_vm8, %v3969_v48, 0 }
0x14b8   : > { %v3961_v51 = vpop.f32.mrb[48].mxu0  ;;  %5348 = vmatpush3.bf16.xpose.msra.mxu1 %v3974_v42 }
0x14b9   : > { %v5345_v52 = vpop.f32.mrb[49].mxu0  ;;  %5359 = vmatprep.subr.bf16.mxu1 %v7030_v28  ;;  %v3962_v54 = vadd.f32 %v5085_v50, %v3961_v51 }
0x14ba   : > { %v3964_v53 = vpop.f32.mrb[50].mxu0 }
0x14bb   : > { %v3965_v58 = vadd.f32 %v5085_v50, %v3964_v53  ;;  %v5346_v47 = vpop.f32.mrb[51].mxu0  ;;  %v5995_v50 = vld [vmem:[%s8631_s1 + $0x8] sm:$0xff]  }
0x14bd   : > { %v4042_v49 = vpack.c.bf16 %v3965_v58, %v3962_v54 }
0x14bf   : > { %5350 = vmatmul.mubr.msk.bf16.vlgmr.msra.gmra.mrb[20].mxu1 %vm8626_vm10, %v3968_v55  ;;  %v4047_v60 = vsel %vm1854_vm2, %v4042_v49, 0  ;;  %vm8628_vm2 = vmmov %vm8605_vm3 }
0x14c0   : > { %5354 = vmatpush3.bf16.msra.mxu0 %v4047_v60  ;;  %5363 = vmatprep.mubr.msk.bf16.mxu1 %vm7033_vm11, %v7030_v28  ;;  %v5095_v60 = vld [vmem:[%s8633_s7] ss:$0 sm:$0xff]  ;;  %s8642_s7 = sld [smem:[#allocation98_spill]] }
0x14c1   : > { %5367 = vmatprep.subr.bf16.mxu0 %v7030_v28  ;;  %5360 = vmatpush3.bf16.msra.mxu1 %v5992_v18 }
0x14c2   : > { %5361 = vmatprep.subr.bf16.mxu1 %v7030_v28 }
0x14c5   : > { %5362 = vmatpush3.bf16.msra.mxu1 %v5993_v21 }
0x14c6   : > { %5375 = vmatprep.subr.bf16.mxu1 %v7030_v28 }
0x1592   : > { %v4010_v56 = vpop.f32.mrb[20].mxu1 }
0x1593   : > { %v4017_v33 = vmul.f32 0.17677669, %v4010_v56  ;;  %v5351_v61 = vpop.f32.mrb[21].mxu1 }
0x1594   : > { %v4013_v62 = vpop.f32.mrb[22].mxu1 }
0x1595   : > { %v4018_v0 = vmul.f32 0.17677669, %v4013_v62  ;;  %v5352_v1 = vpop.f32.mrb[23].mxu1  ;;  %v4019_v2 = vsel %vm3391_vm0, %v4017_v33, -inf }
0x1596   : > { %4020 = vmax.xlane.f32.xlu0 %v4019_v2 }
0x1597   : > { %v4022_v4 = vsel %vm3395_vm4, %v4018_v0, -inf }
0x1598   : > { %4023 = vmax.xlane.f32.xlu1 %v4022_v4 }
0x1623   : > { %v4021_v25 = vpop.xlane.xlu0 %4020 }
0x1624   : > { %v4025_v5 = vsub.f32 %v4017_v33, %v4021_v25 }
0x1625   : > { %v4024_v6 = vpop.xlane.xlu1 %4023 }
0x1626   : > { %v4027_v13 = vmul.f32 1.442695, %v4025_v5  ;;  %v4026_v7 = vsub.f32 %v4018_v0, %v4024_v6  ;;  %v5096_v0 = vld [vmem:[%s8634_s2] ss:$0 sm:$0xff]  ;;  %v5997_v6 = vld [vmem:[%s8635_s4 + $0x8] sm:$0xff]   ;;  %s8639_s2 = sld [smem:[#allocation99_spill]] }
0x1627   : > { %v5996_v5 = vld [vmem:[%s8635_s4] sm:$0xff]  }
0x1628   : > { %6056 = vpow2.f32 %v4027_v13  ;;  %v4029_v8 = vmul.f32 1.442695, %v4026_v7  ;;  %v5097_v13 = vld [vmem:[#allocation38] ss:$0 sm:$0xff] }
0x162a   : > { %6058 = vpow2.f32 %v4029_v8 }
0x1632   : > { %v6057_v10 = vpop.eup %6056 }
0x1633   : > { %v4031_v12 = vsel %vm3391_vm0, %v6057_v10, 0.0 }
0x1634   : > { %v6059_v45 = vpop.eup %6058  ;;  %4032 = vadd.xlane.f32.xlu0 %v4031_v12 }
0x1635   : > { %v4034_v43 = vsel %vm3395_vm4, %v6059_v45, 0.0 }
0x1636   : > { %4035 = vadd.xlane.f32.xlu1 %v4034_v43 }
0x16c1   : > { %v4033_v19 = vpop.xlane.xlu0 %4032 }
0x16c2   : > { %6060 = vrcp.f32 %v4033_v19 }
0x16c3   : > { %v4036_v11 = vpop.xlane.xlu1 %4035 }
0x16c4   : > { %6062 = vrcp.f32 %v4036_v11 }
0x16cc   : > { %v6061_v14 = vpop.eup %6060 }
0x16cd   : > { %v4038_v17 = vmul.f32 %v6061_v14, %v6057_v10 }
0x16ce   : > { %v6063_v16 = vpop.eup %6062 }
0x16cf   : > { %v4040_v20 = vmul.f32 %v6063_v16, %v6059_v45 }
0x16d1   : > { %v4041_v9 = vpack.c.bf16 %v4040_v20, %v4038_v17 }
0x16d3   : > { %5356 = vmatmul.mubr.msk.bf16.vlgmr.msra.gmra.mrb[52].mxu0 %vm3391_vm0, %v4041_v9  ;;  %vm8629_vm0 = vmmov %vm8628_vm2 }
0x16d4   : > { %5371 = vmatprep.mubr.msk.bf16.mxu0 %vm7033_vm11, %v7030_v28  ;;  %vm8632_vm4 = vmmov %vm8629_vm0 }
0x16d5   : > { %vm8636_vm12 = vmmov %vm8629_vm0 }
0x16d6   : > { %vm8637_vm13 = vmmov %vm8629_vm0 }
0x16d7   : > { %vm8638_vm14 = vmmov %vm8629_vm0 }
0x16d8   : > { %vm8643_vm5 = vmmov %vm8629_vm0 }
0x16d9   : > { %vm8644_vm7 = vmmov %vm8629_vm0 }
0x17a6   : > { %v4083_v3 = vpop.f32.mrb[52].mxu0 }
0x17a7   : > { %v5357_v24 = vpop.f32.mrb[53].mxu0 }
0x17a8   : > { %v4086_v57 = vpop.f32.mrb[54].mxu0 }
0x17a9   : > { %v4090_v59 = vpack.c.bf16 %v4086_v57, %v4083_v3  ;;  %v5358_v22 = vpop.f32.mrb[55].mxu0  ;;  %v5101_v57 = vld [vmem:[#allocation40] ss:$0 sm:$0xff] }
0x17ab   : > { %5364 = vmatmul.mubr.msk.bf16.vlgmr.msra.gmra.mrb[24].mxu1 %vm8628_vm2, %v4090_v59 }
0x17ac   : > { %5379 = vmatprep.mubr.msk.bf16.mxu1 %vm7033_vm11, %v7030_v28  ;;  %5376 = vmatpush3.bf16.msra.mxu1 %v5996_v5 }
0x17ad   : > { %5377 = vmatprep.subr.bf16.mxu1 %v7030_v28 }
0x17b0   : > { %5378 = vmatpush3.bf16.msra.mxu1 %v5997_v6 }
0x17b1   : > { %5391 = vmatprep.subr.bf16.mxu1 %v7030_v28 }
0x187e   : > { %v4151_v27 = vpop.f32.mrb[24].mxu1 }
0x187f   : > { %v4152_v29 = vadd.f32 %v5091_v26, %v4151_v27  ;;  %v5365_v31 = vpop.f32.mrb[25].mxu1 }
0x1880   : > { %v4154_v36 = vpop.f32.mrb[26].mxu1 }
0x1881   : > { %v4155_v37 = vadd.f32 %v5091_v26, %v4154_v36  ;;  %v5366_v38 = vpop.f32.mrb[27].mxu1  ;;  %v4158_v39 = vadd.f32 %v4152_v29, %v8273_v15 }
0x1883   : > { %v4162_v40 = vsel %vm8629_vm0, %v4158_v39, 0.0  ;;  %v4159_v30 = vadd.f32 %v4155_v37, %v8275_v23  ;;  %v5994_v23 = vld [vmem:[%s8630_s10] sm:$0xff]   ;;  %s8641_s10 = sld [smem:[#allocation97_spill]] }
0x1884   : > { %4163 = vadd.xlane.f32.xlu0 %v4162_v40  ;;  %5368 = vmatpush3.bf16.msra.mxu0 %v5994_v23  ;;  %v6001_v23 = vld [vmem:[%s8498_s3 + $0x8] sm:$0xff]  }
0x1885   : > { %v4165_v41 = vsel %vm3539_vm1, %v4159_v30, 0.0  ;;  %5369 = vmatprep.subr.bf16.mxu0 %v7030_v28 }
0x1886   : > { %4166 = vadd.xlane.f32.xlu1 %v4165_v41 }
0x1888   : > { %5370 = vmatpush3.bf16.msra.mxu0 %v5995_v50 }
0x1889   : > { %5383 = vmatprep.subr.bf16.mxu0 %v7030_v28 }
0x1911   : > { %v4164_v63 = vpop.xlane.xlu0 %4163 }
0x1912   : > { %v4168_v32 = vmul.f32 0.03125, %v4164_v63 }
0x1913   : > { %v4167_v44 = vpop.xlane.xlu1 %4166 }
0x1914   : > { %v4170_v46 = vsub.f32 %v4158_v39, %v4168_v32  ;;  %v4169_v34 = vmul.f32 0.03125, %v4167_v44 }
0x1916   : > { %v4171_v35 = vsub.f32 %v4159_v30, %v4169_v34  ;;  %v4172_v55 = vmul.f32 %v4170_v46, %v4170_v46 }
0x1918   : > { %v4174_v48 = vsel %vm8632_vm4, %v4172_v55, 0.0  ;;  %v4173_v15 = vmul.f32 %v4171_v35, %v4171_v35 }
0x1919   : > { %4175 = vadd.xlane.f32.xlu0 %v4174_v48  ;;  %v5998_v48 = vld [vmem:[%s8639_s2] sm:$0xff]  }
0x191a   : > { %v4177_v42 = vsel %vm3539_vm1, %v4173_v15, 0.0  ;;  %v5999_v15 = vld [vmem:[%s8639_s2 + $0x8] sm:$0xff]  }
0x191b   : > { %4178 = vadd.xlane.f32.xlu1 %v4177_v42  ;;  %v6000_v42 = vld [vmem:[%s8498_s3] sm:$0xff]  }
0x19a6   : > { %v4176_v51 = vpop.xlane.xlu0 %4175 }
0x19a7   : > { %v4180_v52 = vmul.f32 0.03125, %v4176_v51 }
0x19a8   : > { %v4179_v53 = vpop.xlane.xlu1 %4178 }
0x19a9   : > { %v4182_v54 = vadd.f32 1e-05, %v4180_v52  ;;  %v4181_v58 = vmul.f32 0.03125, %v4179_v53 }
0x19ab   : > { %6064 = vrsqrt.f32 %v4182_v54  ;;  %v4183_v47 = vadd.f32 1e-05, %v4181_v58 }
0x19ad   : > { %6066 = vrsqrt.f32 %v4183_v47 }
0x19b5   : > { %v6065_v49 = vpop.eup %6064 }
0x19b6   : > { %v4186_v56 = vmul.f32 %v6065_v49, %v4170_v46  ;;  %v5105_v49 = vld [vmem:[%s8641_s10] ss:$0 sm:$0xff]  ;;  %s1801_s10 = sand.u32 1, %s6938_s0  }
0x19b7   : > { %v6067_v33 = vpop.eup %6066  ;;  %s1802_s1 = scalar_lea.vmem [#allocation44], %s1801_s10  ;;  %s4551_s4 = scalar_lea.sflag [#allocation4], %s1801_s10 }
0x19b8   : > { %v4194_v61 = vmul.f32 %v5095_v60, %v4186_v56  ;;  %v4187_v62 = vmul.f32 %v6067_v33, %v4171_v35  ;;  %v5106_v33 = vld [vmem:[%s8642_s7] ss:$0 sm:$0xff]  ;;  %s5115_s7 = sshll.u32 %s7314_s15, 4  ;;  %s4563_s2 = sshll.u32 %s1802_s1, 4  ;;  %s8360_s2 = int_to_ptr.vmem [resolvable:$true] %s4563_s2 }
0x19b9   : > { %s6828_s5 = scalar_lea.vmem %s8360_s2, 16  ;;  %s7037_s15 = smov [#allocation44]  }
0x19ba   : > { %v4195_v1 = vmul.f32 %v5095_v60, %v4187_v62  ;;  %v4202_v2 = vadd.f32 %v5096_v0, %v4194_v61  ;;  %p6829_p2 = scmp.ne.s32.totalorder %s8360_s2, %s6828_s5  ;;  %s6832_s6 = sshll.u32 %s7037_s15, 4  ;;  %s6833_s6 = int_to_ptr.vmem [resolvable:$false] %s6832_s6 }
0x19bb   : > { %s6834_s8 = scalar_lea.vmem %s6833_s6, 32  ;;  %p6835_p12 = scmp.lt.s32.totalorder %s8360_s2, %s6833_s6 }
0x19bc   : > { %v4203_v4 = vadd.f32 %v5096_v0, %v4195_v1  ;;  %p6830_p3 = pnand %p6829_p2, %p8645_p0  ;;  %p6836_p5 = scmp.lt.s32.totalorder %s6834_s8, %s6828_s5 }
0x19be   : > { %v4204_v25 = vpack.c.bf16 %v4203_v4, %v4202_v2  ;;  %p6831_p4 = pneg %p6830_p3  ;;  %p6837_p6 = por %p6836_p5, %p6835_p12 }
0x19c0   : > { %5372 = vmatmul.mubr.msk.bf16.vlgmr.msra.gmra.mrb[56].mxu0 %vm8636_vm12, %v4204_v25  ;;  %p6838_p9 = pnand %p6837_p6, %p6831_p4 }
0x19c1   : > { %5387 = vmatprep.mubr.msk.bf16.mxu0 %vm7033_vm11, %v7030_v28  ;;  %5384 = vmatpush3.bf16.msra.mxu0 %v5998_v48 }
0x19c2   : > { %5385 = vmatprep.subr.bf16.mxu0 %v7030_v28 }
0x19c5   : > { %5386 = vmatpush3.bf16.msra.mxu0 %v5999_v15 }
0x1a93   : > { %v4265_v7 = vpop.f32.mrb[56].mxu0 }
0x1a94   : > { %v4266_v8 = vadd.f32 %v5097_v13, %v4265_v7  ;;  %v5373_v10 = vpop.f32.mrb[57].mxu0 }
0x1a95   : > { %v4268_v12 = vpop.f32.mrb[58].mxu0 }
0x1a96   : > { %v4272_v45 = vadd.f32 3.0, %v4266_v8  ;;  %v4269_v43 = vadd.f32 %v5097_v13, %v4268_v12  ;;  %v5374_v18 = vpop.f32.mrb[59].mxu0 }
0x1a97   : > { %v6002_v18 = vld [vmem:[%s8498_s3 + $0x10] sm:$0xff]  }
0x1a98   : > { %v4274_v19 = vmax.f32 %v4272_v45, 0.0  ;;  %v4273_v11 = vadd.f32 3.0, %v4269_v43 }
0x1a9a   : > { %v4276_v14 = vmin.f32 %v4274_v19, 6.0  ;;  %v4275_v16 = vmax.f32 %v4273_v11, 0.0  ;;  %v6003_v19 = vld [vmem:[%s8498_s3 + $0x18] sm:$0xff]   ;;  %s8358_s3 = scalar_lea.hbm %s7291_s9, %s5115_s7 }
0x1a9b   : > { %v4412_v11 = vld [vmem:[#allocation41] sm:$0x1] }
0x1a9c   : > { %v4278_v17 = vmul.f32 %v4276_v14, %v4266_v8  ;;  %v4277_v20 = vmin.f32 %v4275_v16, 6.0 }
0x1a9e   : > { %v4279_v9 = vmul.f32 %v4277_v20, %v4269_v43  ;;  %v4280_v21 = vmul.f32 0.16666667, %v4278_v17 }
0x1aa0   : > { %v4281_v3 = vmul.f32 0.16666667, %v4279_v9 }
0x1aa2   : > { %v4282_v24 = vpack.c.bf16 %v4281_v3, %v4280_v21 }
0x1aa4   : > { %5380 = vmatmul.mubr.msk.bf16.vlgmr.msra.gmra.mrb[28].mxu1 %vm8637_vm13, %v4282_v24 }
0x1aa5   : > { %5399 = vmatprep.mubr.msk.bf16.mxu1 %vm7033_vm11, %v7030_v28  ;;  %vm8640_vm11 = vmmov %vm8629_vm0  ;;  %5392 = vmatpush3.bf16.msra.mxu1 %v6000_v42 }
0x1aa6   : > { %5393 = vmatprep.subr.bf16.mxu1 %v7030_v28 }
0x1aa9   : > { %5394 = vmatpush3.bf16.msra.mxu1 %v6001_v23 }
0x1aaa   : > { %5395 = vmatprep.subr.bf16.mxu1 %v7030_v28 }
0x1aad   : > { %5396 = vmatpush3.bf16.msra.mxu1 %v6002_v18 }
0x1aae   : > { %5397 = vmatprep.subr.bf16.mxu1 %v7030_v28 }
0x1ab1   : > { %5398 = vmatpush3.bf16.msra.mxu1 %v6003_v19 }
0x1b77   : > { %v4343_v59 = vpop.f32.mrb[28].mxu1 }
0x1b78   : > { %v4344_v22 = vadd.f32 %v5101_v57, %v4343_v59  ;;  %v5381_v26 = vpop.f32.mrb[29].mxu1 }
0x1b79   : > { %v4346_v27 = vpop.f32.mrb[30].mxu1 }
0x1b7a   : > { %v4347_v29 = vadd.f32 %v5101_v57, %v4346_v27  ;;  %v5382_v31 = vpop.f32.mrb[31].mxu1  ;;  %v4350_v36 = vadd.f32 %v4344_v22, %v4202_v2  ;;  %v4480_v57 = vld [vmem:[#allocation43] sm:$0x1] }
0x1b7c   : > { %v4354_v37 = vsel %vm8638_vm14, %v4350_v36, 0.0  ;;  %v4351_v38 = vadd.f32 %v4347_v29, %v4203_v4 }
0x1b7d   : > { %4355 = vadd.xlane.f32.xlu0 %v4354_v37 }
0x1b7e   : > { %v4357_v39 = vsel %vm3539_vm1, %v4351_v38, 0.0 }
0x1b7f   : > { %4358 = vadd.xlane.f32.xlu1 %v4357_v39 }
0x1c0a   : > { %v4356_v40 = vpop.xlane.xlu0 %4355 }
0x1c0b   : > { %v4360_v30 = vmul.f32 0.03125, %v4356_v40 }
0x1c0c   : > { %v4359_v41 = vpop.xlane.xlu1 %4358 }
0x1c0d   : > { %v4362_v63 = vsub.f32 %v4350_v36, %v4360_v30  ;;  %v4361_v32 = vmul.f32 0.03125, %v4359_v41 }
0x1c0f   : > { %v4363_v44 = vsub.f32 %v4351_v38, %v4361_v32  ;;  %v4364_v46 = vmul.f32 %v4362_v63, %v4362_v63 }
0x1c11   : > { %v4366_v34 = vsel %vm8640_vm11, %v4364_v46, 0.0  ;;  %v4365_v35 = vmul.f32 %v4363_v44, %v4363_v44 }
0x1c12   : > { %4367 = vadd.xlane.f32.xlu0 %v4366_v34 }
0x1c13   : > { %v4369_v55 = vsel %vm3539_vm1, %v4365_v35, 0.0 }
0x1c14   : > { %4370 = vadd.xlane.f32.xlu1 %v4369_v55 }
0x1c9f   : > { %v4368_v50 = vpop.xlane.xlu0 %4367 }
0x1ca0   : > { %v4372_v51 = vmul.f32 0.03125, %v4368_v50 }
0x1ca1   : > { %v4371_v52 = vpop.xlane.xlu1 %4370 }
0x1ca2   : > { %v4374_v53 = vadd.f32 1e-05, %v4372_v51  ;;  %v4373_v54 = vmul.f32 0.03125, %v4371_v52 }
0x1ca4   : > { %6068 = vrsqrt.f32 %v4374_v53  ;;  %v4375_v58 = vadd.f32 1e-05, %v4373_v54 }
0x1ca6   : > { %6070 = vrsqrt.f32 %v4375_v58 }
0x1cae   : > { %v6069_v47 = vpop.eup %6068 }
0x1caf   : > { %v4378_v60 = vmul.f32 %v6069_v47, %v4362_v63 }
0x1cb0   : > { %v6071_v56 = vpop.eup %6070 }
0x1cb1   : > { %v4386_v61 = vmul.f32 %v5105_v49, %v4378_v60  ;;  %v4379_v62 = vmul.f32 %v6071_v56, %v4363_v44 }
0x1cb3   : > { %v4394_v0 = vadd.f32 %v5106_v33, %v4386_v61  ;;  %v4387_v1 = vmul.f32 %v5105_v49, %v4379_v62 }
0x1cb5   : > { %v4395_v2 = vadd.f32 %v5106_v33, %v4387_v1  ;;  %v4396_v4 = vsel %vm8643_vm5, %v4394_v0, 0.0 }
0x1cb7   : > { %v4397_v25 = vsel %vm3539_vm1, %v4395_v2, 0.0 }
0x1cb8   : > { %v4398_v5 = vadd.f32 %v4397_v25, %v4396_v4 }
0x1cba   : > { %v4399_v6 = vrot.slane %v4398_v5, 4 }
0x1cbc   : > { %v4400_v13 = vadd.f32 %v4399_v6, %v4398_v5 }
0x1cbe   : > { %v4401_v7 = vrot.slane %v4400_v13, 2 }
0x1cc0   : > { %v4402_v8 = vadd.f32 %v4401_v7, %v4400_v13 }
0x1cc2   : > { %v4403_v10 = vrot.slane %v4402_v8, 1 }
0x1cc4   : > { %v4404_v12 = vadd.f32 %v4403_v10, %v4402_v8 }
0x1cc6   : > { %v4406_v45 = vmul.f32 0.071428575, %v4404_v12 }
0x1cc8   : > { %v4407_v43 = vpack.c.bf16 %v4406_v45, %v4406_v45 }
0x1cca   : > { %5388 = vmatmul.mubr.msk.bf16.vlgmr.msra.gmra.mrb[60].mxu0 %vm8644_vm7, %v4407_v43 }
0x1d9d   : > { %v4462_v14 = vpop.f32.mrb[60].mxu0 }
0x1d9e   : > { %v4463_v16 = vadd.f32 %v4462_v14, %v4412_v11  ;;  %v5389_v17 = vpop.f32.mrb[61].mxu0 }
0x1d9f   : > { %v4465_v20 = vpop.f32.mrb[62].mxu0 }
0x1da0   : > { %vm4468_vm1 = vcmp.gt.f32.partialorder %v4463_v16, 0.0  ;;  %v4469_v9 = vmul.f32 0.01, %v4463_v16  ;;  %v5390_v21 = vpop.f32.mrb[63].mxu0 }
0x1da2   : > { %v4470_v3 = vsel %vm4468_vm1, %v4463_v16, %v4469_v9 }
0x1da3   : > { %v4471_v24 = vpack.c.bf16 %v4470_v3, %v4470_v3 }
0x1da5   : > { %5400 = vmatmul.mubr.msk.bf16.vlgmr.msra.gmra.mrb[32].mxu1 %vm2286_vm6, %v4471_v24 }
0x1e78   : > { %v4542_v28 = vpop.f32.mrb[32].mxu1 }
0x1e79   : > { %v4543_v59 = vadd.f32 %v4542_v28, %v4480_v57  ;;  %v5401_v22 = vpop.f32.mrb[33].mxu1 }
0x1e7a   : > { %v4545_v26 = vpop.f32.mrb[34].mxu1 }
0x1e7b   : > { %v5402_v27 = vpop.f32.mrb[35].mxu1  ;;  %4549 = vst.msk [vmem:[%s1802_s1] sm:$0x1] %vm4548_vm15, %v4543_v59 }
0x1e7c   : > { %6841 = shalt.err (!%p6838_p9)
}
0x1e7d   : > { %s6842_s1 = scalar_lea.hbm %s8358_s3, 16  ;;  %s6846_s10 = scalar_lea.hbm %s7291_s9, 32 }
0x1e7e   : > { %p6843_p10 = scmp.ne.s32.totalorder %s8358_s3, %s6842_s1  ;;  %p6847_p11 = scmp.lt.u32.totalorder %s8358_s3, %s7291_s9 }
0x1e7f   : > { %p6848_p13 = scmp.lt.u32.totalorder %s6846_s10, %s6842_s1  ;;  %p6850_p2 = scmp.lt.u32.totalorder %s6842_s1, %s8358_s3 }
0x1e80   : > { %p6844_p7 = pnand %p6843_p10, %p8645_p0 }
0x1e81   : > { %p6849_p1 = por %p6848_p13, %p6847_p11 }
0x1e82   : > { %p6845_p8 = pneg %p6844_p7 }
0x1e83   : > { %p6851_p3 = por %p6850_p2, %p6849_p1 }
0x1e85   : > { %p6852_p4 = pnand %p6851_p3, %p6845_p8 }
0x1e87   : > { %6855 = shalt.err (!%p6852_p4)
}
0x1e88   : > { %5512 = dma.vmem_to_hbm [thread:$0]  (%p8645_p0), %s8360_s2, 16, %s8358_s3, %s4551_s4  }
0x1e89 PF: > { %s8646_s8 = sld [smem:[#allocation102_spill]]  ;;  %s8647_s5 = sld [smem:[#allocation106_spill]] }
0x1e8a   : > { %p5654_p12 = scmp.ge.s32.totalorder %s6946_s11, 2 }
0x1e8f   : > { %s4575_s6 = sand.u32 1, %s8646_s8   ;;  %p8648_p5 = scmp.ne.s32.totalorder %s8647_s5, 0 }
0x1e90   : > { %s4576_s7 = scalar_lea.sflag [#allocation4], %s4575_s6 }
0x1e91   : > { %p5597_p6 = pnand %p5654_p12, %p8648_p5 }
0x1e93   : > { %6929 = dma.done.wait (!%p5597_p6), %s4576_s7, 16  }
0x1e94   : > { %6931 = vsyncadd (!%p5597_p6), %s4576_s7, 4294967280  ;;  %s8649_s11 = sld [smem:[#allocation104_spill]]  ;;  %s8650_s15 = sld [smem:[#allocation103_spill]] }
0x1e95   : > { %s8651_s10 = sld [smem:[#allocation105_spill]]  ;;  %s8652_s7 = smov %s6938_s0 }
0x1e9a   : > { %p123_p9 = scmp.ge.s32.totalorder %s8649_s11, 4   ;;  %s8653_s0 = smov %s8650_s15 }
0x1e9c   :  { %125 = sbr.rel (!%p123_p9) target bundleno = 113 (0x71), region = 409 }
0x1ea3   :  { %4580 = vsyncpa [#allocation3], 1 }
0x1ea4   :  { %4582 = vsyncpa [#allocation3 + $0x1], 1 }
0x1ea5   :  { %4583 = vsyncpa [#allocation6], 1 }
0x1ea6   :  { %4584 = vsyncpa [#allocation9], 1 }
0x1ea7   :  { %4585 = vsyncpa [#allocation12], 1 }
0x1ea8   :  { %4586 = vsyncpa [#allocation15], 1 }
0x1ea9   :  { %4587 = vsyncpa [#allocation18], 1 }
0x1eaa   :  { %4588 = vsyncpa [#allocation21], 1 }
0x1eab   :  { %4589 = vsyncpa [#allocation24], 1 }
0x1eac   :  { %4590 = vsyncpa [#allocation27], 1 }
0x1ead   :  { %4591 = vsyncpa [#allocation30], 1 }
0x1eae   :  { %4592 = vsyncpa [#allocation33], 1 }
0x1eaf   :  { %4593 = vsyncpa [#allocation36], 1 }
0x1eb0   :  { %4594 = vsyncpa [#allocation39], 1 }
0x1eb1   :  { %4595 = vsyncpa [#allocation42], 1 }
0x1eb2   :  { %4596 = vsyncpa [#allocation4], 1 }
0x1eb3   :  { %4598 = vsyncpa [#allocation4 + $0x1], 1 }

</bundles_post_ra>
